<compile_context>
chip_gen: v5e
topology: v5e:2x2
jax: 0.10.0
libtpu: 0.0.40
codegen_flags: <defaults>
</compile_context>

<pallas_src>
import jax
import jax.numpy as jnp
from jax.experimental import pallas as pl
from jax.experimental.pallas import tpu as pltpu


# ----------------------------------------------------------------------------
# Fused two-block Conv3x3 + BN(eval, folded) + ReLU + MaxPool2x2 kernel
# ----------------------------------------------------------------------------
def _make_fused_kernel(H, W, Cin, C1, C2, HC):
    """One grid step == one batch element through both conv blocks."""
    Ho1, Wo1 = H // 2, W // 2          # spatial after block-1 pool
    Ho2, Wo2 = Ho1 // 2, Wo1 // 2      # spatial after block-2 pool
    K1, K2 = 9 * Cin, 9 * C1           # folded-tap contraction depths

    def im2col(col_ref, src_ref, h, w, c):
        # col_ref: (h, w, 9*c) f32 ; src_ref: (h, w, c) f32.
        # Zero-fill, then scatter the 9 shifted (conv pad=1) windows; border
        # positions that fall outside the image stay zero == conv zero-pad.
        col_ref[...] = jnp.zeros_like(col_ref)
        for kh in range(3):
            for kw in range(3):
                dh, dw = kh - 1, kw - 1
                h0, h1 = max(0, -dh), min(h, h - dh)
                w0, w1 = max(0, -dw), min(w, w - dw)
                t = kh * 3 + kw
                col_ref[h0:h1, w0:w1, t * c:(t + 1) * c] = (
                    src_ref[h0 + dh:h1 + dh, w0 + dw:w1 + dw, :]
                )

    def pool2x2(act_ref, h, w, c):
        # 2x2 max-pool, stride 2: strided sublane reads along W, then a
        # major-dim split along H.  Returns an (h//2, w//2, c) value.
        even = act_ref[:, pl.ds(0, w // 2, stride=2), :]
        odd = act_ref[:, pl.ds(1, w // 2, stride=2), :]
        m = jnp.maximum(even, odd).reshape(h // 2, 2, w // 2, c)
        return jnp.maximum(m[:, 0], m[:, 1])

    def kernel(x_ref, w1_ref, b1_ref, w2_ref, b2_ref, o_ref,
               col1_ref, act1_ref, a1p_ref, col2_ref, act2_ref):
        # ------------------ Block 1: conv + BN + ReLU ------------------
        im2col(col1_ref, x_ref, H, W, Cin)
        w1 = w1_ref[...]                       # (K1, C1) bf16, hoisted
        b1 = b1_ref[...]                       # (1, C1)  f32
        for h0 in range(0, H, HC):             # M-chunks of HC*W (<=64) rows
            lhs = col1_ref[h0:h0 + HC, :, :].reshape(HC * W, K1)
            acc = jnp.dot(lhs.astype(jnp.bfloat16), w1,
                          preferred_element_type=jnp.float32)
            act = jnp.maximum(acc + b1, 0.0)
            act1_ref[h0:h0 + HC, :, :] = act.reshape(HC, W, C1)
        # 2x2 max-pool; pooled block-1 activation stays in VMEM.
        a1p_ref[...] = pool2x2(act1_ref, H, W, C1)

        # ------------------ Block 2: conv + BN + ReLU ------------------
        im2col(col2_ref, a1p_ref, Ho1, Wo1, C1)
        lhs2 = col2_ref[...].reshape(Ho1 * Wo1, K2)
        acc2 = jnp.dot(lhs2.astype(jnp.bfloat16), w2_ref[...],
                       preferred_element_type=jnp.float32)
        act2 = jnp.maximum(acc2 + b2_ref[...], 0.0)
        act2_ref[...] = act2.reshape(Ho1, Wo1, C2)
        # 2x2 max-pool -> final (Ho2, Wo2, C2) output tile.
        o_ref[...] = pool2x2(act2_ref, Ho1, Wo1, C2)

    return kernel


def embedding_net_forward(x_nchw, params):
    """x_nchw: (B, Cin, H, W) f32.  Returns (B, C2 * H/4 * W/4) f32."""
    (w1, b1), (w2, b2) = params
    B, Cin, H, W = x_nchw.shape
    assert H % 4 == 0 and W % 4 == 0, (H, W)
    C1, C2 = w1.shape[1], w2.shape[1]
    assert w1.shape == (9 * Cin, C1) and w2.shape == (9 * C1, C2)
    Ho1, Wo1 = H // 2, W // 2
    Ho2, Wo2 = H // 4, W // 4

    # M-chunk height for the block-1 matmul (keep <= 64 rows per dot).
    HC = max(1, min(H, max(1, 64 // W)))
    while H % HC:
        HC -= 1

    x = jnp.transpose(x_nchw, (0, 2, 3, 1))    # NCHW -> NHWC (tiny glue)

    flops = 2 * B * (H * W * 9 * Cin * C1 + Ho1 * Wo1 * 9 * C1 * C2)
    bytes_accessed = (x.size * 4 + w1.size * 2 + w2.size * 2
                      + b1.size * 4 + b2.size * 4 + B * Ho2 * Wo2 * C2 * 4)

    out = pl.pallas_call(
        _make_fused_kernel(H, W, Cin, C1, C2, HC),
        out_shape=jax.ShapeDtypeStruct((B, Ho2, Wo2, C2), jnp.float32),
        grid_spec=pltpu.PrefetchScalarGridSpec(
            num_scalar_prefetch=0,
            grid=(B,),
            in_specs=[
                pl.BlockSpec((None, H, W, Cin), lambda b: (b, 0, 0, 0)),
                pl.BlockSpec((9 * Cin, C1), lambda b: (0, 0)),
                pl.BlockSpec((1, C1), lambda b: (0, 0)),
                pl.BlockSpec((9 * C1, C2), lambda b: (0, 0)),
                pl.BlockSpec((1, C2), lambda b: (0, 0)),
            ],
            out_specs=pl.BlockSpec((None, Ho2, Wo2, C2),
                                   lambda b: (b, 0, 0, 0)),
            scratch_shapes=[
                pltpu.VMEM((H, W, 9 * Cin), jnp.float32),       # im2col blk-1
                pltpu.VMEM((H, W, C1), jnp.float32),            # pre-pool blk-1
                pltpu.VMEM((Ho1, Wo1, C1), jnp.float32),        # pooled blk-1
                pltpu.VMEM((Ho1, Wo1, 9 * C1), jnp.float32),    # im2col blk-2
                pltpu.VMEM((Ho1, Wo1, C2), jnp.float32),        # pre-pool blk-2
            ],
        ),
        compiler_params=pltpu.CompilerParams(
            dimension_semantics=("parallel",)),
        cost_estimate=pl.CostEstimate(flops=int(flops), transcendentals=0,
                                      bytes_accessed=int(bytes_accessed)),
    )(x, w1, b1, w2, b2)

    # NHWC -> NCHW then flatten, matching the torch backbone's x.view(B, -1).
    out = jnp.transpose(out, (0, 3, 1, 2))
    return out.reshape(B, -1)


def matching_network_forward(x_nchw, params):
    # MatchingNetwork.forward(x) == self.embedding_net(x)
    return embedding_net_forward(x_nchw, params)


# ----------------------------------------------------------------------------
# Parameter folding: Conv(OIHW) + eval-mode BatchNorm  ->  (9*Cin, Cout) matmul
# ----------------------------------------------------------------------------
def fold_conv_bn(w_oihw, conv_b, gamma, beta, mean, var, eps=1e-5):
    co, ci = w_oihw.shape[0], w_oihw.shape[1]
    inv_std = gamma / jnp.sqrt(var + eps)
    # Row index (kh*3 + kw)*ci + c_in matches the in-kernel im2col lane order.
    w = jnp.transpose(w_oihw, (2, 3, 1, 0)) * inv_std         # (3,3,ci,co)
    wmat = w.reshape(9 * ci, co).astype(jnp.bfloat16)
    bias = ((conv_b - mean) * inv_std + beta).reshape(1, co).astype(jnp.float32)
    return wmat, bias


def init_block_params(key, cin, cout):
    k1, k2, k3, k4, k5 = jax.random.split(key, 5)
    w = 0.1 * jax.random.normal(k1, (cout, cin, 3, 3), jnp.float32)  # torch OIHW
    b = 0.1 * jax.random.normal(k2, (cout,), jnp.float32)
    gamma = 1.0 + 0.05 * jax.random.normal(k3, (cout,), jnp.float32)
    beta = 0.05 * jax.random.normal(k4, (cout,), jnp.float32)
    mean = 0.02 * jax.random.normal(k5, (cout,), jnp.float32)
    var = jnp.ones((cout,), jnp.float32)
    return fold_conv_bn(w, b, gamma, beta, mean, var)


# ----------------------------------------------------------------------------
if __name__ == "__main__":
    key = jax.random.PRNGKey(0)
    kx, kp1, kp2 = jax.random.split(key, 3)

    B, C, H, W = 2, 4, 16, 16
    hidden = 32
    x = jax.random.normal(kx, (B, C, H, W), jnp.float32)   # NCHW, like PyTorch

    params = [
        init_block_params(kp1, C, hidden),       # 16x16x4  -> 8x8x32
        init_block_params(kp2, hidden, hidden),  # 8x8x32   -> 4x4x32
    ]

    fwd = jax.jit(lambda xx: matching_network_forward(xx, params))
    out = fwd(x)
    jax.block_until_ready(out)

    assert out.shape == (B, hidden * (H // 4) * (W // 4)), out.shape
    assert bool(jnp.all(jnp.isfinite(out)))
    print("KERNEL_OK")
</pallas_src>

<mosaic_0001>
module attributes {stable_mosaic.version = 11 : i64} {
  func.func @kernel(%arg0: i32, %arg1: memref<1x16x16x4xf32, #tpu.memory_space<vmem>>, %arg2: memref<36x32xbf16, #tpu.memory_space<vmem>>, %arg3: memref<1x32xf32, #tpu.memory_space<vmem>>, %arg4: memref<288x32xbf16, #tpu.memory_space<vmem>>, %arg5: memref<1x32xf32, #tpu.memory_space<vmem>>, %arg6: memref<1x4x4x32xf32, #tpu.memory_space<vmem>>, %arg7: memref<16x16x36xf32, #tpu.memory_space<vmem>>, %arg8: memref<16x16x32xf32, #tpu.memory_space<vmem>>, %arg9: memref<8x8x32xf32, #tpu.memory_space<vmem>>, %arg10: memref<8x8x288xf32, #tpu.memory_space<vmem>>, %arg11: memref<8x8x32xf32, #tpu.memory_space<vmem>>) attributes {dimension_semantics = [#tpu.dimension_semantics<parallel>], iteration_bounds = array<i64: 2>, scalar_prefetch = 0 : i64, scratch_operands = 5 : i64, tpu.core_type = #tpu.core_type<tc>, window_params = [{transform_indices = @transform_0, window_bounds = array<i64: 1, 16, 16, 4>}, {pipeline_mode = #tpu.pipeline_mode<synchronous>, transform_indices = @transform_1, window_bounds = array<i64: 36, 32>}, {pipeline_mode = #tpu.pipeline_mode<synchronous>, transform_indices = @transform_2, window_bounds = array<i64: 1, 32>}, {pipeline_mode = #tpu.pipeline_mode<synchronous>, transform_indices = @transform_3, window_bounds = array<i64: 288, 32>}, {pipeline_mode = #tpu.pipeline_mode<synchronous>, transform_indices = @transform_4, window_bounds = array<i64: 1, 32>}, {transform_indices = @transform_5, window_bounds = array<i64: 1, 4, 4, 32>}]} {
    %cst = arith.constant 0.000000e+00 : f32
    %0 = vector.broadcast %cst : f32 to vector<16x16x36xf32>
    %c0 = arith.constant 0 : index
    %c0_0 = arith.constant 0 : index
    %c0_1 = arith.constant 0 : index
    %1 = vector.load %arg7[%c0, %c0_0, %c0_1] : memref<16x16x36xf32, #tpu.memory_space<vmem>>, vector<16x16x36xf32>
    tpu.vector_store %arg7[%c0, %c0_0, %c0_1], %0 {strides = array<i32>} : memref<16x16x36xf32, #tpu.memory_space<vmem>>, vector<16x16x36xf32>,
    %c0_2 = arith.constant 0 : index
    %c0_3 = arith.constant 0 : index
    %c0_4 = arith.constant 0 : index
    %c0_5 = arith.constant 0 : index
    %2 = vector.load %arg1[%c0_2, %c0_3, %c0_4, %c0_5] : memref<1x16x16x4xf32, #tpu.memory_space<vmem>>, vector<1x15x15x4xf32>
    %3 = vector.shape_cast %2 : vector<1x15x15x4xf32> to vector<15x15x4xf32>
    %c1 = arith.constant 1 : index
    %c1_6 = arith.constant 1 : index
    %c0_7 = arith.constant 0 : index
    %4 = vector.load %arg7[%c1, %c1_6, %c0_7] : memref<16x16x36xf32, #tpu.memory_space<vmem>>, vector<15x15x4xf32>
    tpu.vector_store %arg7[%c1, %c1_6, %c0_7], %3 {strides = array<i32>} : memref<16x16x36xf32, #tpu.memory_space<vmem>>, vector<15x15x4xf32>,
    %c0_8 = arith.constant 0 : index
    %c0_9 = arith.constant 0 : index
    %c0_10 = arith.constant 0 : index
    %c0_11 = arith.constant 0 : index
    %5 = vector.load %arg1[%c0_8, %c0_9, %c0_10, %c0_11] : memref<1x16x16x4xf32, #tpu.memory_space<vmem>>, vector<1x15x16x4xf32>
    %6 = vector.shape_cast %5 : vector<1x15x16x4xf32> to vector<15x16x4xf32>
    %c1_12 = arith.constant 1 : index
    %c0_13 = arith.constant 0 : index
    %c4 = arith.constant 4 : index
    %7 = vector.load %arg7[%c1_12, %c0_13, %c4] : memref<16x16x36xf32, #tpu.memory_space<vmem>>, vector<15x16x4xf32>
    tpu.vector_store %arg7[%c1_12, %c0_13, %c4], %6 {strides = array<i32>} : memref<16x16x36xf32, #tpu.memory_space<vmem>>, vector<15x16x4xf32>,
    %c0_14 = arith.constant 0 : index
    %c0_15 = arith.constant 0 : index
    %c1_16 = arith.constant 1 : index
    %c0_17 = arith.constant 0 : index
    %8 = vector.load %arg1[%c0_14, %c0_15, %c1_16, %c0_17] : memref<1x16x16x4xf32, #tpu.memory_space<vmem>>, vector<1x15x15x4xf32>
    %9 = vector.shape_cast %8 : vector<1x15x15x4xf32> to vector<15x15x4xf32>
    %c1_18 = arith.constant 1 : index
    %c0_19 = arith.constant 0 : index
    %c8 = arith.constant 8 : index
    %10 = vector.load %arg7[%c1_18, %c0_19, %c8] : memref<16x16x36xf32, #tpu.memory_space<vmem>>, vector<15x15x4xf32>
    tpu.vector_store %arg7[%c1_18, %c0_19, %c8], %9 {strides = array<i32>} : memref<16x16x36xf32, #tpu.memory_space<vmem>>, vector<15x15x4xf32>,
    %c0_20 = arith.constant 0 : index
    %c0_21 = arith.constant 0 : index
    %c0_22 = arith.constant 0 : index
    %c0_23 = arith.constant 0 : index
    %11 = vector.load %arg1[%c0_20, %c0_21, %c0_22, %c0_23] : memref<1x16x16x4xf32, #tpu.memory_space<vmem>>, vector<1x16x15x4xf32>
    %12 = vector.shape_cast %11 : vector<1x16x15x4xf32> to vector<16x15x4xf32>
    %c0_24 = arith.constant 0 : index
    %c1_25 = arith.constant 1 : index
    %c12 = arith.constant 12 : index
    %13 = vector.load %arg7[%c0_24, %c1_25, %c12] : memref<16x16x36xf32, #tpu.memory_space<vmem>>, vector<16x15x4xf32>
    tpu.vector_store %arg7[%c0_24, %c1_25, %c12], %12 {strides = array<i32>} : memref<16x16x36xf32, #tpu.memory_space<vmem>>, vector<16x15x4xf32>,
    %c0_26 = arith.constant 0 : index
    %c0_27 = arith.constant 0 : index
    %c0_28 = arith.constant 0 : index
    %c0_29 = arith.constant 0 : index
    %14 = vector.load %arg1[%c0_26, %c0_27, %c0_28, %c0_29] : memref<1x16x16x4xf32, #tpu.memory_space<vmem>>, vector<1x16x16x4xf32>
    %15 = vector.shape_cast %14 : vector<1x16x16x4xf32> to vector<16x16x4xf32>
    %c0_30 = arith.constant 0 : index
    %c0_31 = arith.constant 0 : index
    %c16 = arith.constant 16 : index
    %16 = vector.load %arg7[%c0_30, %c0_31, %c16] : memref<16x16x36xf32, #tpu.memory_space<vmem>>, vector<16x16x4xf32>
    tpu.vector_store %arg7[%c0_30, %c0_31, %c16], %15 {strides = array<i32>} : memref<16x16x36xf32, #tpu.memory_space<vmem>>, vector<16x16x4xf32>,
    %c0_32 = arith.constant 0 : index
    %c0_33 = arith.constant 0 : index
    %c1_34 = arith.constant 1 : index
    %c0_35 = arith.constant 0 : index
    %17 = vector.load %arg1[%c0_32, %c0_33, %c1_34, %c0_35] : memref<1x16x16x4xf32, #tpu.memory_space<vmem>>, vector<1x16x15x4xf32>
    %18 = vector.shape_cast %17 : vector<1x16x15x4xf32> to vector<16x15x4xf32>
    %c0_36 = arith.constant 0 : index
    %c0_37 = arith.constant 0 : index
    %c20 = arith.constant 20 : index
    %19 = vector.load %arg7[%c0_36, %c0_37, %c20] : memref<16x16x36xf32, #tpu.memory_space<vmem>>, vector<16x15x4xf32>
    tpu.vector_store %arg7[%c0_36, %c0_37, %c20], %18 {strides = array<i32>} : memref<16x16x36xf32, #tpu.memory_space<vmem>>, vector<16x15x4xf32>,
    %c0_38 = arith.constant 0 : index
    %c1_39 = arith.constant 1 : index
    %c0_40 = arith.constant 0 : index
    %c0_41 = arith.constant 0 : index
    %20 = vector.load %arg1[%c0_38, %c1_39, %c0_40, %c0_41] : memref<1x16x16x4xf32, #tpu.memory_space<vmem>>, vector<1x15x15x4xf32>
    %21 = vector.shape_cast %20 : vector<1x15x15x4xf32> to vector<15x15x4xf32>
    %c0_42 = arith.constant 0 : index
    %c1_43 = arith.constant 1 : index
    %c24 = arith.constant 24 : index
    %22 = vector.load %arg7[%c0_42, %c1_43, %c24] : memref<16x16x36xf32, #tpu.memory_space<vmem>>, vector<15x15x4xf32>
    tpu.vector_store %arg7[%c0_42, %c1_43, %c24], %21 {strides = array<i32>} : memref<16x16x36xf32, #tpu.memory_space<vmem>>, vector<15x15x4xf32>,
    %c0_44 = arith.constant 0 : index
    %c1_45 = arith.constant 1 : index
    %c0_46 = arith.constant 0 : index
    %c0_47 = arith.constant 0 : index
    %23 = vector.load %arg1[%c0_44, %c1_45, %c0_46, %c0_47] : memref<1x16x16x4xf32, #tpu.memory_space<vmem>>, vector<1x15x16x4xf32>
    %24 = vector.shape_cast %23 : vector<1x15x16x4xf32> to vector<15x16x4xf32>
    %c0_48 = arith.constant 0 : index
    %c0_49 = arith.constant 0 : index
    %c28 = arith.constant 28 : index
    %25 = vector.load %arg7[%c0_48, %c0_49, %c28] : memref<16x16x36xf32, #tpu.memory_space<vmem>>, vector<15x16x4xf32>
    tpu.vector_store %arg7[%c0_48, %c0_49, %c28], %24 {strides = array<i32>} : memref<16x16x36xf32, #tpu.memory_space<vmem>>, vector<15x16x4xf32>,
    %c0_50 = arith.constant 0 : index
    %c1_51 = arith.constant 1 : index
    %c1_52 = arith.constant 1 : index
    %c0_53 = arith.constant 0 : index
    %26 = vector.load %arg1[%c0_50, %c1_51, %c1_52, %c0_53] : memref<1x16x16x4xf32, #tpu.memory_space<vmem>>, vector<1x15x15x4xf32>
    %27 = vector.shape_cast %26 : vector<1x15x15x4xf32> to vector<15x15x4xf32>
    %c0_54 = arith.constant 0 : index
    %c0_55 = arith.constant 0 : index
    %c32 = arith.constant 32 : index
    %28 = vector.load %arg7[%c0_54, %c0_55, %c32] : memref<16x16x36xf32, #tpu.memory_space<vmem>>, vector<15x15x4xf32>
    tpu.vector_store %arg7[%c0_54, %c0_55, %c32], %27 {strides = array<i32>} : memref<16x16x36xf32, #tpu.memory_space<vmem>>, vector<15x15x4xf32>,
    %c0_56 = arith.constant 0 : index
    %c0_57 = arith.constant 0 : index
    %29 = vector.load %arg2[%c0_56, %c0_57] : memref<36x32xbf16, #tpu.memory_space<vmem>>, vector<36x32xbf16>
    %c0_58 = arith.constant 0 : index
    %c0_59 = arith.constant 0 : index
    %30 = vector.load %arg3[%c0_58, %c0_59] : memref<1x32xf32, #tpu.memory_space<vmem>>, vector<1x32xf32>
    %c0_60 = arith.constant 0 : index
    %c0_61 = arith.constant 0 : index
    %c0_62 = arith.constant 0 : index
    %31 = vector.load %arg7[%c0_60, %c0_61, %c0_62] : memref<16x16x36xf32, #tpu.memory_space<vmem>>, vector<4x16x36xf32>
    %32 = vector.shape_cast %31 : vector<4x16x36xf32> to vector<64x36xf32>
    %33 = arith.truncf %32 : vector<64x36xf32> to vector<64x36xbf16>
    %cst_63 = arith.constant dense<0.000000e+00> : vector<64x32xf32>
    %34 = tpu.matmul %33, %29, %cst_63 {dimension_numbers = #tpu.dot_dimension_numbers<[1], [0], [0], [1], [0, 0, 1, 1], [], []>} : vector<64x36xbf16>, vector<36x32xbf16>, vector<64x32xf32> -> vector<64x32xf32>
    %35 = vector.broadcast %30 : vector<1x32xf32> to vector<64x32xf32>
    %36 = arith.addf %34, %35 : vector<64x32xf32>
    %cst_64 = arith.constant 0.000000e+00 : f32
    %37 = vector.broadcast %cst_64 : f32 to vector<64x32xf32>
    %38 = arith.maximumf %36, %37 : vector<64x32xf32>
    %39 = vector.shape_cast %38 : vector<64x32xf32> to vector<4x16x32xf32>
    %c0_65 = arith.constant 0 : index
    %c0_66 = arith.constant 0 : index
    %c0_67 = arith.constant 0 : index
    %40 = vector.load %arg8[%c0_65, %c0_66, %c0_67] : memref<16x16x32xf32, #tpu.memory_space<vmem>>, vector<4x16x32xf32>
    tpu.vector_store %arg8[%c0_65, %c0_66, %c0_67], %39 {strides = array<i32>} : memref<16x16x32xf32, #tpu.memory_space<vmem>>, vector<4x16x32xf32>,
    %c4_68 = arith.constant 4 : index
    %c0_69 = arith.constant 0 : index
    %c0_70 = arith.constant 0 : index
    %41 = vector.load %arg7[%c4_68, %c0_69, %c0_70] : memref<16x16x36xf32, #tpu.memory_space<vmem>>, vector<4x16x36xf32>
    %42 = vector.shape_cast %41 : vector<4x16x36xf32> to vector<64x36xf32>
    %43 = arith.truncf %42 : vector<64x36xf32> to vector<64x36xbf16>
    %cst_71 = arith.constant dense<0.000000e+00> : vector<64x32xf32>
    %44 = tpu.matmul %43, %29, %cst_71 {dimension_numbers = #tpu.dot_dimension_numbers<[1], [0], [0], [1], [0, 0, 1, 1], [], []>} : vector<64x36xbf16>, vector<36x32xbf16>, vector<64x32xf32> -> vector<64x32xf32>
    %45 = vector.broadcast %30 : vector<1x32xf32> to vector<64x32xf32>
    %46 = arith.addf %44, %45 : vector<64x32xf32>
    %cst_72 = arith.constant 0.000000e+00 : f32
    %47 = vector.broadcast %cst_72 : f32 to vector<64x32xf32>
    %48 = arith.maximumf %46, %47 : vector<64x32xf32>
    %49 = vector.shape_cast %48 : vector<64x32xf32> to vector<4x16x32xf32>
    %c4_73 = arith.constant 4 : index
    %c0_74 = arith.constant 0 : index
    %c0_75 = arith.constant 0 : index
    %50 = vector.load %arg8[%c4_73, %c0_74, %c0_75] : memref<16x16x32xf32, #tpu.memory_space<vmem>>, vector<4x16x32xf32>
    tpu.vector_store %arg8[%c4_73, %c0_74, %c0_75], %49 {strides = array<i32>} : memref<16x16x32xf32, #tpu.memory_space<vmem>>, vector<4x16x32xf32>,
    %c8_76 = arith.constant 8 : index
    %c0_77 = arith.constant 0 : index
    %c0_78 = arith.constant 0 : index
    %51 = vector.load %arg7[%c8_76, %c0_77, %c0_78] : memref<16x16x36xf32, #tpu.memory_space<vmem>>, vector<4x16x36xf32>
    %52 = vector.shape_cast %51 : vector<4x16x36xf32> to vector<64x36xf32>
    %53 = arith.truncf %52 : vector<64x36xf32> to vector<64x36xbf16>
    %cst_79 = arith.constant dense<0.000000e+00> : vector<64x32xf32>
    %54 = tpu.matmul %53, %29, %cst_79 {dimension_numbers = #tpu.dot_dimension_numbers<[1], [0], [0], [1], [0, 0, 1, 1], [], []>} : vector<64x36xbf16>, vector<36x32xbf16>, vector<64x32xf32> -> vector<64x32xf32>
    %55 = vector.broadcast %30 : vector<1x32xf32> to vector<64x32xf32>
    %56 = arith.addf %54, %55 : vector<64x32xf32>
    %cst_80 = arith.constant 0.000000e+00 : f32
    %57 = vector.broadcast %cst_80 : f32 to vector<64x32xf32>
    %58 = arith.maximumf %56, %57 : vector<64x32xf32>
    %59 = vector.shape_cast %58 : vector<64x32xf32> to vector<4x16x32xf32>
    %c8_81 = arith.constant 8 : index
    %c0_82 = arith.constant 0 : index
    %c0_83 = arith.constant 0 : index
    %60 = vector.load %arg8[%c8_81, %c0_82, %c0_83] : memref<16x16x32xf32, #tpu.memory_space<vmem>>, vector<4x16x32xf32>
    tpu.vector_store %arg8[%c8_81, %c0_82, %c0_83], %59 {strides = array<i32>} : memref<16x16x32xf32, #tpu.memory_space<vmem>>, vector<4x16x32xf32>,
    %c12_84 = arith.constant 12 : index
    %c0_85 = arith.constant 0 : index
    %c0_86 = arith.constant 0 : index
    %61 = vector.load %arg7[%c12_84, %c0_85, %c0_86] : memref<16x16x36xf32, #tpu.memory_space<vmem>>, vector<4x16x36xf32>
    %62 = vector.shape_cast %61 : vector<4x16x36xf32> to vector<64x36xf32>
    %63 = arith.truncf %62 : vector<64x36xf32> to vector<64x36xbf16>
    %cst_87 = arith.constant dense<0.000000e+00> : vector<64x32xf32>
    %64 = tpu.matmul %63, %29, %cst_87 {dimension_numbers = #tpu.dot_dimension_numbers<[1], [0], [0], [1], [0, 0, 1, 1], [], []>} : vector<64x36xbf16>, vector<36x32xbf16>, vector<64x32xf32> -> vector<64x32xf32>
    %65 = vector.broadcast %30 : vector<1x32xf32> to vector<64x32xf32>
    %66 = arith.addf %64, %65 : vector<64x32xf32>
    %cst_88 = arith.constant 0.000000e+00 : f32
    %67 = vector.broadcast %cst_88 : f32 to vector<64x32xf32>
    %68 = arith.maximumf %66, %67 : vector<64x32xf32>
    %69 = vector.shape_cast %68 : vector<64x32xf32> to vector<4x16x32xf32>
    %c12_89 = arith.constant 12 : index
    %c0_90 = arith.constant 0 : index
    %c0_91 = arith.constant 0 : index
    %70 = vector.load %arg8[%c12_89, %c0_90, %c0_91] : memref<16x16x32xf32, #tpu.memory_space<vmem>>, vector<4x16x32xf32>
    tpu.vector_store %arg8[%c12_89, %c0_90, %c0_91], %69 {strides = array<i32>} : memref<16x16x32xf32, #tpu.memory_space<vmem>>, vector<4x16x32xf32>,
    %c0_92 = arith.constant 0 : index
    %c0_93 = arith.constant 0 : index
    %c0_94 = arith.constant 0 : index
    %71 = tpu.strided_load %arg8[%c0_92, %c0_93, %c0_94] {strides = array<i32: 1, 2, 1>} : memref<16x16x32xf32, #tpu.memory_space<vmem>>, vector<16x8x32xf32>
    %c0_95 = arith.constant 0 : index
    %c1_96 = arith.constant 1 : index
    %c0_97 = arith.constant 0 : index
    %72 = tpu.strided_load %arg8[%c0_95, %c1_96, %c0_97] {strides = array<i32: 1, 2, 1>} : memref<16x16x32xf32, #tpu.memory_space<vmem>>, vector<16x8x32xf32>
    %73 = arith.maximumf %71, %72 : vector<16x8x32xf32>
    %74 = vector.shape_cast %73 : vector<16x8x32xf32> to vector<8x2x8x32xf32>
    %75 = vector.extract_strided_slice %74 {offsets = [0, 0, 0, 0], sizes = [8, 1, 8, 32], strides = [1, 1, 1, 1]} : vector<8x2x8x32xf32> to vector<8x1x8x32xf32>
    %76 = vector.shape_cast %75 : vector<8x1x8x32xf32> to vector<8x8x32xf32>
    %77 = vector.extract_strided_slice %74 {offsets = [0, 1, 0, 0], sizes = [8, 1, 8, 32], strides = [1, 1, 1, 1]} : vector<8x2x8x32xf32> to vector<8x1x8x32xf32>
    %78 = vector.shape_cast %77 : vector<8x1x8x32xf32> to vector<8x8x32xf32>
    %79 = arith.maximumf %76, %78 : vector<8x8x32xf32>
    %c0_98 = arith.constant 0 : index
    %c0_99 = arith.constant 0 : index
    %c0_100 = arith.constant 0 : index
    %80 = vector.load %arg9[%c0_98, %c0_99, %c0_100] : memref<8x8x32xf32, #tpu.memory_space<vmem>>, vector<8x8x32xf32>
    tpu.vector_store %arg9[%c0_98, %c0_99, %c0_100], %79 {strides = array<i32>} : memref<8x8x32xf32, #tpu.memory_space<vmem>>, vector<8x8x32xf32>,
    %cst_101 = arith.constant 0.000000e+00 : f32
    %81 = vector.broadcast %cst_101 : f32 to vector<8x8x288xf32>
    %c0_102 = arith.constant 0 : index
    %c0_103 = arith.constant 0 : index
    %c0_104 = arith.constant 0 : index
    %82 = vector.load %arg10[%c0_102, %c0_103, %c0_104] : memref<8x8x288xf32, #tpu.memory_space<vmem>>, vector<8x8x288xf32>
    tpu.vector_store %arg10[%c0_102, %c0_103, %c0_104], %81 {strides = array<i32>} : memref<8x8x288xf32, #tpu.memory_space<vmem>>, vector<8x8x288xf32>,
    %c0_105 = arith.constant 0 : index
    %c0_106 = arith.constant 0 : index
    %c0_107 = arith.constant 0 : index
    %83 = vector.load %arg9[%c0_105, %c0_106, %c0_107] : memref<8x8x32xf32, #tpu.memory_space<vmem>>, vector<7x7x32xf32>
    %c1_108 = arith.constant 1 : index
    %c1_109 = arith.constant 1 : index
    %c0_110 = arith.constant 0 : index
    %84 = vector.load %arg10[%c1_108, %c1_109, %c0_110] : memref<8x8x288xf32, #tpu.memory_space<vmem>>, vector<7x7x32xf32>
    tpu.vector_store %arg10[%c1_108, %c1_109, %c0_110], %83 {strides = array<i32>} : memref<8x8x288xf32, #tpu.memory_space<vmem>>, vector<7x7x32xf32>,
    %c0_111 = arith.constant 0 : index
    %c0_112 = arith.constant 0 : index
    %c0_113 = arith.constant 0 : index
    %85 = vector.load %arg9[%c0_111, %c0_112, %c0_113] : memref<8x8x32xf32, #tpu.memory_space<vmem>>, vector<7x8x32xf32>
    %c1_114 = arith.constant 1 : index
    %c0_115 = arith.constant 0 : index
    %c32_116 = arith.constant 32 : index
    %86 = vector.load %arg10[%c1_114, %c0_115, %c32_116] : memref<8x8x288xf32, #tpu.memory_space<vmem>>, vector<7x8x32xf32>
    tpu.vector_store %arg10[%c1_114, %c0_115, %c32_116], %85 {strides = array<i32>} : memref<8x8x288xf32, #tpu.memory_space<vmem>>, vector<7x8x32xf32>,
    %c0_117 = arith.constant 0 : index
    %c1_118 = arith.constant 1 : index
    %c0_119 = arith.constant 0 : index
    %87 = vector.load %arg9[%c0_117, %c1_118, %c0_119] : memref<8x8x32xf32, #tpu.memory_space<vmem>>, vector<7x7x32xf32>
    %c1_120 = arith.constant 1 : index
    %c0_121 = arith.constant 0 : index
    %c64 = arith.constant 64 : index
    %88 = vector.load %arg10[%c1_120, %c0_121, %c64] : memref<8x8x288xf32, #tpu.memory_space<vmem>>, vector<7x7x32xf32>
    tpu.vector_store %arg10[%c1_120, %c0_121, %c64], %87 {strides = array<i32>} : memref<8x8x288xf32, #tpu.memory_space<vmem>>, vector<7x7x32xf32>,
    %c0_122 = arith.constant 0 : index
    %c0_123 = arith.constant 0 : index
    %c0_124 = arith.constant 0 : index
    %89 = vector.load %arg9[%c0_122, %c0_123, %c0_124] : memref<8x8x32xf32, #tpu.memory_space<vmem>>, vector<8x7x32xf32>
    %c0_125 = arith.constant 0 : index
    %c1_126 = arith.constant 1 : index
    %c96 = arith.constant 96 : index
    %90 = vector.load %arg10[%c0_125, %c1_126, %c96] : memref<8x8x288xf32, #tpu.memory_space<vmem>>, vector<8x7x32xf32>
    tpu.vector_store %arg10[%c0_125, %c1_126, %c96], %89 {strides = array<i32>} : memref<8x8x288xf32, #tpu.memory_space<vmem>>, vector<8x7x32xf32>,
    %c0_127 = arith.constant 0 : index
    %c0_128 = arith.constant 0 : index
    %c0_129 = arith.constant 0 : index
    %91 = vector.load %arg9[%c0_127, %c0_128, %c0_129] : memref<8x8x32xf32, #tpu.memory_space<vmem>>, vector<8x8x32xf32>
    %c0_130 = arith.constant 0 : index
    %c0_131 = arith.constant 0 : index
    %c128 = arith.constant 128 : index
    %92 = vector.load %arg10[%c0_130, %c0_131, %c128] : memref<8x8x288xf32, #tpu.memory_space<vmem>>, vector<8x8x32xf32>
    tpu.vector_store %arg10[%c0_130, %c0_131, %c128], %91 {strides = array<i32>} : memref<8x8x288xf32, #tpu.memory_space<vmem>>, vector<8x8x32xf32>,
    %c0_132 = arith.constant 0 : index
    %c1_133 = arith.constant 1 : index
    %c0_134 = arith.constant 0 : index
    %93 = vector.load %arg9[%c0_132, %c1_133, %c0_134] : memref<8x8x32xf32, #tpu.memory_space<vmem>>, vector<8x7x32xf32>
    %c0_135 = arith.constant 0 : index
    %c0_136 = arith.constant 0 : index
    %c160 = arith.constant 160 : index
    %94 = vector.load %arg10[%c0_135, %c0_136, %c160] : memref<8x8x288xf32, #tpu.memory_space<vmem>>, vector<8x7x32xf32>
    tpu.vector_store %arg10[%c0_135, %c0_136, %c160], %93 {strides = array<i32>} : memref<8x8x288xf32, #tpu.memory_space<vmem>>, vector<8x7x32xf32>,
    %c1_137 = arith.constant 1 : index
    %c0_138 = arith.constant 0 : index
    %c0_139 = arith.constant 0 : index
    %95 = vector.load %arg9[%c1_137, %c0_138, %c0_139] : memref<8x8x32xf32, #tpu.memory_space<vmem>>, vector<7x7x32xf32>
    %c0_140 = arith.constant 0 : index
    %c1_141 = arith.constant 1 : index
    %c192 = arith.constant 192 : index
    %96 = vector.load %arg10[%c0_140, %c1_141, %c192] : memref<8x8x288xf32, #tpu.memory_space<vmem>>, vector<7x7x32xf32>
    tpu.vector_store %arg10[%c0_140, %c1_141, %c192], %95 {strides = array<i32>} : memref<8x8x288xf32, #tpu.memory_space<vmem>>, vector<7x7x32xf32>,
    %c1_142 = arith.constant 1 : index
    %c0_143 = arith.constant 0 : index
    %c0_144 = arith.constant 0 : index
    %97 = vector.load %arg9[%c1_142, %c0_143, %c0_144] : memref<8x8x32xf32, #tpu.memory_space<vmem>>, vector<7x8x32xf32>
    %c0_145 = arith.constant 0 : index
    %c0_146 = arith.constant 0 : index
    %c224 = arith.constant 224 : index
    %98 = vector.load %arg10[%c0_145, %c0_146, %c224] : memref<8x8x288xf32, #tpu.memory_space<vmem>>, vector<7x8x32xf32>
    tpu.vector_store %arg10[%c0_145, %c0_146, %c224], %97 {strides = array<i32>} : memref<8x8x288xf32, #tpu.memory_space<vmem>>, vector<7x8x32xf32>,
    %c1_147 = arith.constant 1 : index
    %c1_148 = arith.constant 1 : index
    %c0_149 = arith.constant 0 : index
    %99 = vector.load %arg9[%c1_147, %c1_148, %c0_149] : memref<8x8x32xf32, #tpu.memory_space<vmem>>, vector<7x7x32xf32>
    %c0_150 = arith.constant 0 : index
    %c0_151 = arith.constant 0 : index
    %c256 = arith.constant 256 : index
    %100 = vector.load %arg10[%c0_150, %c0_151, %c256] : memref<8x8x288xf32, #tpu.memory_space<vmem>>, vector<7x7x32xf32>
    tpu.vector_store %arg10[%c0_150, %c0_151, %c256], %99 {strides = array<i32>} : memref<8x8x288xf32, #tpu.memory_space<vmem>>, vector<7x7x32xf32>,
    %c0_152 = arith.constant 0 : index
    %c0_153 = arith.constant 0 : index
    %c0_154 = arith.constant 0 : index
    %101 = vector.load %arg10[%c0_152, %c0_153, %c0_154] : memref<8x8x288xf32, #tpu.memory_space<vmem>>, vector<8x8x288xf32>
    %102 = vector.shape_cast %101 : vector<8x8x288xf32> to vector<64x288xf32>
    %103 = arith.truncf %102 : vector<64x288xf32> to vector<64x288xbf16>
    %c0_155 = arith.constant 0 : index
    %c0_156 = arith.constant 0 : index
    %104 = vector.load %arg4[%c0_155, %c0_156] : memref<288x32xbf16, #tpu.memory_space<vmem>>, vector<288x32xbf16>
    %cst_157 = arith.constant dense<0.000000e+00> : vector<64x32xf32>
    %105 = tpu.matmul %103, %104, %cst_157 {dimension_numbers = #tpu.dot_dimension_numbers<[1], [0], [0], [1], [0, 0, 1, 1], [], []>} : vector<64x288xbf16>, vector<288x32xbf16>, vector<64x32xf32> -> vector<64x32xf32>
    %c0_158 = arith.constant 0 : index
    %c0_159 = arith.constant 0 : index
    %106 = vector.load %arg5[%c0_158, %c0_159] : memref<1x32xf32, #tpu.memory_space<vmem>>, vector<1x32xf32>
    %107 = vector.broadcast %106 : vector<1x32xf32> to vector<64x32xf32>
    %108 = arith.addf %105, %107 : vector<64x32xf32>
    %cst_160 = arith.constant 0.000000e+00 : f32
    %109 = vector.broadcast %cst_160 : f32 to vector<64x32xf32>
    %110 = arith.maximumf %108, %109 : vector<64x32xf32>
    %111 = vector.shape_cast %110 : vector<64x32xf32> to vector<8x8x32xf32>
    %c0_161 = arith.constant 0 : index
    %c0_162 = arith.constant 0 : index
    %c0_163 = arith.constant 0 : index
    %112 = vector.load %arg11[%c0_161, %c0_162, %c0_163] : memref<8x8x32xf32, #tpu.memory_space<vmem>>, vector<8x8x32xf32>
    tpu.vector_store %arg11[%c0_161, %c0_162, %c0_163], %111 {strides = array<i32>} : memref<8x8x32xf32, #tpu.memory_space<vmem>>, vector<8x8x32xf32>,
    %c0_164 = arith.constant 0 : index
    %c0_165 = arith.constant 0 : index
    %c0_166 = arith.constant 0 : index
    %113 = tpu.strided_load %arg11[%c0_164, %c0_165, %c0_166] {strides = array<i32: 1, 2, 1>} : memref<8x8x32xf32, #tpu.memory_space<vmem>>, vector<8x4x32xf32>
    %c0_167 = arith.constant 0 : index
    %c1_168 = arith.constant 1 : index
    %c0_169 = arith.constant 0 : index
    %114 = tpu.strided_load %arg11[%c0_167, %c1_168, %c0_169] {strides = array<i32: 1, 2, 1>} : memref<8x8x32xf32, #tpu.memory_space<vmem>>, vector<8x4x32xf32>
    %115 = arith.maximumf %113, %114 : vector<8x4x32xf32>
    %116 = vector.shape_cast %115 : vector<8x4x32xf32> to vector<4x2x4x32xf32>
    %117 = vector.extract_strided_slice %116 {offsets = [0, 0, 0, 0], sizes = [4, 1, 4, 32], strides = [1, 1, 1, 1]} : vector<4x2x4x32xf32> to vector<4x1x4x32xf32>
    %118 = vector.shape_cast %117 : vector<4x1x4x32xf32> to vector<4x4x32xf32>
    %119 = vector.extract_strided_slice %116 {offsets = [0, 1, 0, 0], sizes = [4, 1, 4, 32], strides = [1, 1, 1, 1]} : vector<4x2x4x32xf32> to vector<4x1x4x32xf32>
    %120 = vector.shape_cast %119 : vector<4x1x4x32xf32> to vector<4x4x32xf32>
    %121 = arith.maximumf %118, %120 : vector<4x4x32xf32>
    %c0_170 = arith.constant 0 : index
    %c0_171 = arith.constant 0 : index
    %c0_172 = arith.constant 0 : index
    %c0_173 = arith.constant 0 : index
    %122 = vector.load %arg6[%c0_170, %c0_171, %c0_172, %c0_173] : memref<1x4x4x32xf32, #tpu.memory_space<vmem>>, vector<1x4x4x32xf32>
    %123 = vector.shape_cast %122 : vector<1x4x4x32xf32> to vector<4x4x32xf32>
    %124 = vector.shape_cast %121 : vector<4x4x32xf32> to vector<1x4x4x32xf32>
    tpu.vector_store %arg6[%c0_170, %c0_171, %c0_172, %c0_173], %124 {strides = array<i32>} : memref<1x4x4x32xf32, #tpu.memory_space<vmem>>, vector<1x4x4x32xf32>,
    return
  }
  func.func @transform_0(%arg0: i32) -> (i32, i32, i32, i32) {
    %c0_i32 = arith.constant 0 : i32
    %c0_i32_0 = arith.constant 0 : i32
    %c0_i32_1 = arith.constant 0 : i32
    %c0_i32_2 = arith.constant 0 : i32
    return %arg0, %c0_i32, %c0_i32_0, %c0_i32_1 : i32, i32, i32, i32
  }
  func.func @transform_1(%arg0: i32) -> (i32, i32) {
    %c0_i32 = arith.constant 0 : i32
    %c0_i32_0 = arith.constant 0 : i32
    %c0_i32_1 = arith.constant 0 : i32
    return %c0_i32, %c0_i32_0 : i32, i32
  }
  func.func @transform_2(%arg0: i32) -> (i32, i32) {
    %c0_i32 = arith.constant 0 : i32
    %c0_i32_0 = arith.constant 0 : i32
    %c0_i32_1 = arith.constant 0 : i32
    return %c0_i32, %c0_i32_0 : i32, i32
  }
  func.func @transform_3(%arg0: i32) -> (i32, i32) {
    %c0_i32 = arith.constant 0 : i32
    %c0_i32_0 = arith.constant 0 : i32
    %c0_i32_1 = arith.constant 0 : i32
    return %c0_i32, %c0_i32_0 : i32, i32
  }
  func.func @transform_4(%arg0: i32) -> (i32, i32) {
    %c0_i32 = arith.constant 0 : i32
    %c0_i32_0 = arith.constant 0 : i32
    %c0_i32_1 = arith.constant 0 : i32
    return %c0_i32, %c0_i32_0 : i32, i32
  }
  func.func @transform_5(%arg0: i32) -> (i32, i32, i32, i32) {
    %c0_i32 = arith.constant 0 : i32
    %c0_i32_0 = arith.constant 0 : i32
    %c0_i32_1 = arith.constant 0 : i32
    %c0_i32_2 = arith.constant 0 : i32
    return %arg0, %c0_i32, %c0_i32_0, %c0_i32_1 : i32, i32, i32, i32
  }
}

</mosaic_0001>

<bundles_post_ra>
// kernel: _lambda_.1
= control target key start
LH: loop header
LB: loop body
LE: loop exit
PB: predicated region body
PF: predicated region fallthrough
CT: control target
= control target key end

     0   :  { %s3307_s18 = smov 0   ;;  %s4701_s0 = inlined_call_operand.vmem [shape: f32[2,16,16,4], index: 0, kind: input, shape index: {}]   ;;  %s4702_s1 = inlined_call_operand.vmem [shape: bf16[36,32], index: 1, kind: input, shape index: {}]   ;;  %s4703_s2 = inlined_call_operand.vmem [shape: f32[1,32], index: 2, kind: input, shape index: {}]   ;;  %s4704_s3 = inlined_call_operand.vmem [shape: bf16[288,32], index: 3, kind: input, shape index: {}]   ;;  %s4705_s4 = inlined_call_operand.vmem [shape: f32[1,32], index: 4, kind: input, shape index: {}]   ;;  %s4706_s5 = inlined_call_operand.vmem [shape: f32[2,4,4,32], index: 5, kind: output, shape index: {}]  }
   0x1 LB: > { %s2998_s19 = sadd.s32 4294967295, %s3264_s18   ;;  %p3002_p0 = scmp.ge.s32.totalorder %s3264_s18, 1  ;;  %s3264_s18 = sphi %s3307_s18, %s15_s18  }
   0x2   : > { %p187_p1 = scmp.lt.s32.totalorder %s3264_s18, 3 }
   0x4   : > { %p188_p2 = pnand %p3002_p0, %p187_p1 }
   0x5   : > { %p215_p3 = scmp.lt.s32.totalorder (!%p188_p2), %s2998_s19, 1  ;;  %s3266_s24 = smov (!%p188_p2), 4  }
   0x6   : > { %191 = sbr.rel (%p188_p2) target bundleno = 1281 (0x501), region = 40  ;;  %s3268_s25 = smov (!%p188_p2), 8  }
   0x7   : > { %s3269_s26 = smov (!%p188_p2), 12   ;;  %s3270_s27 = smov (!%p188_p2), 16  }
   0x8   : > { %s3271_s28 = smov (!%p188_p2), 20   ;;  %s3272_s29 = smov (!%p188_p2), 24  }
   0x9   : > { %s3273_s30 = smov (!%p188_p2), 28   ;;  %s3274_s6 = smov (!%p188_p2), 32  }
   0xa   : > { %s3275_s21 = smov (!%p188_p2), 64   ;;  %s3276_s22 = smov (!%p188_p2), 96  }
   0xb   : > { %s4708_s19 = smov (!%p215_p3, %s2998_s19), 1  ;;  %vm226_vm0 = vcmask 293888   ;;  %vm290_vm1 = vcmask 31744   ;;  %v3267_v30 = vmov 0.0   ;;  %vm472_vm2 = vcmask 64544  }
   0xc   : > { %s3199_s20 = sshll.u32 %s4708_s19, 8  ;;  %233 = vst.msk [vmem:[#allocation2 + $0x30] sm:$0xff] %vm226_vm0, %v3267_v30  ;;  %vm292_vm3 = vcmask 30720   ;;  %vm653_vm4 = vcmask 97344   ;;  %vm655_vm5 = vcmask 96320   ;;  %vm845_vm6 = vcmask 130144  }
   0xd   : > { %s3321_s23 = scalar_lea.vmem %s4701_s0, %s3199_s20  ;;  %234 = vst.msk [vmem:[#allocation2 + $0x38] sm:$0xff] %vm226_vm0, %v3267_v30  ;;  %vm847_vm7 = vcmask 129120   ;;  %vm1039_vm8 = vcmask 162944   ;;  %vm1232_vm9 = vcmask 195744   ;;  %vm1860_vm10 = vcmask 1041408   ;;  %s3200_s12 = sshll.u32 %s4708_s19, 4 }
   0xe   : > { %v3324_v0 = vld [vmem:[%s3321_s23 + $0x10] sm:$0xff]  ;;  %v3327_v1 = vld [vmem:[%s3321_s23] sm:$0xff]  ;;  %v3339_v3 = vld [vmem:[%s3321_s23 + $0x18] sm:$0xff]  ;;  %227 = vst.msk [vmem:[#allocation2] sm:$0xff] %vm226_vm0, %v3267_v30  ;;  %vm1234_vm11 = vcmask 194720   ;;  %vm1417_vm12 = vcmask 228544   ;;  %s4675_s15 = scalar_lea.vmem %s4706_s5, %s3200_s12 }
   0xf   : > { %386 = vrot.lane.b32.xlu1 %v3324_v0, %s3266_s24  ;;  %382 = vrot.lane.b32.xlu0 %v3327_v1, %s3266_s24  ;;  %v3334_v2 = vld [vmem:[%s3321_s23 + $0x20] sm:$0xff]  ;;  %v3342_v4 = vld [vmem:[%s3321_s23 + $0x8] sm:$0xff]  ;;  %228 = vst.msk [vmem:[#allocation2 + $0x8] sm:$0xff] %vm226_vm0, %v3267_v30  ;;  %vm1419_vm13 = vcmask 227520   ;;  %vm1599_vm14 = vcmask 261344   ;;  %vm1780_vm15 = vcmask 294144  }
  0x10   : > { %390 = vrot.lane.b32.xlu2 %v3334_v2, %s3266_s24  ;;  %v3345_v5 = vld [vmem:[%s3321_s23 + $0x28] sm:$0xff]  ;;  %v3354_v6 = vld [vmem:[%s3321_s23 + $0x38] sm:$0xff]  ;;  %v3357_v7 = vld [vmem:[%s3321_s23 + $0x30] sm:$0xff]  ;;  %296 = vst.msk [vmem:[#allocation2 + $0x31] sm:$0xff] %vm290_vm1, %v3334_v2 }
  0x11   : > { %v3360_v8 = vld [vmem:[%s3321_s23 + $0x40] sm:$0xff]  ;;  %v3369_v9 = vld [vmem:[%s3321_s23 + $0x50] sm:$0xff]  ;;  %v3372_v10 = vld [vmem:[%s3321_s23 + $0x48] sm:$0xff]  ;;  %229 = vst.msk [vmem:[#allocation2 + $0x10] sm:$0xff] %vm226_vm0, %v3267_v30 }
  0x12   : > { %v3375_v11 = vld [vmem:[%s3321_s23 + $0x58] sm:$0xff]  ;;  %v3384_v12 = vld [vmem:[%s3321_s23 + $0x68] sm:$0xff]  ;;  %v3387_v13 = vld [vmem:[%s3321_s23 + $0x60] sm:$0xff]  ;;  %230 = vst.msk [vmem:[#allocation2 + $0x18] sm:$0xff] %vm226_vm0, %v3267_v30 }
  0x13   : > { %v3390_v14 = vld [vmem:[%s3321_s23 + $0x70] sm:$0xff]  ;;  %v3399_v15 = vld [vmem:[%s3321_s23 + $0x80] sm:$0xff]  ;;  %v3402_v16 = vld [vmem:[%s3321_s23 + $0x78] sm:$0xff]  ;;  %231 = vst.msk [vmem:[#allocation2 + $0x20] sm:$0xff] %vm226_vm0, %v3267_v30 }
  0x14   : > { %v3405_v17 = vld [vmem:[%s3321_s23 + $0x88] sm:$0xff]  ;;  %v3414_v18 = vld [vmem:[%s3321_s23 + $0x98] sm:$0xff]  ;;  %v3417_v19 = vld [vmem:[%s3321_s23 + $0x90] sm:$0xff]  ;;  %232 = vst.msk [vmem:[#allocation2 + $0x28] sm:$0xff] %vm226_vm0, %v3267_v30 }
  0x15   : > { %v3420_v20 = vld [vmem:[%s3321_s23 + $0xa0] sm:$0xff]  ;;  %v3429_v21 = vld [vmem:[%s3321_s23 + $0xb0] sm:$0xff]  ;;  %v343_v22 = vld [vmem:[%s3321_s23 + $0xa8] sm:$0xff]  ;;  %235 = vst.msk [vmem:[#allocation2 + $0x40] sm:$0xff] %vm226_vm0, %v3267_v30 }
  0x16   : > { %v345_v23 = vld [vmem:[%s3321_s23 + $0xb8] sm:$0xff]  ;;  %v347_v24 = vld [vmem:[%s3321_s23 + $0xc8] sm:$0xff]  ;;  %v3439_v25 = vld [vmem:[%s3321_s23 + $0xc0] sm:$0xff]  ;;  %236 = vst.msk [vmem:[#allocation2 + $0x48] sm:$0xff] %vm226_vm0, %v3267_v30 }
  0x17   : > { %388 = vrot.lane.b32.xlu1 %v3339_v3, %s3266_s24  ;;  %384 = vrot.lane.b32.xlu0 %v3342_v4, %s3266_s24  ;;  %v3442_v26 = vld [vmem:[%s3321_s23 + $0xd0] sm:$0xff]  ;;  %v3450_v27 = vld [vmem:[%s3321_s23 + $0xe0] sm:$0xff]  ;;  %237 = vst.msk [vmem:[#allocation2 + $0x50] sm:$0xff] %vm226_vm0, %v3267_v30 }
  0x18   : > { %392 = vrot.lane.b32.xlu2 %v3345_v5, %s3266_s24  ;;  %v349_v28 = vld [vmem:[%s3321_s23 + $0xd8] sm:$0xff]  ;;  %v351_v29 = vld [vmem:[%s3321_s23 + $0xe8] sm:$0xff]  ;;  %238 = vst.msk [vmem:[#allocation2 + $0x58] sm:$0xff] %vm226_vm0, %v3267_v30 }
  0x19   : > { %v504_v31 = vld [vmem:[%s3321_s23 + $0x9] sm:$0x7f]  ;;  %v503_v32 = vld [vmem:[%s3321_s23 + $0x1] sm:$0xff]  ;;  %v505_v33 = vld [vmem:[%s3321_s23 + $0x11] sm:$0xff]  ;;  %239 = vst.msk [vmem:[#allocation2 + $0x60] sm:$0xff] %vm226_vm0, %v3267_v30 }
  0x1a   : > { %v3489_v34 = vld [vmem:[%s3321_s23 + $0x21] sm:$0xff]  ;;  %v506_v35 = vld [vmem:[%s3321_s23 + $0x19] sm:$0x7f]  ;;  %v508_v36 = vld [vmem:[%s3321_s23 + $0x29] sm:$0x7f]  ;;  %240 = vst.msk [vmem:[#allocation2 + $0x68] sm:$0xff] %vm226_vm0, %v3267_v30 }
  0x1b   : > { %241 = vst.msk [vmem:[#allocation2 + $0x70] sm:$0xff] %vm226_vm0, %v3267_v30  ;;  %v510_v38 = vld [vmem:[%s3321_s23 + $0x39] sm:$0x7f]  ;;  %v3515_v39 = vld [vmem:[%s3321_s23 + $0x31] sm:$0xff]  ;;  %v3523_v40 = vld [vmem:[%s3321_s23 + $0x41] sm:$0xff] }
  0x1c   : > { %242 = vst.msk [vmem:[#allocation2 + $0x78] sm:$0xff] %vm226_vm0, %v3267_v30  ;;  %v3541_v42 = vld [vmem:[%s3321_s23 + $0x51] sm:$0xff]  ;;  %v512_v43 = vld [vmem:[%s3321_s23 + $0x49] sm:$0x7f]  ;;  %v514_v44 = vld [vmem:[%s3321_s23 + $0x59] sm:$0x7f] }
  0x1d   : > { %243 = vst.msk [vmem:[#allocation2 + $0x80] sm:$0xff] %vm226_vm0, %v3267_v30  ;;  %v516_v46 = vld [vmem:[%s3321_s23 + $0x69] sm:$0x7f]  ;;  %v515_v47 = vld [vmem:[%s3321_s23 + $0x61] sm:$0xff]  ;;  %v517_v48 = vld [vmem:[%s3321_s23 + $0x71] sm:$0xff] }
  0x1e   : > { %244 = vst.msk [vmem:[#allocation2 + $0x88] sm:$0xff] %vm226_vm0, %v3267_v30  ;;  %v519_v52 = vld [vmem:[%s3321_s23 + $0x81] sm:$0xff]  ;;  %v518_v53 = vld [vmem:[%s3321_s23 + $0x79] sm:$0x7f]  ;;  %v520_v54 = vld [vmem:[%s3321_s23 + $0x89] sm:$0x7f] }
  0x1f   : > { %396 = vrot.lane.b32.xlu1 %v3354_v6, %s3266_s24  ;;  %394 = vrot.lane.b32.xlu0 %v3357_v7, %s3266_s24  ;;  %245 = vst.msk [vmem:[#allocation2 + $0x90] sm:$0xff] %vm226_vm0, %v3267_v30  ;;  %v264_v57 = vld [vmem:[%s3321_s23 + $0x28] sm:$0x7f]  ;;  %v522_v59 = vld [vmem:[%s3321_s23 + $0x99] sm:$0x7f] }
  0x20   : > { %398 = vrot.lane.b32.xlu2 %v3360_v8, %s3266_s24  ;;  %246 = vst.msk [vmem:[#allocation2 + $0x98] sm:$0xff] %vm226_vm0, %v3267_v30  ;;  %v521_v60 = vld [vmem:[%s3321_s23 + $0x91] sm:$0xff]  ;;  %v523_v62 = vld [vmem:[%s3321_s23 + $0xa1] sm:$0xff] }
  0x21   : > { %247 = vst.msk [vmem:[#allocation2 + $0xa0] sm:$0xff] %vm226_vm0, %v3267_v30  ;;  %v262_v61 = vld [vmem:[%s3321_s23 + $0x18] sm:$0x7f]  ;;  %v260_v63 = vld [vmem:[%s3321_s23 + $0x8] sm:$0x7f] }
  0x22   : > { %248 = vst.msk [vmem:[#allocation2 + $0xa8] sm:$0xff] %vm226_vm0, %v3267_v30 }
  0x23   : > { %249 = vst.msk [vmem:[#allocation2 + $0xb0] sm:$0xff] %vm226_vm0, %v3267_v30 }
  0x24   : > { %250 = vst.msk [vmem:[#allocation2 + $0xb8] sm:$0xff] %vm226_vm0, %v3267_v30 }
  0x25   : > { %251 = vst.msk [vmem:[#allocation2 + $0xc0] sm:$0xff] %vm226_vm0, %v3267_v30 }
  0x26   : > { %252 = vst.msk [vmem:[#allocation2 + $0xc8] sm:$0xff] %vm226_vm0, %v3267_v30 }
  0x27   : > { %402 = vrot.lane.b32.xlu1 %v3369_v9, %s3266_s24  ;;  %400 = vrot.lane.b32.xlu0 %v3372_v10, %s3266_s24  ;;  %253 = vst.msk [vmem:[#allocation2 + $0xd0] sm:$0xff] %vm226_vm0, %v3267_v30 }
  0x28   : > { %404 = vrot.lane.b32.xlu2 %v3375_v11, %s3266_s24  ;;  %254 = vst.msk [vmem:[#allocation2 + $0xd8] sm:$0xff] %vm226_vm0, %v3267_v30 }
  0x29   : > { %255 = vst.msk [vmem:[#allocation2 + $0xe0] sm:$0xff] %vm226_vm0, %v3267_v30 }
  0x2a   : > { %256 = vst.msk [vmem:[#allocation2 + $0xe8] sm:$0xff] %vm226_vm0, %v3267_v30 }
  0x2b   : > { %257 = vst.msk [vmem:[#allocation2 + $0xf0] sm:$0xff] %vm226_vm0, %v3267_v30 }
  0x2c   : > { %258 = vst.msk [vmem:[#allocation2 + $0xf8] sm:$0xff] %vm226_vm0, %v3267_v30 }
  0x2d   : > { %2218 = vst [vmem:[#allocation5] sm:$0xff] %v3267_v30 }
  0x2e   : > { %2219 = vst [vmem:[#allocation5 + $0x8] sm:$0xff] %v3267_v30 }
  0x2f   : > { %408 = vrot.lane.b32.xlu1 %v3384_v12, %s3266_s24  ;;  %406 = vrot.lane.b32.xlu0 %v3387_v13, %s3266_s24  ;;  %2221 = vst [vmem:[#allocation5 + $0x18] sm:$0xff] %v3267_v30 }
  0x30   : > { %410 = vrot.lane.b32.xlu2 %v3390_v14, %s3266_s24  ;;  %2222 = vst [vmem:[#allocation5 + $0x20] sm:$0xff] %v3267_v30 }
  0x31   : > { %2224 = vst [vmem:[#allocation5 + $0x30] sm:$0xff] %v3267_v30 }
  0x32   : > { %2225 = vst [vmem:[#allocation5 + $0x38] sm:$0xff] %v3267_v30 }
  0x33   : > { %2227 = vst [vmem:[#allocation5 + $0x48] sm:$0xff] %v3267_v30 }
  0x34   : > { %2228 = vst [vmem:[#allocation5 + $0x50] sm:$0xff] %v3267_v30 }
  0x35   : > { %2230 = vst [vmem:[#allocation5 + $0x60] sm:$0xff] %v3267_v30 }
  0x36   : > { %2231 = vst [vmem:[#allocation5 + $0x68] sm:$0xff] %v3267_v30 }
  0x37   : > { %414 = vrot.lane.b32.xlu1 %v3399_v15, %s3266_s24  ;;  %412 = vrot.lane.b32.xlu0 %v3402_v16, %s3266_s24  ;;  %2233 = vst [vmem:[#allocation5 + $0x78] sm:$0xff] %v3267_v30 }
  0x38   : > { %416 = vrot.lane.b32.xlu2 %v3405_v17, %s3266_s24  ;;  %2234 = vst [vmem:[#allocation5 + $0x80] sm:$0xff] %v3267_v30 }
  0x39   : > { %2236 = vst [vmem:[#allocation5 + $0x90] sm:$0xff] %v3267_v30 }
  0x3a   : > { %2237 = vst [vmem:[#allocation5 + $0x98] sm:$0xff] %v3267_v30 }
  0x3b   : > { %2239 = vst [vmem:[#allocation5 + $0xa8] sm:$0xff] %v3267_v30 }
  0x3c   : > { %2240 = vst [vmem:[#allocation5 + $0xb0] sm:$0xff] %v3267_v30  ;;  %v524_v30 = vld [vmem:[%s3321_s23 + $0xa9] sm:$0x7f] }
  0x3d   : > { %294 = vst.msk [vmem:[#allocation2 + $0x21] sm:$0xff] %vm290_vm1, %v3324_v0 }
  0x3e   : > { %291 = vst.msk [vmem:[#allocation2 + $0x11] sm:$0xff] %vm290_vm1, %v3327_v1 }
  0x3f   : > { %420 = vrot.lane.b32.xlu1 %v3414_v18, %s3266_s24  ;;  %418 = vrot.lane.b32.xlu0 %v3417_v19, %s3266_s24  ;;  %297 = vst.msk [vmem:[#allocation2 + $0x39] sm:$0x7f] %vm292_vm3, %v264_v57  ;;  %v278_v57 = vld [vmem:[%s3321_s23 + $0x98] sm:$0x7f] }
  0x40   : > { %422 = vrot.lane.b32.xlu2 %v3420_v20, %s3266_s24  ;;  %295 = vst.msk [vmem:[#allocation2 + $0x29] sm:$0x7f] %vm292_vm3, %v262_v61  ;;  %v280_v61 = vld [vmem:[%s3321_s23 + $0xa8] sm:$0x7f] }
  0x41   : > { %293 = vst.msk [vmem:[#allocation2 + $0x19] sm:$0x7f] %vm292_vm3, %v260_v63  ;;  %v688_v63 = vld [vmem:[%s3321_s23 + $0x18] sm:$0x7f] }
  0x42   : > { %300 = vst.msk [vmem:[#allocation2 + $0x51] sm:$0xff] %vm290_vm1, %v3360_v8 }
  0x43   : > { %298 = vst.msk [vmem:[#allocation2 + $0x41] sm:$0xff] %vm290_vm1, %v3357_v7 }
  0x44   : > { %302 = vst.msk [vmem:[#allocation2 + $0x61] sm:$0xff] %vm290_vm1, %v3369_v9 }
  0x45   : > { %306 = vst.msk [vmem:[#allocation2 + $0x81] sm:$0xff] %vm290_vm1, %v3390_v14 }
  0x46   : > { %304 = vst.msk [vmem:[#allocation2 + $0x71] sm:$0xff] %vm290_vm1, %v3387_v13 }
  0x47   : > { %426 = vrot.lane.b32.xlu1 %v3429_v21, %s3266_s24  ;;  %424 = vrot.lane.b32.xlu0 %v343_v22, %s3266_s24  ;;  %308 = vst.msk [vmem:[#allocation2 + $0x91] sm:$0xff] %vm290_vm1, %v3399_v15 }
  0x48   : > { %428 = vrot.lane.b32.xlu2 %v345_v23, %s3266_s24  ;;  %312 = vst.msk [vmem:[#allocation2 + $0xb1] sm:$0xff] %vm290_vm1, %v3420_v20 }
  0x49   : > { %310 = vst.msk [vmem:[#allocation2 + $0xa1] sm:$0xff] %vm290_vm1, %v3417_v19 }
  0x4a   : > { %311 = vst.msk [vmem:[#allocation2 + $0xa9] sm:$0x7f] %vm292_vm3, %v278_v57 }
  0x4b   : > { %314 = vst.msk [vmem:[#allocation2 + $0xc1] sm:$0xff] %vm290_vm1, %v3429_v21 }
  0x4c   : > { %313 = vst.msk [vmem:[#allocation2 + $0xb9] sm:$0x7f] %vm292_vm3, %v280_v61  ;;  %v708_v61 = vld [vmem:[%s3321_s23 + $0xb8] sm:$0x7f] }
  0x4d   : > { %318 = vst.msk [vmem:[#allocation2 + $0xe1] sm:$0xff] %vm290_vm1, %v3442_v26 }
  0x4e   : > { %316 = vst.msk [vmem:[#allocation2 + $0xd1] sm:$0xff] %vm290_vm1, %v3439_v25 }
  0x4f   : > { %432 = vrot.lane.b32.xlu1 %v347_v24, %s3266_s24  ;;  %430 = vrot.lane.b32.xlu0 %v3439_v25, %s3266_s24  ;;  %320 = vst.msk [vmem:[#allocation2 + $0xf1] sm:$0xff] %vm290_vm1, %v3450_v27  ;;  %vm1782_vm1 = vcmask 293120  }
  0x50   : > { %434 = vrot.lane.b32.xlu2 %v3442_v26, %s3266_s24 }
  0x57   : > { %438 = vrot.lane.b32.xlu1 %v3450_v27, %s3266_s24  ;;  %436 = vrot.lane.b32.xlu0 %v349_v28, %s3266_s24  ;;  %v266_v28 = vld [vmem:[%s3321_s23 + $0x38] sm:$0x7f] }
  0x58   : > { %440 = vrot.lane.b32.xlu2 %v351_v29, %s3266_s24  ;;  %v3614_v29 = vld [vmem:[%s3321_s23 + $0xb1] sm:$0xff]  ;;  %299 = vst.msk [vmem:[#allocation2 + $0x49] sm:$0x7f] %vm292_vm3, %v266_v28 }
  0x5f   : > { %565 = vrot.lane.b32.xlu1 %v504_v31, %s3268_s25  ;;  %563 = vrot.lane.b32.xlu0 %v503_v32, %s3268_s25  ;;  %v526_v31 = vld [vmem:[%s3321_s23 + $0xb9] sm:$0x7f] }
  0x60   : > { %567 = vrot.lane.b32.xlu2 %v505_v33, %s3268_s25  ;;  %v270_v32 = vld [vmem:[%s3321_s23 + $0x58] sm:$0x7f] }
  0x61   : > { %303 = vst.msk [vmem:[#allocation2 + $0x69] sm:$0x7f] %vm292_vm3, %v270_v32  ;;  %v692_v32 = vld [vmem:[%s3321_s23 + $0x38] sm:$0x7f] }
  0x67   : > { %571 = vrot.lane.b32.xlu1 %v3489_v34, %s3268_s25  ;;  %569 = vrot.lane.b32.xlu0 %v506_v35, %s3268_s25 }
  0x68   : > { %573 = vrot.lane.b32.xlu2 %v508_v36, %s3268_s25  ;;  %v268_v36 = vld [vmem:[%s3321_s23 + $0x48] sm:$0x7f] }
  0x69   : > { %301 = vst.msk [vmem:[#allocation2 + $0x59] sm:$0x7f] %vm292_vm3, %v268_v36 }
  0x6a   : > { %v391_v37 = vpop.permute.xlu2 %390 }
  0x6b   : > { %477 = vst.msk [vmem:[#allocation2 + $0x30] sm:$0xff] %vm472_vm2, %v391_v37 }
  0x6f   : > { %577 = vrot.lane.b32.xlu1 %v510_v38, %s3268_s25  ;;  %575 = vrot.lane.b32.xlu0 %v3515_v39, %s3268_s25  ;;  %v528_v38 = vld [vmem:[%s3321_s23 + $0xc9] sm:$0x7f] }
  0x70   : > { %579 = vrot.lane.b32.xlu2 %v3523_v40, %s3268_s25 }
  0x72   : > { %v393_v41 = vpop.permute.xlu2 %392 }
  0x73   : > { %478 = vst.msk [vmem:[#allocation2 + $0x38] sm:$0xff] %vm472_vm2, %v393_v41  ;;  %v3636_v41 = vld [vmem:[%s3321_s23 + $0xc1] sm:$0xff] }
  0x77   : > { %583 = vrot.lane.b32.xlu1 %v3541_v42, %s3268_s25  ;;  %581 = vrot.lane.b32.xlu0 %v512_v43, %s3268_s25  ;;  %v529_v43 = vld [vmem:[%s3321_s23 + $0xd1] sm:$0xff] }
  0x78   : > { %585 = vrot.lane.b32.xlu2 %v514_v44, %s3268_s25  ;;  %v272_v44 = vld [vmem:[%s3321_s23 + $0x68] sm:$0x7f] }
  0x79   : > { %305 = vst.msk [vmem:[#allocation2 + $0x79] sm:$0x7f] %vm292_vm3, %v272_v44 }
  0x7a   : > { %v399_v45 = vpop.permute.xlu2 %398 }
  0x7b   : > { %481 = vst.msk [vmem:[#allocation2 + $0x50] sm:$0xff] %vm472_vm2, %v399_v45 }
  0x7f   : > { %589 = vrot.lane.b32.xlu1 %v516_v46, %s3268_s25  ;;  %587 = vrot.lane.b32.xlu0 %v515_v47, %s3268_s25 }
  0x80   : > { %591 = vrot.lane.b32.xlu2 %v517_v48, %s3268_s25  ;;  %v276_v48 = vld [vmem:[%s3321_s23 + $0x88] sm:$0x7f] }
  0x81   : > { %v387_v49 = vpop.permute.xlu1 %386  ;;  %v383_v50 = vpop.permute.xlu0 %382  ;;  %309 = vst.msk [vmem:[#allocation2 + $0x99] sm:$0x7f] %vm292_vm3, %v276_v48 }
  0x82   : > { %v405_v51 = vpop.permute.xlu2 %404  ;;  %475 = vst.msk [vmem:[#allocation2 + $0x20] sm:$0xff] %vm472_vm2, %v387_v49  ;;  %v531_v49 = vld [vmem:[%s3321_s23 + $0xe1] sm:$0xff] }
  0x83   : > { %473 = vst.msk [vmem:[#allocation2 + $0x10] sm:$0xff] %vm472_vm2, %v383_v50  ;;  %v530_v50 = vld [vmem:[%s3321_s23 + $0xd9] sm:$0x7f] }
  0x84   : > { %484 = vst.msk [vmem:[#allocation2 + $0x68] sm:$0xff] %vm472_vm2, %v405_v51  ;;  %v274_v51 = vld [vmem:[%s3321_s23 + $0x78] sm:$0x7f] }
  0x85   : > { %307 = vst.msk [vmem:[#allocation2 + $0x89] sm:$0x7f] %vm292_vm3, %v274_v51  ;;  %v700_v51 = vld [vmem:[%s3321_s23 + $0x78] sm:$0x7f] }
  0x87   : > { %595 = vrot.lane.b32.xlu1 %v519_v52, %s3268_s25  ;;  %593 = vrot.lane.b32.xlu0 %v518_v53, %s3268_s25  ;;  %v532_v52 = vld [vmem:[%s3321_s23 + $0xe9] sm:$0x7f] }
  0x88   : > { %597 = vrot.lane.b32.xlu2 %v520_v54, %s3268_s25 }
  0x89   : > { %v389_v55 = vpop.permute.xlu1 %388  ;;  %v385_v56 = vpop.permute.xlu0 %384 }
  0x8a   : > { %v411_v58 = vpop.permute.xlu2 %410  ;;  %476 = vst.msk [vmem:[#allocation2 + $0x28] sm:$0xff] %vm472_vm2, %v389_v55 }
  0x8b   : > { %474 = vst.msk [vmem:[#allocation2 + $0x18] sm:$0xff] %vm472_vm2, %v385_v56  ;;  %v686_v56 = vld [vmem:[%s3321_s23 + $0x8] sm:$0x7f] }
  0x8c   : > { %487 = vst.msk [vmem:[#allocation2 + $0x80] sm:$0xff] %vm472_vm2, %v411_v58  ;;  %v282_v58 = vld [vmem:[%s3321_s23 + $0xb8] sm:$0x7f] }
  0x8d   : > { %315 = vst.msk [vmem:[#allocation2 + $0xc9] sm:$0x7f] %vm292_vm3, %v282_v58 }
  0x8f   : > { %601 = vrot.lane.b32.xlu1 %v522_v59, %s3268_s25  ;;  %599 = vrot.lane.b32.xlu0 %v521_v60, %s3268_s25 }
  0x90   : > { %603 = vrot.lane.b32.xlu2 %v523_v62, %s3268_s25 }
  0x91   : > { %v397_v22 = vpop.permute.xlu1 %396  ;;  %v395_v23 = vpop.permute.xlu0 %394 }
  0x92   : > { %v417_v24 = vpop.permute.xlu2 %416  ;;  %480 = vst.msk [vmem:[#allocation2 + $0x48] sm:$0xff] %vm472_vm2, %v397_v22  ;;  %v284_v22 = vld [vmem:[%s3321_s23 + $0xc8] sm:$0x7f] }
  0x93   : > { %479 = vst.msk [vmem:[#allocation2 + $0x40] sm:$0xff] %vm472_vm2, %v395_v23  ;;  %v690_v23 = vld [vmem:[%s3321_s23 + $0x28] sm:$0x7f] }
  0x94   : > { %490 = vst.msk [vmem:[#allocation2 + $0x98] sm:$0xff] %vm472_vm2, %v417_v24 }
  0x95   : > { %317 = vst.msk [vmem:[#allocation2 + $0xd9] sm:$0x7f] %vm292_vm3, %v284_v22 }
  0x97   : > { %607 = vrot.lane.b32.xlu1 %v3614_v29, %s3268_s25  ;;  %605 = vrot.lane.b32.xlu0 %v524_v30, %s3268_s25  ;;  %v288_v30 = vld [vmem:[%s3321_s23 + $0xe8] sm:$0x7f] }
  0x98   : > { %609 = vrot.lane.b32.xlu2 %v526_v31, %s3268_s25  ;;  %321 = vst.msk [vmem:[#allocation2 + $0xf9] sm:$0x7f] %vm292_vm3, %v288_v30  ;;  %v712_v30 = vld [vmem:[%s3321_s23 + $0xd8] sm:$0x7f] }
  0x99   : > { %v403_v33 = vpop.permute.xlu1 %402  ;;  %v401_v35 = vpop.permute.xlu0 %400 }
  0x9a   : > { %v423_v37 = vpop.permute.xlu2 %422  ;;  %483 = vst.msk [vmem:[#allocation2 + $0x60] sm:$0xff] %vm472_vm2, %v403_v33  ;;  %v286_v33 = vld [vmem:[%s3321_s23 + $0xd8] sm:$0x7f] }
  0x9b   : > { %482 = vst.msk [vmem:[#allocation2 + $0x58] sm:$0xff] %vm472_vm2, %v401_v35 }
  0x9c   : > { %493 = vst.msk [vmem:[#allocation2 + $0xb0] sm:$0xff] %vm472_vm2, %v423_v37 }
  0x9d   : > { %319 = vst.msk [vmem:[#allocation2 + $0xe9] sm:$0x7f] %vm292_vm3, %v286_v33  ;;  %v716_v33 = vld [vmem:[%s3321_s23 + $0xf8] sm:$0x7f]  ;;  %vm2588_vm3 = vcmask 260096  }
  0x9f   : > { %613 = vrot.lane.b32.xlu1 %v528_v38, %s3268_s25  ;;  %611 = vrot.lane.b32.xlu0 %v3636_v41, %s3268_s25  ;;  %v694_v38 = vld [vmem:[%s3321_s23 + $0x48] sm:$0x7f] }
  0xa0   : > { %615 = vrot.lane.b32.xlu2 %v529_v43, %s3268_s25  ;;  %v696_v43 = vld [vmem:[%s3321_s23 + $0x58] sm:$0x7f] }
  0xa1   : > { %v409_v45 = vpop.permute.xlu1 %408  ;;  %v407_v46 = vpop.permute.xlu0 %406 }
  0xa2   : > { %v429_v47 = vpop.permute.xlu2 %428  ;;  %486 = vst.msk [vmem:[#allocation2 + $0x78] sm:$0xff] %vm472_vm2, %v409_v45 }
  0xa3   : > { %485 = vst.msk [vmem:[#allocation2 + $0x70] sm:$0xff] %vm472_vm2, %v407_v46 }
  0xa4   : > { %496 = vst.msk [vmem:[#allocation2 + $0xc8] sm:$0xff] %vm472_vm2, %v429_v47  ;;  %v698_v47 = vld [vmem:[%s3321_s23 + $0x68] sm:$0x7f] }
  0xa7   : > { %619 = vrot.lane.b32.xlu1 %v531_v49, %s3268_s25  ;;  %617 = vrot.lane.b32.xlu0 %v530_v50, %s3268_s25 }
  0xa8   : > { %621 = vrot.lane.b32.xlu2 %v532_v52, %s3268_s25  ;;  %v702_v52 = vld [vmem:[%s3321_s23 + $0x88] sm:$0x7f] }
  0xa9   : > { %v415_v53 = vpop.permute.xlu1 %414  ;;  %v413_v54 = vpop.permute.xlu0 %412 }
  0xaa   : > { %489 = vst.msk [vmem:[#allocation2 + $0x90] sm:$0xff] %vm472_vm2, %v415_v53  ;;  %v435_v55 = vpop.permute.xlu2 %434 }
  0xab   : > { %488 = vst.msk [vmem:[#allocation2 + $0x88] sm:$0xff] %vm472_vm2, %v413_v54 }
  0xac   : > { %499 = vst.msk [vmem:[#allocation2 + $0xe0] sm:$0xff] %vm472_vm2, %v435_v55 }
  0xaf   : > { %751 = vrot.lane.b32.xlu1 %v686_v56, %s3269_s26  ;;  %749 = vrot.lane.b32.xlu0 %v3327_v1, %s3269_s26  ;;  %v704_v56 = vld [vmem:[%s3321_s23 + $0x98] sm:$0x7f] }
  0xb0   : > { %753 = vrot.lane.b32.xlu2 %v3324_v0, %s3269_s26 }
  0xb1   : > { %v421_v59 = vpop.permute.xlu1 %420  ;;  %v419_v60 = vpop.permute.xlu0 %418 }
  0xb2   : > { %492 = vst.msk [vmem:[#allocation2 + $0xa8] sm:$0xff] %vm472_vm2, %v421_v59  ;;  %v441_v62 = vpop.permute.xlu2 %440 }
  0xb3   : > { %491 = vst.msk [vmem:[#allocation2 + $0xa0] sm:$0xff] %vm472_vm2, %v419_v60  ;;  %v706_v60 = vld [vmem:[%s3321_s23 + $0xa8] sm:$0x7f] }
  0xb4   : > { %502 = vst.msk [vmem:[#allocation2 + $0xf8] sm:$0xff] %vm472_vm2, %v441_v62 }
  0xb7   : > { %757 = vrot.lane.b32.xlu1 %v3334_v2, %s3269_s26  ;;  %755 = vrot.lane.b32.xlu0 %v688_v63, %s3269_s26 }
  0xb8   : > { %759 = vrot.lane.b32.xlu2 %v690_v23, %s3269_s26  ;;  %v710_v23 = vld [vmem:[%s3321_s23 + $0xc8] sm:$0x7f] }
  0xb9   : > { %v427_v24 = vpop.permute.xlu1 %426  ;;  %v425_v28 = vpop.permute.xlu0 %424 }
  0xba   : > { %495 = vst.msk [vmem:[#allocation2 + $0xc0] sm:$0xff] %vm472_vm2, %v427_v24  ;;  %v568_v31 = vpop.permute.xlu2 %567 }
  0xbb   : > { %494 = vst.msk [vmem:[#allocation2 + $0xb8] sm:$0xff] %vm472_vm2, %v425_v28 }
  0xbc   : > { %657 = vst.msk [vmem:[#allocation2 + $0x20] sm:$0xff] %vm653_vm4, %v568_v31  ;;  %v714_v31 = vld [vmem:[%s3321_s23 + $0xe8] sm:$0x7f] }
  0xbf   : > { %763 = vrot.lane.b32.xlu1 %v692_v32, %s3269_s26  ;;  %761 = vrot.lane.b32.xlu0 %v3357_v7, %s3269_s26 }
  0xc0   : > { %765 = vrot.lane.b32.xlu2 %v3360_v8, %s3269_s26 }
  0xc1   : > { %v433_v35 = vpop.permute.xlu1 %432  ;;  %v431_v36 = vpop.permute.xlu0 %430 }
  0xc2   : > { %498 = vst.msk [vmem:[#allocation2 + $0xd8] sm:$0xff] %vm472_vm2, %v433_v35  ;;  %v574_v37 = vpop.permute.xlu2 %573  ;;  %v715_v35 = vld [vmem:[%s3321_s23 + $0xf0] sm:$0xff] }
  0xc3   : > { %497 = vst.msk [vmem:[#allocation2 + $0xd0] sm:$0xff] %vm472_vm2, %v431_v36 }
  0xc4   : > { %660 = vst.msk [vmem:[#allocation2 + $0x38] sm:$0x7f] %vm655_vm5, %v574_v37 }
  0xc7   : > { %769 = vrot.lane.b32.xlu1 %v3369_v9, %s3269_s26  ;;  %767 = vrot.lane.b32.xlu0 %v694_v38, %s3269_s26 }
  0xc8   : > { %771 = vrot.lane.b32.xlu2 %v696_v43, %s3269_s26 }
  0xc9   : > { %v439_v44 = vpop.permute.xlu1 %438  ;;  %v437_v45 = vpop.permute.xlu0 %436 }
  0xca   : > { %501 = vst.msk [vmem:[#allocation2 + $0xf0] sm:$0xff] %vm472_vm2, %v439_v44  ;;  %v580_v46 = vpop.permute.xlu2 %579 }
  0xcb   : > { %500 = vst.msk [vmem:[#allocation2 + $0xe8] sm:$0xff] %vm472_vm2, %v437_v45  ;;  %vm1901_vm2 = vcmask 261120  }
  0xcc   : > { %663 = vst.msk [vmem:[#allocation2 + $0x50] sm:$0xff] %vm653_vm4, %v580_v46 }
  0xcf   : > { %775 = vrot.lane.b32.xlu1 %v698_v47, %s3269_s26  ;;  %773 = vrot.lane.b32.xlu0 %v3387_v13, %s3269_s26  ;;  %v1077_v47 = vld [vmem:[%s3321_s23 + $0x29] sm:$0x7f] }
  0xd0   : > { %777 = vrot.lane.b32.xlu2 %v3390_v14, %s3269_s26 }
  0xd1   : > { %v566_v48 = vpop.permute.xlu1 %565  ;;  %v564_v49 = vpop.permute.xlu0 %563 }
  0xd2   : > { %656 = vst.msk [vmem:[#allocation2 + $0x18] sm:$0x7f] %vm655_vm5, %v566_v48  ;;  %v586_v50 = vpop.permute.xlu2 %585  ;;  %v3012_v48 = vld [vmem:[%s3321_s23 + $0x38] sm:$0x7f] }
  0xd3   : > { %654 = vst.msk [vmem:[#allocation2 + $0x10] sm:$0xff] %vm653_vm4, %v564_v49 }
  0xd4   : > { %666 = vst.msk [vmem:[#allocation2 + $0x68] sm:$0x7f] %vm655_vm5, %v586_v50 }
  0xd7   : > { %781 = vrot.lane.b32.xlu1 %v3399_v15, %s3269_s26  ;;  %779 = vrot.lane.b32.xlu0 %v700_v51, %s3269_s26 }
  0xd8   : > { %783 = vrot.lane.b32.xlu2 %v702_v52, %s3269_s26  ;;  %v3072_v52 = vld [vmem:[%s3321_s23 + $0x39] sm:$0x7f] }
  0xd9   : > { %v572_v53 = vpop.permute.xlu1 %571  ;;  %v570_v54 = vpop.permute.xlu0 %569 }
  0xda   : > { %659 = vst.msk [vmem:[#allocation2 + $0x30] sm:$0xff] %vm653_vm4, %v572_v53  ;;  %v592_v55 = vpop.permute.xlu2 %591 }
  0xdb   : > { %658 = vst.msk [vmem:[#allocation2 + $0x28] sm:$0x7f] %vm655_vm5, %v570_v54 }
  0xdc   : > { %669 = vst.msk [vmem:[#allocation2 + $0x80] sm:$0xff] %vm653_vm4, %v592_v55  ;;  %v3014_v55 = vld [vmem:[%s3321_s23 + $0x48] sm:$0x7f] }
  0xdf   : > { %787 = vrot.lane.b32.xlu1 %v704_v56, %s3269_s26  ;;  %785 = vrot.lane.b32.xlu0 %v3417_v19, %s3269_s26  ;;  %v3043_v56 = vld [vmem:[%s3321_s23 + $0x40] sm:$0xff] }
  0xe0   : > { %789 = vrot.lane.b32.xlu2 %v3420_v20, %s3269_s26 }
  0xe1   : > { %v578_v57 = vpop.permute.xlu1 %577  ;;  %v576_v58 = vpop.permute.xlu0 %575 }
  0xe2   : > { %662 = vst.msk [vmem:[#allocation2 + $0x48] sm:$0x7f] %vm655_vm5, %v578_v57  ;;  %v598_v59 = vpop.permute.xlu2 %597 }
  0xe3   : > { %661 = vst.msk [vmem:[#allocation2 + $0x40] sm:$0xff] %vm653_vm4, %v576_v58 }
  0xe4   : > { %672 = vst.msk [vmem:[#allocation2 + $0x98] sm:$0x7f] %vm655_vm5, %v598_v59  ;;  %v3044_v59 = vld [vmem:[%s3321_s23 + $0x48] sm:$0xff] }
  0xe7   : > { %793 = vrot.lane.b32.xlu1 %v3429_v21, %s3269_s26  ;;  %791 = vrot.lane.b32.xlu0 %v706_v60, %s3269_s26  ;;  %v3074_v60 = vld [vmem:[%s3321_s23 + $0x49] sm:$0x7f] }
  0xe8   : > { %795 = vrot.lane.b32.xlu2 %v708_v61, %s3269_s26 }
  0xe9   : > { %v584_v62 = vpop.permute.xlu1 %583  ;;  %v582_v63 = vpop.permute.xlu0 %581 }
  0xea   : > { %665 = vst.msk [vmem:[#allocation2 + $0x60] sm:$0xff] %vm653_vm4, %v584_v62  ;;  %v604_v22 = vpop.permute.xlu2 %603 }
  0xeb   : > { %664 = vst.msk [vmem:[#allocation2 + $0x58] sm:$0x7f] %vm655_vm5, %v582_v63  ;;  %v1081_v63 = vld [vmem:[%s3321_s23 + $0x49] sm:$0x7f] }
  0xec   : > { %675 = vst.msk [vmem:[#allocation2 + $0xb0] sm:$0xff] %vm653_vm4, %v604_v22  ;;  %v3045_v22 = vld [vmem:[%s3321_s23 + $0x50] sm:$0xff] }
  0xef   : > { %799 = vrot.lane.b32.xlu1 %v710_v23, %s3269_s26  ;;  %797 = vrot.lane.b32.xlu0 %v3439_v25, %s3269_s26 }
  0xf0   : > { %801 = vrot.lane.b32.xlu2 %v3442_v26, %s3269_s26 }
  0xf1   : > { %v590_v21 = vpop.permute.xlu1 %589  ;;  %v588_v24 = vpop.permute.xlu0 %587 }
  0xf2   : > { %668 = vst.msk [vmem:[#allocation2 + $0x78] sm:$0x7f] %vm655_vm5, %v590_v21  ;;  %v610_v28 = vpop.permute.xlu2 %609 }
  0xf3   : > { %667 = vst.msk [vmem:[#allocation2 + $0x70] sm:$0xff] %vm653_vm4, %v588_v24 }
  0xf4   : > { %678 = vst.msk [vmem:[#allocation2 + $0xc8] sm:$0x7f] %vm655_vm5, %v610_v28  ;;  %v3016_v28 = vld [vmem:[%s3321_s23 + $0x58] sm:$0x7f] }
  0xf7   : > { %805 = vrot.lane.b32.xlu1 %v3450_v27, %s3269_s26  ;;  %803 = vrot.lane.b32.xlu0 %v712_v30, %s3269_s26  ;;  %v3046_v30 = vld [vmem:[%s3321_s23 + $0x58] sm:$0xff] }
  0xf8   : > { %807 = vrot.lane.b32.xlu2 %v714_v31, %s3269_s26 }
  0xf9   : > { %v596_v25 = vpop.permute.xlu1 %595  ;;  %v594_v32 = vpop.permute.xlu0 %593 }
  0xfa   : > { %671 = vst.msk [vmem:[#allocation2 + $0x90] sm:$0xff] %vm653_vm4, %v596_v25  ;;  %v616_v26 = vpop.permute.xlu2 %615 }
  0xfb   : > { %670 = vst.msk [vmem:[#allocation2 + $0x88] sm:$0x7f] %vm655_vm5, %v594_v32  ;;  %v3076_v32 = vld [vmem:[%s3321_s23 + $0x59] sm:$0x7f] }
  0xfc   : > { %681 = vst.msk [vmem:[#allocation2 + $0xe0] sm:$0xff] %vm653_vm4, %v616_v26  ;;  %v3923_v26 = vld [vmem:[%s3321_s23 + $0xb0] sm:$0xff] }
  0xff   : > { %811 = vrot.lane.b32.xlu1 %v716_v33, %s3269_s26  ;;  %809 = vrot.lane.b32.xlu0 %v715_v35, %s3269_s26 }
 0x100   : > { %943 = vrot.lane.b32.xlu2 %v3327_v1, %s3270_s27 }
 0x101   : > { %v602_v27 = vpop.permute.xlu1 %601  ;;  %v600_v36 = vpop.permute.xlu0 %599 }
 0x102   : > { %674 = vst.msk [vmem:[#allocation2 + $0xa8] sm:$0x7f] %vm655_vm5, %v602_v27  ;;  %v622_v37 = vpop.permute.xlu2 %621 }
 0x103   : > { %673 = vst.msk [vmem:[#allocation2 + $0xa0] sm:$0xff] %vm653_vm4, %v600_v36  ;;  %v3933_v36 = vld [vmem:[%s3321_s23 + $0xb8] sm:$0xff] }
 0x104   : > { %684 = vst.msk [vmem:[#allocation2 + $0xf8] sm:$0x7f] %vm655_vm5, %v622_v37  ;;  %v1095_v37 = vld [vmem:[%s3321_s23 + $0xb9] sm:$0x7f] }
 0x107   : > { %947 = vrot.lane.b32.xlu1 %v3324_v0, %s3270_s27  ;;  %945 = vrot.lane.b32.xlu0 %v3342_v4, %s3270_s27 }
 0x108   : > { %949 = vrot.lane.b32.xlu2 %v3339_v3, %s3270_s27 }
 0x109   : > { %v608_v38 = vpop.permute.xlu1 %607  ;;  %v606_v43 = vpop.permute.xlu0 %605 }
 0x10a   : > { %677 = vst.msk [vmem:[#allocation2 + $0xc0] sm:$0xff] %vm653_vm4, %v608_v38  ;;  %v754_v1 = vpop.permute.xlu2 %753 }
 0x10b   : > { %676 = vst.msk [vmem:[#allocation2 + $0xb8] sm:$0x7f] %vm655_vm5, %v606_v43 }
 0x10c   : > { %849 = vst.msk [vmem:[#allocation2 + $0x11] sm:$0xff] %vm845_vm6, %v754_v1  ;;  %v3030_v1 = vld [vmem:[%s3321_s23 + $0xc8] sm:$0x7f] }
 0x10f   : > { %953 = vrot.lane.b32.xlu1 %v3345_v5, %s3270_s27  ;;  %951 = vrot.lane.b32.xlu0 %v3334_v2, %s3270_s27 }
 0x110   : > { %955 = vrot.lane.b32.xlu2 %v3357_v7, %s3270_s27 }
 0x111   : > { %v614_v0 = vpop.permute.xlu1 %613  ;;  %v612_v4 = vpop.permute.xlu0 %611 }
 0x112   : > { %680 = vst.msk [vmem:[#allocation2 + $0xd8] sm:$0x7f] %vm655_vm5, %v614_v0  ;;  %v760_v3 = vpop.permute.xlu2 %759  ;;  %v3946_v0 = vld [vmem:[%s3321_s23 + $0xc0] sm:$0xff] }
 0x113   : > { %679 = vst.msk [vmem:[#allocation2 + $0xd0] sm:$0xff] %vm653_vm4, %v612_v4 }
 0x114   : > { %852 = vst.msk [vmem:[#allocation2 + $0x29] sm:$0x7f] %vm847_vm7, %v760_v3 }
 0x117   : > { %959 = vrot.lane.b32.xlu1 %v3360_v8, %s3270_s27  ;;  %957 = vrot.lane.b32.xlu0 %v3354_v6, %s3270_s27 }
 0x118   : > { %961 = vrot.lane.b32.xlu2 %v3372_v10, %s3270_s27 }
 0x119   : > { %v620_v2 = vpop.permute.xlu1 %619  ;;  %v618_v5 = vpop.permute.xlu0 %617 }
 0x11a   : > { %683 = vst.msk [vmem:[#allocation2 + $0xf0] sm:$0xff] %vm653_vm4, %v620_v2  ;;  %v766_v44 = vpop.permute.xlu2 %765  ;;  %v3957_v2 = vld [vmem:[%s3321_s23 + $0xc8] sm:$0xff]  ;;  %vm2271_vm4 = vcmask 261121  }
 0x11b   : > { %682 = vst.msk [vmem:[#allocation2 + $0xe8] sm:$0x7f] %vm655_vm5, %v618_v5  ;;  %v3090_v5 = vld [vmem:[%s3321_s23 + $0xc9] sm:$0x7f]  ;;  %vm2314_vm5 = vcmask 523520  }
 0x11c   : > { %855 = vst.msk [vmem:[#allocation2 + $0x41] sm:$0xff] %vm845_vm6, %v766_v44 }
 0x11f   : > { %965 = vrot.lane.b32.xlu1 %v3375_v11, %s3270_s27  ;;  %963 = vrot.lane.b32.xlu0 %v3369_v9, %s3270_s27 }
 0x120   : > { %967 = vrot.lane.b32.xlu2 %v3387_v13, %s3270_s27 }
 0x121   : > { %v752_v45 = vpop.permute.xlu1 %751  ;;  %v750_v46 = vpop.permute.xlu0 %749 }
 0x122   : > { %848 = vst.msk [vmem:[#allocation2 + $0x9] sm:$0x7f] %vm847_vm7, %v752_v45  ;;  %v772_v10 = vpop.permute.xlu2 %771 }
 0x123   : > { %846 = vst.msk [vmem:[#allocation2 + $0x1] sm:$0xff] %vm845_vm6, %v750_v46 }
 0x124   : > { %858 = vst.msk [vmem:[#allocation2 + $0x59] sm:$0x7f] %vm847_vm7, %v772_v10  ;;  %v1073_v10 = vld [vmem:[%s3321_s23 + $0x9] sm:$0x7f] }
 0x127   : > { %971 = vrot.lane.b32.xlu1 %v3390_v14, %s3270_s27  ;;  %969 = vrot.lane.b32.xlu0 %v3384_v12, %s3270_s27 }
 0x128   : > { %973 = vrot.lane.b32.xlu2 %v3402_v16, %s3270_s27 }
 0x129   : > { %v758_v11 = vpop.permute.xlu1 %757  ;;  %v756_v9 = vpop.permute.xlu0 %755 }
 0x12a   : > { %851 = vst.msk [vmem:[#allocation2 + $0x21] sm:$0xff] %vm845_vm6, %v758_v11  ;;  %v778_v13 = vpop.permute.xlu2 %777  ;;  %v1072_v11 = vld [vmem:[%s3321_s23 + $0x1] sm:$0xff] }
 0x12b   : > { %850 = vst.msk [vmem:[#allocation2 + $0x19] sm:$0x7f] %vm847_vm7, %v756_v9 }
 0x12c   : > { %861 = vst.msk [vmem:[#allocation2 + $0x71] sm:$0xff] %vm845_vm6, %v778_v13 }
 0x12f   : > { %977 = vrot.lane.b32.xlu1 %v3405_v17, %s3270_s27  ;;  %975 = vrot.lane.b32.xlu0 %v3399_v15, %s3270_s27 }
 0x130   : > { %979 = vrot.lane.b32.xlu2 %v3417_v19, %s3270_s27 }
 0x131   : > { %v764_v14 = vpop.permute.xlu1 %763  ;;  %v762_v12 = vpop.permute.xlu0 %761 }
 0x132   : > { %854 = vst.msk [vmem:[#allocation2 + $0x39] sm:$0x7f] %vm847_vm7, %v764_v14  ;;  %v784_v16 = vpop.permute.xlu2 %783 }
 0x133   : > { %853 = vst.msk [vmem:[#allocation2 + $0x31] sm:$0xff] %vm845_vm6, %v762_v12  ;;  %v3007_v12 = vld [vmem:[%s3321_s23 + $0x10] sm:$0xff] }
 0x134   : > { %864 = vst.msk [vmem:[#allocation2 + $0x89] sm:$0x7f] %vm847_vm7, %v784_v16  ;;  %v1083_v16 = vld [vmem:[%s3321_s23 + $0x59] sm:$0x7f] }
 0x137   : > { %983 = vrot.lane.b32.xlu1 %v3420_v20, %s3270_s27  ;;  %981 = vrot.lane.b32.xlu0 %v3414_v18, %s3270_s27 }
 0x138   : > { %1144 = vrot.lane.b32.xlu2 %v3489_v34, %s3271_s28 }
 0x139   : > { %v770_v15 = vpop.permute.xlu1 %769  ;;  %v768_v17 = vpop.permute.xlu0 %767 }
 0x13a   : > { %857 = vst.msk [vmem:[#allocation2 + $0x51] sm:$0xff] %vm845_vm6, %v770_v15  ;;  %v790_v19 = vpop.permute.xlu2 %789  ;;  %v3008_v15 = vld [vmem:[%s3321_s23 + $0x18] sm:$0x7f] }
 0x13b   : > { %856 = vst.msk [vmem:[#allocation2 + $0x49] sm:$0x7f] %vm847_vm7, %v768_v17  ;;  %v1816_v17 = vld [vmem:[%s4702_s1 + $0x10] sm:$0x3] }
 0x13c   : > { %867 = vst.msk [vmem:[#allocation2 + $0xa1] sm:$0xff] %vm845_vm6, %v790_v19 }
 0x13f   : > { %1335 = vrot.lane.b32.xlu1 %v3357_v7, %s3272_s29  ;;  %1146 = vrot.lane.b32.xlu0 %v1077_v47, %s3271_s28 }
 0x140   : > { %1337 = vrot.lane.b32.xlu2 %v3012_v48, %s3272_s29  ;;  %v1842_v48 = vunpack.c.l.b16 %v1816_v17 }
 0x141   : > { %v776_v18 = vpop.permute.xlu1 %775  ;;  %v774_v20 = vpop.permute.xlu0 %773 }
 0x142   : > { %860 = vst.msk [vmem:[#allocation2 + $0x69] sm:$0x7f] %vm847_vm7, %v776_v18  ;;  %v796_v34 = vpop.permute.xlu2 %795 }
 0x143   : > { %859 = vst.msk [vmem:[#allocation2 + $0x61] sm:$0xff] %vm845_vm6, %v774_v20  ;;  %v1845_v20 = vpack.c.b16 %v1842_v48, %v1842_v48 }
 0x144   : > { %870 = vst.msk [vmem:[#allocation2 + $0xb9] sm:$0x7f] %vm847_vm7, %v796_v34  ;;  %v3018_v34 = vld [vmem:[%s3321_s23 + $0x68] sm:$0x7f] }
 0x147   : > { %1519 = vrot.lane.b32.xlu1 %v3354_v6, %s3273_s30  ;;  %1517 = vrot.lane.b32.xlu0 %v3357_v7, %s3273_s30  ;;  %v1079_v6 = vld [vmem:[%s3321_s23 + $0x39] sm:$0x7f] }
 0x148   : > { %1698 = vrot.lane.b32.xlu2 %v3515_v39, %s3274_s6 }
 0x149   : > { %v782_v49 = vpop.permute.xlu1 %781  ;;  %v780_v50 = vpop.permute.xlu0 %779 }
 0x14a   : > { %863 = vst.msk [vmem:[#allocation2 + $0x81] sm:$0xff] %vm845_vm6, %v782_v49  ;;  %v802_v51 = vpop.permute.xlu2 %801  ;;  %v3017_v49 = vld [vmem:[%s3321_s23 + $0x60] sm:$0xff] }
 0x14b   : > { %862 = vst.msk [vmem:[#allocation2 + $0x79] sm:$0x7f] %vm847_vm7, %v780_v50  ;;  %v3990_v50 = vsel %vm1860_vm10, %v1845_v20, 0  ;;  %vm2938_vm10 = vcmask 257024  }
 0x14c   : > { %873 = vst.msk [vmem:[#allocation2 + $0xd1] sm:$0xff] %vm845_vm6, %v802_v51  ;;  %3221 = vmatpush.bf16.msra.mxu3 %v3990_v50  ;;  %v3996_v51 = vld [vmem:[%s4702_s1 + $0x8] sm:$0xff]  ;;  %1940 = vmatpush.bf16.msra.mxu1 %v3990_v50 }
 0x14d   : > { %1869 = vmatpush.bf16.msra.mxu0 %v3990_v50  ;;  %2011 = vmatpush.bf16.msra.mxu2 %v3990_v50 }
 0x14f   : > { %1148 = vrot.lane.b32.xlu1 %v3515_v39, %s3271_s28  ;;  %1700 = vrot.lane.b32.xlu0 %v3072_v52, %s3274_s6 }
 0x150   : > { %1150 = vrot.lane.b32.xlu2 %v1079_v6, %s3271_s28  ;;  %3222 = vmatpush.bf16.msra.mxu3 %v3996_v51 }
 0x151   : > { %v788_v7 = vpop.permute.xlu1 %787  ;;  %v786_v53 = vpop.permute.xlu0 %785  ;;  %1941 = vmatpush.bf16.msra.mxu1 %v3996_v51  ;;  %1870 = vmatpush.bf16.msra.mxu0 %v3996_v51 }
 0x152   : > { %866 = vst.msk [vmem:[#allocation2 + $0x99] sm:$0x7f] %vm847_vm7, %v788_v7  ;;  %v808_v54 = vpop.permute.xlu2 %807  ;;  %v4009_v7 = vld [vmem:[%s4702_s1] sm:$0xff]  ;;  %2012 = vmatpush.bf16.msra.mxu2 %v3996_v51 }
 0x153   : > { %865 = vst.msk [vmem:[#allocation2 + $0x91] sm:$0xff] %vm845_vm6, %v786_v53 }
 0x154   : > { %876 = vst.msk [vmem:[#allocation2 + $0xe9] sm:$0x7f] %vm847_vm7, %v808_v54  ;;  %v3038_v54 = vld [vmem:[%s3321_s23 + $0x18] sm:$0xff]  ;;  %3223 = vmatpush.bf16.msra.mxu3 %v4009_v7 }
 0x155   : > { %1942 = vmatpush.bf16.msra.mxu1 %v4009_v7  ;;  %1871 = vmatpush.bf16.msra.mxu0 %v4009_v7 }
 0x156   : > { %2013 = vmatpush.bf16.msra.mxu2 %v4009_v7 }
 0x157   : > { %1341 = vrot.lane.b32.xlu1 %v3014_v55, %s3272_s29  ;;  %1339 = vrot.lane.b32.xlu0 %v3360_v8, %s3272_s29  ;;  %v3048_v55 = vld [vmem:[%s3321_s23 + $0x68] sm:$0xff] }
 0x158   : > { %1521 = vrot.lane.b32.xlu2 %v3043_v56, %s3273_s30  ;;  %3224 = vmatpush.bf16.msrb.mxu3 %v3990_v50 }
 0x159   : > { %v794_v39 = vpop.permute.xlu1 %793  ;;  %v792_v57 = vpop.permute.xlu0 %791 }
 0x15a   : > { %869 = vst.msk [vmem:[#allocation2 + $0xb1] sm:$0xff] %vm845_vm6, %v794_v39  ;;  %v944_v58 = vpop.permute.xlu2 %943 }
 0x15b   : > { %868 = vst.msk [vmem:[#allocation2 + $0xa9] sm:$0x7f] %vm847_vm7, %v792_v57 }
 0x15c   : > { %1040 = vst.msk [vmem:[#allocation2] sm:$0xff] %vm1039_vm8, %v944_v58  ;;  %v3068_v58 = vld [vmem:[%s3321_s23 + $0x19] sm:$0x7f]  ;;  %3225 = vmatpush.bf16.msrb.mxu3 %v3996_v51 }
 0x15f   : > { %1702 = vrot.lane.b32.xlu1 %v3523_v40, %s3274_s6  ;;  %1523 = vrot.lane.b32.xlu0 %v3044_v59, %s3273_s30  ;;  %v4031_v59 = vld [vmem:[%s3321_s23 + $0x11] sm:$0xff] }
 0x160   : > { %1704 = vrot.lane.b32.xlu2 %v3074_v60, %s3274_s6  ;;  %v4035_v60 = vld [vmem:[%s3321_s23 + $0x61] sm:$0xff]  ;;  %3226 = vmatpush.bf16.msrb.mxu3 %v4009_v7 }
 0x161   : > { %v800_v8 = vpop.permute.xlu1 %799  ;;  %v798_v61 = vpop.permute.xlu0 %797 }
 0x162   : > { %872 = vst.msk [vmem:[#allocation2 + $0xc9] sm:$0x7f] %vm847_vm7, %v800_v8  ;;  %v950_v62 = vpop.permute.xlu2 %949 }
 0x163   : > { %871 = vst.msk [vmem:[#allocation2 + $0xc1] sm:$0xff] %vm845_vm6, %v798_v61 }
 0x164   : > { %1043 = vst.msk [vmem:[#allocation2 + $0x18] sm:$0xff] %vm1039_vm8, %v950_v62 }
 0x167   : > { %1154 = vrot.lane.b32.xlu1 %v1081_v63, %s3271_s28  ;;  %1152 = vrot.lane.b32.xlu0 %v3523_v40, %s3271_s28  ;;  %v3078_v63 = vld [vmem:[%s3321_s23 + $0x69] sm:$0x7f] }
 0x168   : > { %1343 = vrot.lane.b32.xlu2 %v3045_v22, %s3272_s29 }
 0x169   : > { %v806_v23 = vpop.permute.xlu1 %805  ;;  %v804_v21 = vpop.permute.xlu0 %803 }
 0x16a   : > { %875 = vst.msk [vmem:[#allocation2 + $0xe1] sm:$0xff] %vm845_vm6, %v806_v23  ;;  %v956_v24 = vpop.permute.xlu2 %955 }
 0x16b   : > { %874 = vst.msk [vmem:[#allocation2 + $0xd9] sm:$0x7f] %vm847_vm7, %v804_v21 }
 0x16c   : > { %1046 = vst.msk [vmem:[#allocation2 + $0x30] sm:$0xff] %vm1039_vm8, %v956_v24  ;;  %v1089_v24 = vld [vmem:[%s3321_s23 + $0x89] sm:$0x7f] }
 0x16f   : > { %1525 = vrot.lane.b32.xlu1 %v3045_v22, %s3273_s30  ;;  %1345 = vrot.lane.b32.xlu0 %v3016_v28, %s3272_s29  ;;  %v4056_v28 = vld [vmem:[%s3321_s23 + $0x81] sm:$0xff] }
 0x170   : > { %1527 = vrot.lane.b32.xlu2 %v3046_v30, %s3273_s30  ;;  %v1096_v30 = vld [vmem:[%s3321_s23 + $0xc1] sm:$0xff] }
 0x171   : > { %v812_v40 = vpop.permute.xlu1 %811  ;;  %v810_v31 = vpop.permute.xlu0 %809 }
 0x172   : > { %878 = vst.msk [vmem:[#allocation2 + $0xf9] sm:$0x7f] %vm847_vm7, %v812_v40  ;;  %v962_v25 = vpop.permute.xlu2 %961  ;;  %vm2478_vm7 = vcmask 522496  }
 0x173   : > { %877 = vst.msk [vmem:[#allocation2 + $0xf1] sm:$0xff] %vm845_vm6, %v810_v31  ;;  %vm2357_vm6 = vcmask 784896  }
 0x174   : > { %1049 = vst.msk [vmem:[#allocation2 + $0x48] sm:$0xff] %vm1039_vm8, %v962_v25 }
 0x177   : > { %1708 = vrot.lane.b32.xlu1 %v3076_v32, %s3274_s6  ;;  %1706 = vrot.lane.b32.xlu0 %v3541_v42, %s3274_s6 }
 0x178   : > { %987 = vrot.lane.b32.xlu2 %v3923_v26, %s3270_s27 }
 0x179   : > { %v948_v33 = vpop.permute.xlu1 %947  ;;  %v946_v35 = vpop.permute.xlu0 %945 }
 0x17a   : > { %1042 = vst.msk [vmem:[#allocation2 + $0x10] sm:$0xff] %vm1039_vm8, %v948_v33  ;;  %v968_v27 = vpop.permute.xlu2 %967 }
 0x17b   : > { %1041 = vst.msk [vmem:[#allocation2 + $0x8] sm:$0xff] %vm1039_vm8, %v946_v35 }
 0x17c   : > { %1052 = vst.msk [vmem:[#allocation2 + $0x60] sm:$0xff] %vm1039_vm8, %v968_v27  ;;  %v3023_v27 = vld [vmem:[%s3321_s23 + $0x90] sm:$0xff] }
 0x17f   : > { %1180 = vrot.lane.b32.xlu1 %v3614_v29, %s3271_s28  ;;  %989 = vrot.lane.b32.xlu0 %v3933_v36, %s3270_s27 }
 0x180   : > { %1182 = vrot.lane.b32.xlu2 %v1095_v37, %s3271_s28  ;;  %v1097_v37 = vld [vmem:[%s3321_s23 + $0xc9] sm:$0x7f] }
 0x181   : > { %v954_v42 = vpop.permute.xlu1 %953  ;;  %v952_v38 = vpop.permute.xlu0 %951 }
 0x182   : > { %1045 = vst.msk [vmem:[#allocation2 + $0x28] sm:$0xff] %vm1039_vm8, %v954_v42  ;;  %v974_v43 = vpop.permute.xlu2 %973  ;;  %v3024_v42 = vld [vmem:[%s3321_s23 + $0x98] sm:$0x7f] }
 0x183   : > { %1044 = vst.msk [vmem:[#allocation2 + $0x20] sm:$0xff] %vm1039_vm8, %v952_v38 }
 0x184   : > { %1055 = vst.msk [vmem:[#allocation2 + $0x78] sm:$0xff] %vm1039_vm8, %v974_v43 }
 0x187   : > { %1373 = vrot.lane.b32.xlu1 %v3030_v1, %s3272_s29  ;;  %1371 = vrot.lane.b32.xlu0 %v3946_v0, %s3272_s29 }
 0x188   : > { %1553 = vrot.lane.b32.xlu2 %v3946_v0, %s3273_s30 }
 0x189   : > { %v960_v29 = vpop.permute.xlu1 %959  ;;  %v958_v4 = vpop.permute.xlu0 %957 }
 0x18a   : > { %1048 = vst.msk [vmem:[#allocation2 + $0x40] sm:$0xff] %vm1039_vm8, %v960_v29  ;;  %v980_v3 = vpop.permute.xlu2 %979  ;;  %v4080_v29 = vld [vmem:[%s3321_s23 + $0xd0] sm:$0xff] }
 0x18b   : > { %1047 = vst.msk [vmem:[#allocation2 + $0x38] sm:$0xff] %vm1039_vm8, %v958_v4 }
 0x18c   : > { %1058 = vst.msk [vmem:[#allocation2 + $0x90] sm:$0xff] %vm1039_vm8, %v980_v3 }
 0x18f   : > { %1734 = vrot.lane.b32.xlu1 %v3636_v41, %s3274_s6  ;;  %1555 = vrot.lane.b32.xlu0 %v3957_v2, %s3273_s30  ;;  %v1082_v41 = vld [vmem:[%s3321_s23 + $0x51] sm:$0xff] }
 0x190   : > { %1736 = vrot.lane.b32.xlu2 %v3090_v5, %s3274_s6 }
 0x191   : > { %v966_v44 = vpop.permute.xlu1 %965  ;;  %v964_v45 = vpop.permute.xlu0 %963 }
 0x192   : > { %1051 = vst.msk [vmem:[#allocation2 + $0x58] sm:$0xff] %vm1039_vm8, %v966_v44  ;;  %v1145_v46 = vpop.permute.xlu2 %1144 }
 0x193   : > { %1050 = vst.msk [vmem:[#allocation2 + $0x50] sm:$0xff] %vm1039_vm8, %v964_v45 }
 0x194   : > { %1238 = vst.msk [vmem:[#allocation2 + $0x20] sm:$0xff] %vm1232_vm9, %v1145_v46  ;;  %v3054_v46 = vld [vmem:[%s3321_s23 + $0x98] sm:$0xff] }
 0x197   : > { %1138 = vrot.lane.b32.xlu1 %v1073_v10, %s3271_s28  ;;  %1136 = vrot.lane.b32.xlu0 %v1072_v11, %s3271_s28  ;;  %v4094_v10 = vld [vmem:[%s3321_s23 + $0xd8] sm:$0xff] }
 0x198   : > { %1156 = vrot.lane.b32.xlu2 %v1082_v41, %s3271_s28 }
 0x199   : > { %v972_v9 = vpop.permute.xlu1 %971  ;;  %v970_v13 = vpop.permute.xlu0 %969 }
 0x19a   : > { %1054 = vst.msk [vmem:[#allocation2 + $0x70] sm:$0xff] %vm1039_vm8, %v972_v9  ;;  %v1338_v14 = vpop.permute.xlu2 %1337 }
 0x19b   : > { %1053 = vst.msk [vmem:[#allocation2 + $0x68] sm:$0xff] %vm1039_vm8, %v970_v13  ;;  %v3084_v13 = vld [vmem:[%s3321_s23 + $0x99] sm:$0x7f] }
 0x19f   : > { %1327 = vrot.lane.b32.xlu1 %v3007_v12, %s3272_s29  ;;  %1158 = vrot.lane.b32.xlu0 %v1083_v16, %s3271_s28 }
 0x1a0   : > { %1329 = vrot.lane.b32.xlu2 %v3008_v15, %s3272_s29 }
 0x1a1   : > { %v978_v19 = vpop.permute.xlu1 %977  ;;  %v976_v47 = vpop.permute.xlu0 %975 }
 0x1a2   : > { %1057 = vst.msk [vmem:[#allocation2 + $0x88] sm:$0xff] %vm1039_vm8, %v978_v19  ;;  %v1699_v18 = vpop.permute.xlu2 %1698  ;;  %v3092_v19 = vld [vmem:[%s3321_s23 + $0xd9] sm:$0x7f] }
 0x1a3   : > { %1056 = vst.msk [vmem:[#allocation2 + $0x80] sm:$0xff] %vm1039_vm8, %v976_v47  ;;  %v1075_v47 = vld [vmem:[%s3321_s23 + $0x19] sm:$0x7f] }
 0x1a7   : > { %1349 = vrot.lane.b32.xlu1 %v3018_v34, %s3272_s29  ;;  %1347 = vrot.lane.b32.xlu0 %v3017_v49, %s3272_s29 }
 0x1a8   : > { %1509 = vrot.lane.b32.xlu2 %v3007_v12, %s3273_s30  ;;  %v4109_v12 = vld [vmem:[%s3321_s23 + $0xd1] sm:$0xff] }
 0x1a9   : > { %v984_v52 = vpop.permute.xlu1 %983  ;;  %v982_v6 = vpop.permute.xlu0 %981 }
 0x1aa   : > { %1060 = vst.msk [vmem:[#allocation2 + $0xa0] sm:$0xff] %vm1039_vm8, %v984_v52  ;;  %v1151_v53 = vpop.permute.xlu2 %1150  ;;  %v3039_v52 = vld [vmem:[%s3321_s23 + $0x20] sm:$0xff] }
 0x1ab   : > { %1059 = vst.msk [vmem:[#allocation2 + $0x98] sm:$0xff] %vm1039_vm8, %v982_v6 }
 0x1ac   : > { %1241 = vst.msk [vmem:[#allocation2 + $0x38] sm:$0x7f] %vm1234_vm11, %v1151_v53 }
 0x1af   : > { %1529 = vrot.lane.b32.xlu1 %v3017_v49, %s3273_s30  ;;  %1511 = vrot.lane.b32.xlu0 %v3038_v54, %s3273_s30  ;;  %v3019_v54 = vld [vmem:[%s3321_s23 + $0x70] sm:$0xff] }
 0x1b0   : > { %1531 = vrot.lane.b32.xlu2 %v3048_v55, %s3273_s30  ;;  %v3010_v55 = vld [vmem:[%s3321_s23 + $0x28] sm:$0x7f] }
 0x1b1   : > { %v1336_v56 = vpop.permute.xlu1 %1335  ;;  %v1147_v39 = vpop.permute.xlu0 %1146 }
 0x1b2   : > { %1239 = vst.msk [vmem:[#allocation2 + $0x28] sm:$0x7f] %vm1234_vm11, %v1147_v39  ;;  %v1522_v57 = vpop.permute.xlu2 %1521 }
 0x1b3   : > { %1423 = vst.msk [vmem:[#allocation2 + $0x21] sm:$0xff] %vm1417_vm12, %v1336_v56  ;;  %v3020_v56 = vld [vmem:[%s3321_s23 + $0x78] sm:$0x7f] }
 0x1b4   : > { %1424 = vst.msk [vmem:[#allocation2 + $0x29] sm:$0x7f] %vm1419_vm13, %v1338_v14  ;;  %v4106_v14 = vld [vmem:[%s3321_s23 + $0x91] sm:$0xff] }
 0x1b7   : > { %1692 = vrot.lane.b32.xlu1 %v3068_v58, %s3274_s6  ;;  %1690 = vrot.lane.b32.xlu0 %v4031_v59, %s3274_s6 }
 0x1b8   : > { %1710 = vrot.lane.b32.xlu2 %v4035_v60, %s3274_s6 }
 0x1b9   : > { %v1520_v8 = vpop.permute.xlu1 %1519  ;;  %v1518_v61 = vpop.permute.xlu0 %1517 }
 0x1ba   : > { %1605 = vst.msk [vmem:[#allocation2 + $0x28] sm:$0xff] %vm1599_vm14, %v1520_v8  ;;  %v1705_v62 = vpop.permute.xlu2 %1704 }
 0x1bb   : > { %1604 = vst.msk [vmem:[#allocation2 + $0x20] sm:$0xff] %vm1599_vm14, %v1518_v61 }
 0x1bc   : > { %1786 = vst.msk [vmem:[#allocation2 + $0x20] sm:$0xff] %vm1780_vm15, %v1699_v18 }
 0x1bf   : > { %991 = vrot.lane.b32.xlu1 %v3946_v0, %s3270_s27  ;;  %1712 = vrot.lane.b32.xlu0 %v3078_v63, %s3274_s6  ;;  %v3032_v0 = vld [vmem:[%s3321_s23 + $0xd8] sm:$0x7f] }
 0x1c0   : > { %993 = vrot.lane.b32.xlu2 %v3957_v2, %s3270_s27 }
 0x1c1   : > { %v1149_v22 = vpop.permute.xlu1 %1148  ;;  %v1701_v23 = vpop.permute.xlu0 %1700 }
 0x1c2   : > { %1240 = vst.msk [vmem:[#allocation2 + $0x30] sm:$0xff] %vm1232_vm9, %v1149_v22  ;;  %v1344_v21 = vpop.permute.xlu2 %1343 }
 0x1c3   : > { %1787 = vst.msk [vmem:[#allocation2 + $0x28] sm:$0x7f] %vm1782_vm1, %v1701_v23  ;;  %v1822_v25 = vld [vmem:[#allocation2 + $0x20] sm:$0xff] }
 0x1c4   : > { %v3069_v23 = vld [vmem:[%s3321_s23 + $0x21] sm:$0xff] }
 0x1c7   : > { %1170 = vrot.lane.b32.xlu1 %v1089_v24, %s3271_s28  ;;  %1168 = vrot.lane.b32.xlu0 %v4056_v28, %s3271_s28  ;;  %v3070_v24 = vld [vmem:[%s3321_s23 + $0x29] sm:$0x7f] }
 0x1c8   : > { %1184 = vrot.lane.b32.xlu2 %v1096_v30, %s3271_s28 }
 0x1c9   : > { %v1342_v40 = vpop.permute.xlu1 %1341  ;;  %v1340_v31 = vpop.permute.xlu0 %1339 }
 0x1ca   : > { %1426 = vst.msk [vmem:[#allocation2 + $0x39] sm:$0x7f] %vm1419_vm13, %v1342_v40  ;;  %v1823_v32 = vld [vmem:[#allocation2 + $0x28] sm:$0xff]  ;;  %v1528_v35 = vpop.permute.xlu2 %1527 }
 0x1cb   : > { %1425 = vst.msk [vmem:[#allocation2 + $0x31] sm:$0xff] %vm1417_vm12, %v1340_v31  ;;  %v1828_v33 = vpack.c.bf16 %v1823_v32, %v1822_v25  ;;  %v3080_v25 = vld [vmem:[%s3321_s23 + $0x79] sm:$0x7f]  ;;  %v4166_v32 = vld [vmem:[%s3321_s23 + $0x71] sm:$0xff] }
 0x1cc   : > { %1606 = vst.msk [vmem:[#allocation2 + $0x30] sm:$0xff] %vm1599_vm14, %v1522_v57 }
 0x1cd   : > { %3107 = vmatmul.msk.bf16.vlgmr.msra.gmra.mxu3 %vm226_vm0, %v1828_v33 }
 0x1ce   : > { %2082 = vmatpush.bf16.msra.mxu3 %v3990_v50 }
 0x1cf   : > { %1359 = vrot.lane.b32.xlu1 %v3023_v27, %s3272_s29  ;;  %1186 = vrot.lane.b32.xlu0 %v1097_v37, %s3271_s28  ;;  %v1091_v37 = vld [vmem:[%s3321_s23 + $0x99] sm:$0x7f] }
 0x1d0   : > { %1361 = vrot.lane.b32.xlu2 %v3024_v42, %s3272_s29 }
 0x1d1   : > { %v1703_v38 = vpop.permute.xlu1 %1702  ;;  %v1524_v43 = vpop.permute.xlu0 %1523 }
 0x1d2   : > { %1788 = vst.msk [vmem:[#allocation2 + $0x30] sm:$0xff] %vm1780_vm15, %v1703_v38  ;;  %2083 = vmatpush.bf16.msra.mxu3 %v3996_v51  ;;  %v988_v1 = vpop.permute.xlu2 %987  ;;  %v1085_v51 = vld [vmem:[%s3321_s23 + $0x69] sm:$0x7f] }
 0x1d3   : > { %1607 = vst.msk [vmem:[#allocation2 + $0x38] sm:$0xff] %vm1599_vm14, %v1524_v43 }
 0x1d4   : > { %1789 = vst.msk [vmem:[#allocation2 + $0x38] sm:$0x7f] %vm1782_vm1, %v1705_v62 }
 0x1d5   : > { %1062 = vst.msk [vmem:[#allocation2 + $0xb0] sm:$0xff] %vm1039_vm8, %v988_v1  ;;  %v1099_v1 = vld [vmem:[%s3321_s23 + $0xd9] sm:$0x7f] }
 0x1d6   : > { %2084 = vmatpush.bf16.msra.mxu3 %v4009_v7 }
 0x1d7   : > { %1377 = vrot.lane.b32.xlu1 %v3032_v0, %s3272_s29  ;;  %1375 = vrot.lane.b32.xlu0 %v4080_v29, %s3272_s29  ;;  %v3055_v0 = vld [vmem:[%s3321_s23 + $0xa0] sm:$0xff] }
 0x1d8   : > { %1541 = vrot.lane.b32.xlu2 %v3023_v27, %s3273_s30 }
 0x1d9   : > { %v1155_v4 = vpop.permute.xlu1 %1154  ;;  %v1153_v3 = vpop.permute.xlu0 %1152  ;;  %v1824_v2 = vld [vmem:[#allocation2 + $0x30] sm:$0xff] }
 0x1da   : > { %1243 = vst.msk [vmem:[#allocation2 + $0x48] sm:$0x7f] %vm1234_vm11, %v1155_v4  ;;  %v1183_v44 = vpop.permute.xlu2 %1182 }
 0x1db   : > { %1242 = vst.msk [vmem:[#allocation2 + $0x40] sm:$0xff] %vm1232_vm9, %v1153_v3  ;;  %v1825_v5 = vld [vmem:[#allocation2 + $0x38] sm:$0xff] }
 0x1dc   : > { %1427 = vst.msk [vmem:[#allocation2 + $0x41] sm:$0xff] %vm1417_vm12, %v1344_v21  ;;  %v1829_v45 = vpack.c.bf16 %v1825_v5, %v1824_v2  ;;  %v3050_v21 = vld [vmem:[%s3321_s23 + $0x78] sm:$0xff]  ;;  %v4195_v2 = vld [vmem:[%s3321_s23 + $0xe0] sm:$0xff]  ;;  %v3026_v5 = vld [vmem:[%s3321_s23 + $0xa8] sm:$0x7f] }
 0x1de   : > { %3108 = vmatmul.msk.bf16.gmra.mxu3 %vm226_vm0, %v1829_v45 }
 0x1df   : > { %1557 = vrot.lane.b32.xlu1 %v4080_v29, %s3273_s30  ;;  %1543 = vrot.lane.b32.xlu0 %v3054_v46, %s3273_s30 }
 0x1e0   : > { %1559 = vrot.lane.b32.xlu2 %v4094_v10, %s3273_s30 }
 0x1e1   : > { %v1526_v11 = vpop.permute.xlu1 %1525  ;;  %v1346_v41 = vpop.permute.xlu0 %1345 }
 0x1e2   : > { %1608 = vst.msk [vmem:[#allocation2 + $0x40] sm:$0xff] %vm1599_vm14, %v1526_v11  ;;  %v1554_v9 = vpop.permute.xlu2 %1553 }
 0x1e3   : > { %1428 = vst.msk [vmem:[#allocation2 + $0x49] sm:$0x7f] %vm1419_vm13, %v1346_v41 }
 0x1e4   : > { %1609 = vst.msk [vmem:[#allocation2 + $0x48] sm:$0xff] %vm1599_vm14, %v1528_v35 }
 0x1e7   : > { %1724 = vrot.lane.b32.xlu1 %v3084_v13, %s3274_s6  ;;  %1722 = vrot.lane.b32.xlu0 %v4106_v14, %s3274_s6  ;;  %v4207_v13 = vld [vmem:[%s3321_s23 + $0xa8] sm:$0xff] }
 0x1e8   : > { %1738 = vrot.lane.b32.xlu2 %v4109_v12, %s3274_s6 }
 0x1e9   : > { %v1709_v16 = vpop.permute.xlu1 %1708  ;;  %v1707_v15 = vpop.permute.xlu0 %1706 }
 0x1ea   : > { %1791 = vst.msk [vmem:[#allocation2 + $0x48] sm:$0x7f] %vm1782_vm1, %v1709_v16  ;;  %v1737_v17 = vpop.permute.xlu2 %1736 }
 0x1eb   : > { %1790 = vst.msk [vmem:[#allocation2 + $0x40] sm:$0xff] %vm1780_vm15, %v1707_v15 }
 0x1ef   : > { %1140 = vrot.lane.b32.xlu1 %v4031_v59, %s3271_s28  ;;  %1740 = vrot.lane.b32.xlu0 %v3092_v19, %s3274_s6  ;;  %v3040_v59 = vld [vmem:[%s3321_s23 + $0x28] sm:$0xff] }
 0x1f0   : > { %1142 = vrot.lane.b32.xlu2 %v1075_v47, %s3271_s28 }
 0x1f1   : > { %v1181_v48 = vpop.permute.xlu1 %1180  ;;  %v990_v18 = vpop.permute.xlu0 %989  ;;  %v1912_v20 = vld [vmem:[#allocation2 + $0x48] sm:$0xff] }
 0x1f2   : > { %1256 = vst.msk [vmem:[#allocation2 + $0xb0] sm:$0xff] %vm1232_vm9, %v1181_v48  ;;  %v1911_v34 = vld [vmem:[#allocation2 + $0x40] sm:$0xff]  ;;  %v1157_v50 = vpop.permute.xlu2 %1156 }
 0x1f3   : > { %1063 = vst.msk [vmem:[#allocation2 + $0xb8] sm:$0xff] %vm1039_vm8, %v990_v18  ;;  %v1919_v49 = vpack.c.bf16 %v1912_v20, %v1911_v34  ;;  %v4224_v48 = vld [vmem:[%s3321_s23 + $0xa1] sm:$0xff]  ;;  %v3086_v20 = vld [vmem:[%s3321_s23 + $0xa9] sm:$0x7f] }
 0x1f4   : > { %1257 = vst.msk [vmem:[#allocation2 + $0xb8] sm:$0x7f] %vm1234_vm11, %v1183_v44  ;;  %v3034_v44 = vld [vmem:[%s3321_s23 + $0xe8] sm:$0x7f] }
 0x1f5   : > { %3109 = vmatmul.msk.bf16.vlgmr.msra.gmra.mxu1 %vm226_vm0, %v1919_v49  ;;  %1244 = vst.msk [vmem:[#allocation2 + $0x50] sm:$0xff] %vm1232_vm9, %v1157_v50  ;;  %v4227_v18 = vld [vmem:[%s3321_s23 + $0xe8] sm:$0xff] }
 0x1f7   : > { %1162 = vrot.lane.b32.xlu1 %v1085_v51, %s3271_s28  ;;  %1160 = vrot.lane.b32.xlu0 %v4035_v60, %s3271_s28  ;;  %v3094_v51 = vld [vmem:[%s3321_s23 + $0xe9] sm:$0x7f] }
 0x1f8   : > { %1331 = vrot.lane.b32.xlu2 %v3039_v52, %s3272_s29 }
 0x1f9   : > { %v1374_v6 = vpop.permute.xlu1 %1373  ;;  %v1372_v7 = vpop.permute.xlu0 %1371 }
 0x1fa   : > { %1442 = vst.msk [vmem:[#allocation2 + $0xb9] sm:$0x7f] %vm1419_vm13, %v1374_v6  ;;  %v1330_v53 = vpop.permute.xlu2 %1329 }
 0x1fb   : > { %1441 = vst.msk [vmem:[#allocation2 + $0xb1] sm:$0xff] %vm1417_vm12, %v1372_v7 }
 0x1fc   : > { %1622 = vst.msk [vmem:[#allocation2 + $0xb0] sm:$0xff] %vm1599_vm14, %v1554_v9 }
 0x1ff   : > { %1351 = vrot.lane.b32.xlu1 %v3019_v54, %s3272_s29  ;;  %1333 = vrot.lane.b32.xlu0 %v3010_v55, %s3272_s29  ;;  %v1087_v55 = vld [vmem:[%s3321_s23 + $0x79] sm:$0x7f] }
 0x200   : > { %1353 = vrot.lane.b32.xlu2 %v3020_v56, %s3272_s29  ;;  %v4259_v56 = vld [vmem:[%s4703_s2] ss:$0 sm:$0xff] }
 0x201   : > { %v1735_v39 = vpop.permute.xlu1 %1734  ;;  %v1556_v57 = vpop.permute.xlu0 %1555 }
 0x202   : > { %1804 = vst.msk [vmem:[#allocation2 + $0xb0] sm:$0xff] %vm1780_vm15, %v1735_v39  ;;  %v1510_v58 = vpop.permute.xlu2 %1509  ;;  %v3022_v39 = vld [vmem:[%s3321_s23 + $0x88] sm:$0x7f] }
 0x203   : > { %1623 = vst.msk [vmem:[#allocation2 + $0xb8] sm:$0xff] %vm1599_vm14, %v1556_v57 }
 0x204   : > { %1805 = vst.msk [vmem:[#allocation2 + $0xb8] sm:$0x7f] %vm1782_vm1, %v1737_v17 }
 0x207   : > { %1515 = vrot.lane.b32.xlu1 %v3040_v59, %s3273_s30  ;;  %1513 = vrot.lane.b32.xlu0 %v3039_v52, %s3273_s30  ;;  %v4244_v52 = vld [vmem:[%s3321_s23 + $0xe1] sm:$0xff] }
 0x208   : > { %1533 = vrot.lane.b32.xlu2 %v3019_v54, %s3273_s30  ;;  %v3021_v54 = vld [vmem:[%s3321_s23 + $0x80] sm:$0xff] }
 0x209   : > { %v1139_v60 = vpop.permute.xlu1 %1138  ;;  %v1137_v8 = vpop.permute.xlu0 %1136  ;;  %v1988_v61 = vld [vmem:[#allocation2 + $0xb0] sm:$0xff] }
 0x20a   : > { %1235 = vst.msk [vmem:[#allocation2 + $0x8] sm:$0x7f] %vm1234_vm11, %v1139_v60  ;;  %v1532_v63 = vpop.permute.xlu2 %1531 }
 0x20b   : > { %1233 = vst.msk [vmem:[#allocation2] sm:$0xff] %vm1232_vm9, %v1137_v8  ;;  %v1989_v62 = vld [vmem:[#allocation2 + $0xb8] sm:$0xff] }
 0x20c   : > { %1420 = vst.msk [vmem:[#allocation2 + $0x9] sm:$0x7f] %vm1419_vm13, %v1330_v53  ;;  %v1993_v22 = vpack.c.bf16 %v1989_v62, %v1988_v61  ;;  %v3052_v62 = vld [vmem:[%s3321_s23 + $0x88] sm:$0xff] }
 0x20e   : > { %3116 = vmatmul.msk.bf16.vlgmr.msrb.gmra.mxu3 %vm226_vm0, %v1993_v22 }
 0x20f   : > { %1694 = vrot.lane.b32.xlu1 %v3069_v23, %s3274_s6  ;;  %1535 = vrot.lane.b32.xlu0 %v3050_v21, %s3273_s30 }
 0x210   : > { %1696 = vrot.lane.b32.xlu2 %v3070_v24, %s3274_s6 }
 0x211   : > { %v1328_v30 = vpop.permute.xlu1 %1327  ;;  %v1159_v40 = vpop.permute.xlu0 %1158 }
 0x212   : > { %1418 = vst.msk [vmem:[#allocation2 + $0x1] sm:$0xff] %vm1417_vm12, %v1328_v30  ;;  %v1711_v31 = vpop.permute.xlu2 %1710 }
 0x213   : > { %1245 = vst.msk [vmem:[#allocation2 + $0x58] sm:$0x7f] %vm1234_vm11, %v1159_v40  ;;  %v3082_v40 = vld [vmem:[%s3321_s23 + $0x89] sm:$0x7f] }
 0x214   : > { %1600 = vst.msk [vmem:[#allocation2] sm:$0xff] %vm1599_vm14, %v1510_v58 }
 0x217   : > { %1716 = vrot.lane.b32.xlu1 %v3080_v25, %s3274_s6  ;;  %1714 = vrot.lane.b32.xlu0 %v4166_v32, %s3274_s6 }
 0x218   : > { %995 = vrot.lane.b32.xlu2 %v4080_v29, %s3270_s27 }
 0x219   : > { %v1350_v33 = vpop.permute.xlu1 %1349  ;;  %v1348_v35 = vpop.permute.xlu0 %1347 }
 0x21a   : > { %1430 = vst.msk [vmem:[#allocation2 + $0x59] sm:$0x7f] %vm1419_vm13, %v1350_v33  ;;  %v994_v27 = vpop.permute.xlu2 %993 }
 0x21b   : > { %1429 = vst.msk [vmem:[#allocation2 + $0x51] sm:$0xff] %vm1417_vm12, %v1348_v35 }
 0x21c   : > { %1611 = vst.msk [vmem:[#allocation2 + $0x58] sm:$0xff] %vm1599_vm14, %v1532_v63 }
 0x21d   : > { %1065 = vst.msk [vmem:[#allocation2 + $0xc8] sm:$0xff] %vm1039_vm8, %v994_v27 }
 0x21f   : > { %1172 = vrot.lane.b32.xlu1 %v4106_v14, %s3271_s28  ;;  %997 = vrot.lane.b32.xlu0 %v4094_v10, %s3270_s27  ;;  %v3256_v14 = vld [vmem:[#allocation5] sm:$0xff] }
 0x220   : > { %1174 = vrot.lane.b32.xlu2 %v1091_v37, %s3271_s28  ;;  %2220 = vst.msk [vmem:[#allocation5 + $0x10] sm:$0xff] %vm1901_vm2, %v3256_v14 }
 0x221   : > { %v1530_v42 = vpop.permute.xlu1 %1529  ;;  %v1512_v38 = vpop.permute.xlu0 %1511  ;;  %2223 = vst.msk [vmem:[#allocation5 + $0x28] sm:$0xff] %vm1901_vm2, %v3256_v14 }
 0x222   : > { %1610 = vst.msk [vmem:[#allocation2 + $0x50] sm:$0xff] %vm1599_vm14, %v1530_v42  ;;  %v1185_v43 = vpop.permute.xlu2 %1184 }
 0x223   : > { %1601 = vst.msk [vmem:[#allocation2 + $0x8] sm:$0xff] %vm1599_vm14, %v1512_v38  ;;  %v1093_v38 = vld [vmem:[%s3321_s23 + $0xa9] sm:$0x7f] }
 0x224   : > { %1792 = vst.msk [vmem:[#allocation2 + $0x50] sm:$0xff] %vm1780_vm15, %v1711_v31 }
 0x225   : > { %2226 = vst.msk [vmem:[#allocation5 + $0x40] sm:$0xff] %vm1901_vm2, %v3256_v14 }
 0x226   : > { %2229 = vst.msk [vmem:[#allocation5 + $0x58] sm:$0xff] %vm1901_vm2, %v3256_v14 }
 0x227   : > { %1190 = vrot.lane.b32.xlu1 %v1099_v1, %s3271_s28  ;;  %1188 = vrot.lane.b32.xlu0 %v4109_v12, %s3271_s28  ;;  %2232 = vst.msk [vmem:[#allocation5 + $0x70] sm:$0xff] %vm1901_vm2, %v3256_v14 }
 0x228   : > { %1363 = vrot.lane.b32.xlu2 %v3055_v0, %s3272_s29  ;;  %2235 = vst.msk [vmem:[#allocation5 + $0x88] sm:$0xff] %vm1901_vm2, %v3256_v14 }
 0x229   : > { %v1693_v29 = vpop.permute.xlu1 %1692  ;;  %v1691_v4 = vpop.permute.xlu0 %1690  ;;  %2238 = vst.msk [vmem:[#allocation5 + $0xa0] sm:$0xff] %vm1901_vm2, %v3256_v14 }
 0x22a   : > { %1783 = vst.msk [vmem:[#allocation2 + $0x8] sm:$0x7f] %vm1782_vm1, %v1693_v29  ;;  %v1362_v3 = vpop.permute.xlu2 %1361 }
 0x22b   : > { %1781 = vst.msk [vmem:[#allocation2] sm:$0xff] %vm1780_vm15, %v1691_v4  ;;  %v1913_v15 = vld [vmem:[#allocation2 + $0x50] sm:$0xff] }
 0x22c   : > { %2241 = vst.msk [vmem:[#allocation5 + $0xb8] sm:$0xff] %vm1901_vm2, %v3256_v14 }
 0x22f   : > { %1379 = vrot.lane.b32.xlu1 %v4195_v2, %s3272_s29  ;;  %1365 = vrot.lane.b32.xlu0 %v3026_v5, %s3272_s29 }
 0x230   : > { %1381 = vrot.lane.b32.xlu2 %v3034_v44, %s3272_s29 }
 0x231   : > { %v992_v45 = vpop.permute.xlu1 %991  ;;  %v1713_v46 = vpop.permute.xlu0 %1712  ;;  %v1819_v10 = vld [vmem:[#allocation2 + $0x8] sm:$0xff] }
 0x232   : > { %1064 = vst.msk [vmem:[#allocation2 + $0xc0] sm:$0xff] %vm1039_vm8, %v992_v45  ;;  %v1818_v11 = vld [vmem:[#allocation2] sm:$0xff]  ;;  %v1542_v9 = vpop.permute.xlu2 %1541  ;;  %v1101_v45 = vld [vmem:[%s3321_s23 + $0xe9] sm:$0x7f] }
 0x233   : > { %1793 = vst.msk [vmem:[#allocation2 + $0x58] sm:$0x7f] %vm1782_vm1, %v1713_v46  ;;  %v1826_v41 = vpack.c.bf16 %v1819_v10, %v1818_v11 }
 0x234   : > { %1258 = vst.msk [vmem:[#allocation2 + $0xc0] sm:$0xff] %vm1232_vm9, %v1185_v43 }
 0x235   : > { %3105 = vmatmul.msk.bf16.vlgmr.msra.gmra.mxu0 %vm226_vm0, %v1826_v41 }
 0x237   : > { %1547 = vrot.lane.b32.xlu1 %v4207_v13, %s3273_s30  ;;  %1545 = vrot.lane.b32.xlu0 %v3055_v0, %s3273_s30 }
 0x238   : > { %1561 = vrot.lane.b32.xlu2 %v4195_v2, %s3273_s30 }
 0x239   : > { %v1171_v12 = vpop.permute.xlu1 %1170  ;;  %v1169_v16 = vpop.permute.xlu0 %1168 }
 0x23a   : > { %1251 = vst.msk [vmem:[#allocation2 + $0x88] sm:$0x7f] %vm1234_vm11, %v1171_v12  ;;  %v1914_v17 = vld [vmem:[#allocation2 + $0x58] sm:$0xff]  ;;  %v1560_v47 = vpop.permute.xlu2 %1559  ;;  %v4315_v12 = vld [vmem:[%s3321_s23 + $0xf0] sm:$0xff] }
 0x23b   : > { %1250 = vst.msk [vmem:[#allocation2 + $0x80] sm:$0xff] %vm1232_vm9, %v1169_v16  ;;  %v1920_v19 = vpack.c.bf16 %v1914_v17, %v1913_v15  ;;  %v3028_v16 = vld [vmem:[%s3321_s23 + $0xb8] sm:$0x7f] }
 0x23c   : > { %1436 = vst.msk [vmem:[#allocation2 + $0x89] sm:$0x7f] %vm1419_vm13, %v1362_v3 }
 0x23d   : > { %3110 = vmatmul.msk.bf16.gmra.mxu1 %vm226_vm0, %v1920_v19 }
 0x23f   : > { %1726 = vrot.lane.b32.xlu1 %v4224_v48, %s3274_s6  ;;  %1563 = vrot.lane.b32.xlu0 %v4227_v18, %s3273_s30 }
 0x240   : > { %1728 = vrot.lane.b32.xlu2 %v3086_v20, %s3274_s6 }
 0x241   : > { %v1360_v34 = vpop.permute.xlu1 %1359  ;;  %v1187_v49 = vpop.permute.xlu0 %1186 }
 0x242   : > { %1435 = vst.msk [vmem:[#allocation2 + $0x81] sm:$0xff] %vm1417_vm12, %v1360_v34  ;;  %v1739_v50 = vpop.permute.xlu2 %1738 }
 0x243   : > { %1259 = vst.msk [vmem:[#allocation2 + $0xc8] sm:$0x7f] %vm1234_vm11, %v1187_v49 }
 0x244   : > { %1616 = vst.msk [vmem:[#allocation2 + $0x80] sm:$0xff] %vm1599_vm14, %v1542_v9 }
 0x247   : > { %1744 = vrot.lane.b32.xlu1 %v3094_v51, %s3274_s6  ;;  %1742 = vrot.lane.b32.xlu0 %v4244_v52, %s3274_s6 }
 0x248   : > { %1164 = vrot.lane.b32.xlu2 %v4166_v32, %s3271_s28 }
 0x249   : > { %v1378_v6 = vpop.permute.xlu1 %1377  ;;  %v1376_v7 = vpop.permute.xlu0 %1375 }
 0x24a   : > { %1444 = vst.msk [vmem:[#allocation2 + $0xc9] sm:$0x7f] %vm1419_vm13, %v1378_v6  ;;  %v1143_v53 = vpop.permute.xlu2 %1142 }
 0x24b   : > { %1443 = vst.msk [vmem:[#allocation2 + $0xc1] sm:$0xff] %vm1417_vm12, %v1376_v7 }
 0x24c   : > { %1625 = vst.msk [vmem:[#allocation2 + $0xc8] sm:$0xff] %vm1599_vm14, %v1560_v47 }
 0x24d   : > { %1237 = vst.msk [vmem:[#allocation2 + $0x18] sm:$0x7f] %vm1234_vm11, %v1143_v53 }
 0x24f   : > { %1355 = vrot.lane.b32.xlu1 %v3021_v54, %s3272_s29  ;;  %1166 = vrot.lane.b32.xlu0 %v1087_v55, %s3271_s28 }
 0x250   : > { %v1883_v57 = vpop.f32.mrf.mxu3  ;;  %1357 = vrot.lane.b32.xlu2 %v3022_v39, %s3272_s29 }
 0x251   : > { %v1884_v58 = vadd.f32 %v4259_v56, %v1883_v57  ;;  %v1558_v59 = vpop.permute.xlu1 %1557  ;;  %v1544_v60 = vpop.permute.xlu0 %1543 }
 0x252   : > { %1624 = vst.msk [vmem:[#allocation2 + $0xc0] sm:$0xff] %vm1599_vm14, %v1558_v59  ;;  %v1332_v61 = vpop.permute.xlu2 %1331  ;;  %v3088_v59 = vld [vmem:[%s3321_s23 + $0xb9] sm:$0x7f] }
 0x253   : > { %v1897_v8 = vmax.f32 %v1884_v58, 0.0  ;;  %1617 = vst.msk [vmem:[#allocation2 + $0x88] sm:$0xff] %vm1599_vm14, %v1544_v60  ;;  %v3087_v58 = vld [vmem:[%s3321_s23 + $0xb1] sm:$0xff] }
 0x254   : > { %1806 = vst.msk [vmem:[#allocation2 + $0xc0] sm:$0xff] %vm1780_vm15, %v1739_v50 }
 0x255   : > { %1906 = vst.msk [vmem:[#allocation3 + $0x20] sm:$0xff] %vm1901_vm2, %v1897_v8 }
 0x257   : > { %1539 = vrot.lane.b32.xlu1 %v3052_v62, %s3273_s30  ;;  %1537 = vrot.lane.b32.xlu0 %v3021_v54, %s3273_s30 }
 0x258   : > { %v1885_v63 = vpop.f32.mrf.mxu3  ;;  %1718 = vrot.lane.b32.xlu2 %v4056_v28, %s3274_s6 }
 0x259   : > { %v1886_v22 = vadd.f32 %v4259_v56, %v1885_v63  ;;  %v1725_v23 = vpop.permute.xlu1 %1724  ;;  %v1723_v21 = vpop.permute.xlu0 %1722 }
 0x25a   : > { %1799 = vst.msk [vmem:[#allocation2 + $0x88] sm:$0x7f] %vm1782_vm1, %v1725_v23  ;;  %v1354_v30 = vpop.permute.xlu2 %1353  ;;  %v3096_v23 = vld [vmem:[%s3321_s23 + $0xf9] sm:$0x7f] }
 0x25b   : > { %v1898_v24 = vmax.f32 %v1886_v22, 0.0  ;;  %1798 = vst.msk [vmem:[#allocation2 + $0x80] sm:$0xff] %vm1780_vm15, %v1723_v21  ;;  %v2053_v4 = vld [vmem:[#allocation2 + $0xc0] sm:$0xff]  ;;  %v3095_v21 = vld [vmem:[%s3321_s23 + $0xf1] sm:$0xff] }
 0x25d   : > { %1907 = vst.msk [vmem:[#allocation3 + $0x28] sm:$0xff] %vm1901_vm2, %v1898_v24 }
 0x25f   : > { %985 = vrot.lane.b32.xlu1 %v4207_v13, %s3270_s27  ;;  %1720 = vrot.lane.b32.xlu0 %v3082_v40, %s3274_s6 }
 0x260   : > { %999 = vrot.lane.b32.xlu2 %v4195_v2, %s3270_s27 }
 0x261   : > { %v1888_v31 = vpop.f32.mrf.mxu3  ;;  %v1141_v25 = vpop.permute.xlu1 %1140  ;;  %v1983_v32 = vld [vmem:[#allocation2 + $0x88] sm:$0xff] }
 0x262   : > { %v1889_v28 = vadd.f32 %v4259_v56, %v1888_v31  ;;  %1236 = vst.msk [vmem:[#allocation2 + $0x10] sm:$0xff] %vm1232_vm9, %v1141_v25  ;;  %v1741_v33 = vpop.permute.xlu0 %1740  ;;  %v1982_v35 = vld [vmem:[#allocation2 + $0x80] sm:$0xff]  ;;  %v1534_v37 = vpop.permute.xlu2 %1533 }
 0x263   : > { %1807 = vst.msk [vmem:[#allocation2 + $0xc8] sm:$0x7f] %vm1782_vm1, %v1741_v33  ;;  %v1990_v27 = vpack.c.bf16 %v1983_v32, %v1982_v35 }
 0x264   : > { %v1899_v42 = vmax.f32 %v1889_v28, 0.0  ;;  %1421 = vst.msk [vmem:[#allocation2 + $0x11] sm:$0xff] %vm1417_vm12, %v1332_v61  ;;  %v2127_v41 = vld [vmem:[#allocation3 + $0x20] ss:$2 sm:$0xff]  ;;  %v2159_v9 = vld [vmem:[#allocation3 + $0x21] ss:$2 sm:$0xff] }
 0x265   : > { %3113 = vmatmul.msk.bf16.vlgmr.msra.gmra.mxu2 %vm226_vm0, %v1990_v27  ;;  %v2188_v47 = vmax.f32 %v2127_v41, %v2159_v9  ;;  %v1103_v27 = vld [vmem:[%s3321_s23 + $0xf9] sm:$0x7f] }
 0x266   : > { %1908 = vst.msk [vmem:[#allocation3 + $0x30] sm:$0xff] %vm1901_vm2, %v1899_v42 }
 0x267   : > { %1176 = vrot.lane.b32.xlu1 %v4224_v48, %s3271_s28  ;;  %1001 = vrot.lane.b32.xlu0 %v4227_v18, %s3270_s27  ;;  %v3036_v18 = vld [vmem:[%s3321_s23 + $0xf8] sm:$0x7f] }
 0x268   : > { %1178 = vrot.lane.b32.xlu2 %v1093_v38, %s3271_s28 }
 0x269   : > { %v1890_v43 = vpop.f32.mrf.mxu3  ;;  %v1163_v1 = vpop.permute.xlu1 %1162 }
 0x26a   : > { %v1891_v0 = vadd.f32 %v4259_v56, %v1890_v43  ;;  %1247 = vst.msk [vmem:[#allocation2 + $0x68] sm:$0x7f] %vm1234_vm11, %v1163_v1  ;;  %v1161_v29 = vpop.permute.xlu0 %1160  ;;  %v2054_v3 = vld [vmem:[#allocation2 + $0xc8] sm:$0xff]  ;;  %v1697_v5 = vpop.permute.xlu2 %1696 }
 0x26b   : > { %1246 = vst.msk [vmem:[#allocation2 + $0x60] sm:$0xff] %vm1232_vm9, %v1161_v29  ;;  %v2061_v2 = vpack.c.bf16 %v2054_v3, %v2053_v4 }
 0x26c   : > { %v1900_v44 = vmax.f32 %v1891_v0, 0.0  ;;  %1432 = vst.msk [vmem:[#allocation2 + $0x69] sm:$0x7f] %vm1419_vm13, %v1354_v30 }
 0x26d   : > { %3117 = vmatmul.msk.bf16.vlgmr.msra.gmra.mxu3 %vm226_vm0, %v2061_v2 }
 0x26e   : > { %1909 = vst.msk [vmem:[#allocation3 + $0x38] sm:$0xff] %vm1901_vm2, %v1900_v44 }
 0x26f   : > { %1194 = vrot.lane.b32.xlu1 %v1101_v45, %s3271_s28  ;;  %1192 = vrot.lane.b32.xlu0 %v4244_v52, %s3271_s28 }
 0x270   : > { %1367 = vrot.lane.b32.xlu2 %v3923_v26, %s3272_s29 }
 0x271   : > { %v1352_v46 = vpop.permute.xlu1 %1351 }
 0x272   : > { %1431 = vst.msk [vmem:[#allocation2 + $0x61] sm:$0xff] %vm1417_vm12, %v1352_v46  ;;  %v1334_v10 = vpop.permute.xlu0 %1333  ;;  %v1944_v11 = vpop.f32.mrf.mxu1 }
 0x273   : > { %1422 = vst.msk [vmem:[#allocation2 + $0x19] sm:$0x7f] %vm1419_vm13, %v1334_v10  ;;  %v1945_v13 = vadd.f32 %v4259_v56, %v1944_v11  ;;  %v996_v14 = vpop.permute.xlu2 %995 }
 0x274   : > { %1612 = vst.msk [vmem:[#allocation2 + $0x60] sm:$0xff] %vm1599_vm14, %v1534_v37 }
 0x275   : > { %v2129_v15 = vld [vmem:[#allocation3 + $0x30] ss:$2 sm:$0xff]  ;;  %v2161_v17 = vld [vmem:[#allocation3 + $0x31] ss:$2 sm:$0xff]  ;;  %v1964_v19 = vmax.f32 %v1945_v13, 0.0  ;;  %1066 = vst.msk [vmem:[#allocation2 + $0xd0] sm:$0xff] %vm1039_vm8, %v996_v14 }
 0x276   : > { %v2189_v48 = vmax.f32 %v2129_v15, %v2161_v17 }
 0x277   : > { %1973 = vst.msk [vmem:[#allocation3 + $0x40] sm:$0xff] %vm1901_vm2, %v1964_v19  ;;  %1383 = vrot.lane.b32.xlu1 %v4315_v12, %s3272_s29  ;;  %1369 = vrot.lane.b32.xlu0 %v3028_v16, %s3272_s29 }
 0x278   : > { %v2203_v20 = vmax.f32 %v2188_v47, %v2189_v48  ;;  %1385 = vrot.lane.b32.xlu2 %v3036_v18, %s3272_s29 }
 0x279   : > { %v1516_v34 = vpop.permute.xlu1 %1515 }
 0x27a   : > { %2211 = vst.msk [vmem:[#allocation4 + $0x8] sm:$0xff] %vm1901_vm2, %v2203_v20  ;;  %v1514_v49 = vpop.permute.xlu0 %1513  ;;  %v1946_v50 = vpop.f32.mrf.mxu1 }
 0x27b   : > { %1603 = vst.msk [vmem:[#allocation2 + $0x18] sm:$0xff] %vm1599_vm14, %v1516_v34  ;;  %v1947_v51 = vadd.f32 %v4259_v56, %v1946_v50  ;;  %v1175_v52 = vpop.permute.xlu2 %1174 }
 0x27c   : > { %1602 = vst.msk [vmem:[#allocation2 + $0x10] sm:$0xff] %vm1599_vm14, %v1514_v49 }
 0x27d   : > { %v1965_v6 = vmax.f32 %v1947_v51, 0.0  ;;  %1785 = vst.msk [vmem:[#allocation2 + $0x18] sm:$0x7f] %vm1782_vm1, %v1697_v5 }
 0x27e   : > { %1253 = vst.msk [vmem:[#allocation2 + $0x98] sm:$0x7f] %vm1234_vm11, %v1175_v52 }
 0x27f   : > { %1974 = vst.msk [vmem:[#allocation3 + $0x48] sm:$0xff] %vm1901_vm2, %v1965_v6  ;;  %1551 = vrot.lane.b32.xlu1 %v3933_v36, %s3273_s30  ;;  %1549 = vrot.lane.b32.xlu0 %v3923_v26, %s3273_s30  ;;  %v3066_v26 = vld [vmem:[%s3321_s23 + $0xf8] sm:$0xff] }
 0x280   : > { %1565 = vrot.lane.b32.xlu2 %v4315_v12, %s3273_s30 }
 0x281   : > { %v1695_v7 = vpop.permute.xlu1 %1694  ;;  %v2581_v53 = vld [vmem:[#allocation4 + $0x9] sm:$0x7f] }
 0x282   : > { %1784 = vst.msk [vmem:[#allocation2 + $0x10] sm:$0xff] %vm1780_vm15, %v1695_v7  ;;  %v1536_v54 = vpop.permute.xlu0 %1535  ;;  %v2243_v55 = vld [vmem:[#allocation4 + $0x8] sm:$0x7f] }
 0x283   : > { %1613 = vst.msk [vmem:[#allocation2 + $0x68] sm:$0xff] %vm1599_vm14, %v1536_v54  ;;  %v1364_v39 = vpop.permute.xlu2 %1363  ;;  %v4340_v57 = vld [vmem:[#allocation4 + $0x8] sm:$0xff]  ;;  %v2257_v36 = vrot.slane %v2243_v55, 7 }
 0x284   : > { %2589 = vst.msk [vmem:[#allocation5 + $0x10] sm:$0x7f] %vm2588_vm3, %v2581_v53  ;;  %v1821_v61 = vld [vmem:[#allocation2 + $0x18] sm:$0xff] }
 0x285   : > { %2273 = vst.msk [vmem:[#allocation5 + $0x30] sm:$0xfe] %vm2271_vm4, %v2257_v36 }
 0x286   : > { %2431 = vst.msk [vmem:[#allocation5 + $0x20] sm:$0xff] %vm1901_vm2, %v4340_v57 }
 0x287   : > { %1730 = vrot.lane.b32.xlu1 %v3087_v58, %s3274_s6  ;;  %1567 = vrot.lane.b32.xlu0 %v3066_v26, %s3273_s30 }
 0x288   : > { %1732 = vrot.lane.b32.xlu2 %v3088_v59, %s3274_s6  ;;  %v2163_v59 = vld [vmem:[#allocation3 + $0x41] ss:$2 sm:$0xff] }
 0x289   : > { %v1717_v60 = vpop.permute.xlu1 %1716  ;;  %v1820_v8 = vld [vmem:[#allocation2 + $0x10] sm:$0xff] }
 0x28a   : > { %1795 = vst.msk [vmem:[#allocation2 + $0x68] sm:$0x7f] %vm1782_vm1, %v1717_v60  ;;  %v1715_v62 = vpop.permute.xlu0 %1714  ;;  %v1827_v63 = vpack.c.bf16 %v1821_v61, %v1820_v8 }
 0x28b   : > { %1794 = vst.msk [vmem:[#allocation2 + $0x60] sm:$0xff] %vm1780_vm15, %v1715_v62  ;;  %v1382_v22 = vpop.permute.xlu2 %1381 }
 0x28c   : > { %3106 = vmatmul.msk.bf16.gmra.mxu0 %vm226_vm0, %v1827_v63 }
 0x28f   : > { %1748 = vrot.lane.b32.xlu1 %v3096_v23, %s3274_s6  ;;  %1746 = vrot.lane.b32.xlu0 %v3095_v21, %s3274_s6 }
 0x290   : > { %1003 = vrot.lane.b32.xlu2 %v4315_v12, %s3270_s27 }
 0x291   : > { %v2030_v24 = vpop.f32.mrf.mxu3  ;;  %v1173_v30 = vpop.permute.xlu1 %1172  ;;  %v1916_v40 = vld [vmem:[#allocation2 + $0x68] sm:$0xff] }
 0x292   : > { %v2031_v31 = vadd.f32 %v4259_v56, %v2030_v24  ;;  %1252 = vst.msk [vmem:[#allocation2 + $0x90] sm:$0xff] %vm1232_vm9, %v1173_v30  ;;  %v998_v25 = vpop.permute.xlu0 %997  ;;  %v1915_v32 = vld [vmem:[#allocation2 + $0x60] sm:$0xff] }
 0x293   : > { %1067 = vst.msk [vmem:[#allocation2 + $0xd8] sm:$0xff] %vm1039_vm8, %v998_v25  ;;  %v1921_v28 = vpack.c.bf16 %v1916_v40, %v1915_v32  ;;  %v1562_v33 = vpop.permute.xlu2 %1561 }
 0x294   : > { %v2041_v35 = vmax.f32 %v2031_v31, 0.0  ;;  %1437 = vst.msk [vmem:[#allocation2 + $0x91] sm:$0xff] %vm1417_vm12, %v1364_v39 }
 0x295   : > { %3111 = vmatmul.msk.bf16.gmra.mxu1 %vm226_vm0, %v1921_v28 }
 0x296   : > { %2050 = vst.msk [vmem:[#allocation3 + $0xb0] sm:$0xff] %vm1901_vm2, %v2041_v35 }
 0x297   : > { %1005 = vrot.lane.b32.xlu0 %v3066_v26, %s3270_s27  ;;  %1196 = vrot.lane.b32.xlu1 %v3095_v21, %s3271_s28  ;;  %v2131_v26 = vld [vmem:[#allocation3 + $0x40] ss:$2 sm:$0xff] }
 0x298   : > { %1198 = vrot.lane.b32.xlu2 %v1103_v27, %s3271_s28  ;;  %v2190_v61 = vmax.f32 %v2131_v26, %v2163_v59 }
 0x299   : > { %v2032_v37 = vpop.f32.mrf.mxu3  ;;  %v1191_v42 = vpop.permute.xlu1 %1190 }
 0x29a   : > { %v2033_v38 = vadd.f32 %v4259_v56, %v2032_v37  ;;  %1261 = vst.msk [vmem:[#allocation2 + $0xd8] sm:$0x7f] %vm1234_vm11, %v1191_v42  ;;  %v1189_v43 = vpop.permute.xlu0 %1188 }
 0x29b   : > { %1260 = vst.msk [vmem:[#allocation2 + $0xd0] sm:$0xff] %vm1232_vm9, %v1189_v43  ;;  %v1729_v1 = vpop.permute.xlu2 %1728 }
 0x29c   : > { %v2042_v0 = vmax.f32 %v2033_v38, 0.0  ;;  %1446 = vst.msk [vmem:[#allocation2 + $0xd9] sm:$0x7f] %vm1419_vm13, %v1382_v22 }
 0x29e   : > { %2051 = vst.msk [vmem:[#allocation3 + $0xb8] sm:$0xff] %vm1901_vm2, %v2042_v0 }
 0x2a1   : > { %v1380_v29 = vpop.permute.xlu1 %1379 }
 0x2a2   : > { %1445 = vst.msk [vmem:[#allocation2 + $0xd1] sm:$0xff] %vm1417_vm12, %v1380_v29  ;;  %v1366_v4 = vpop.permute.xlu0 %1365 }
 0x2a3   : > { %1438 = vst.msk [vmem:[#allocation2 + $0x99] sm:$0x7f] %vm1419_vm13, %v1366_v4  ;;  %v1165_v3 = vpop.permute.xlu2 %1164 }
 0x2a4   : > { %1626 = vst.msk [vmem:[#allocation2 + $0xd0] sm:$0xff] %vm1599_vm14, %v1562_v33 }
 0x2a5   : > { %1248 = vst.msk [vmem:[#allocation2 + $0x70] sm:$0xff] %vm1232_vm9, %v1165_v3 }
 0x2a9   : > { %v1548_v2 = vpop.permute.xlu1 %1547 }
 0x2aa   : > { %1619 = vst.msk [vmem:[#allocation2 + $0x98] sm:$0xff] %vm1599_vm14, %v1548_v2  ;;  %v1546_v5 = vpop.permute.xlu0 %1545  ;;  %v3220_v2 = vld [vmem:[%s4704_s3 + $0x88] sm:$0xff] }
 0x2ab   : > { %1618 = vst.msk [vmem:[#allocation2 + $0x90] sm:$0xff] %vm1599_vm14, %v1546_v5  ;;  %v1358_v44 = vpop.permute.xlu2 %1357  ;;  %2856 = vmatpush.bf16.msrb.mxu2 %v3220_v2  ;;  %v2323_v2 = vld [vmem:[#allocation4 + $0x9] sm:$0x7f] }
 0x2ac   : > { %1801 = vst.msk [vmem:[#allocation2 + $0x98] sm:$0x7f] %vm1782_vm1, %v1729_v1 }
 0x2b1   : > { %v1727_v45 = vpop.permute.xlu1 %1726 }
 0x2b2   : > { %1800 = vst.msk [vmem:[#allocation2 + $0x90] sm:$0xff] %vm1780_vm15, %v1727_v45  ;;  %v1873_v46 = vpop.f32.mrf.mxu0  ;;  %v1564_v10 = vpop.permute.xlu0 %1563  ;;  %v3219_v45 = vld [vmem:[%s4704_s3 + $0x80] sm:$0xff] }
 0x2b3   : > { %v1874_v11 = vadd.f32 %v4259_v56, %v1873_v46  ;;  %1627 = vst.msk [vmem:[#allocation2 + $0xd8] sm:$0xff] %vm1599_vm14, %v1564_v10  ;;  %v1719_v41 = vpop.permute.xlu2 %1718  ;;  %v1985_v12 = vld [vmem:[#allocation2 + $0x98] sm:$0xff]  ;;  %2857 = vmatpush.bf16.msrb.mxu2 %v3219_v45 }
 0x2b5   : > { %v1893_v9 = vmax.f32 %v1874_v11, 0.0 }
 0x2b7   : > { %1902 = vst.msk [vmem:[#allocation3] sm:$0xff] %vm1901_vm2, %v1893_v9 }
 0x2b9   : > { %v1745_v13 = vpop.permute.xlu1 %1744  ;;  %v1984_v14 = vld [vmem:[#allocation2 + $0x90] sm:$0xff] }
 0x2ba   : > { %1809 = vst.msk [vmem:[#allocation2 + $0xd8] sm:$0x7f] %vm1782_vm1, %v1745_v13  ;;  %v1875_v16 = vpop.f32.mrf.mxu0  ;;  %v1743_v15 = vpop.permute.xlu0 %1742  ;;  %v1991_v17 = vpack.c.bf16 %v1985_v12, %v1984_v14 }
 0x2bb   : > { %v1876_v19 = vadd.f32 %v4259_v56, %v1875_v16  ;;  %1808 = vst.msk [vmem:[#allocation2 + $0xd0] sm:$0xff] %vm1780_vm15, %v1743_v15  ;;  %v1949_v47 = vpop.f32.mrf.mxu1  ;;  %v1000_v48 = vpop.permute.xlu2 %999 }
 0x2bc   : > { %v1950_v18 = vadd.f32 %v4259_v56, %v1949_v47  ;;  %3114 = vmatmul.msk.bf16.gmra.mxu2 %vm226_vm0, %v1991_v17  ;;  %1068 = vst.msk [vmem:[#allocation2 + $0xe0] sm:$0xff] %vm1039_vm8, %v1000_v48 }
 0x2bd   : > { %v1894_v20 = vmax.f32 %v1876_v19, 0.0 }
 0x2be   : > { %v1966_v34 = vmax.f32 %v1950_v18, 0.0 }
 0x2bf   : > { %1903 = vst.msk [vmem:[#allocation3 + $0x8] sm:$0xff] %vm1901_vm2, %v1894_v20 }
 0x2c0   : > { %1975 = vst.msk [vmem:[#allocation3 + $0x50] sm:$0xff] %vm1901_vm2, %v1966_v34 }
 0x2c1   : > { %v1356_v49 = vpop.permute.xlu1 %1355  ;;  %v2056_v50 = vld [vmem:[#allocation2 + $0xd8] sm:$0xff] }
 0x2c2   : > { %v1167_v51 = vpop.permute.xlu0 %1166  ;;  %v2055_v52 = vld [vmem:[#allocation2 + $0xd0] sm:$0xff] }
 0x2c3   : > { %1249 = vst.msk [vmem:[#allocation2 + $0x78] sm:$0x7f] %vm1234_vm11, %v1167_v51  ;;  %v1951_v6 = vpop.f32.mrf.mxu1  ;;  %v2062_v7 = vpack.c.bf16 %v2056_v50, %v2055_v52  ;;  %v1179_v53 = vpop.permute.xlu2 %1178 }
 0x2c4   : > { %1433 = vst.msk [vmem:[#allocation2 + $0x71] sm:$0xff] %vm1417_vm12, %v1356_v49  ;;  %v1952_v54 = vadd.f32 %v4259_v56, %v1951_v6 }
 0x2c5   : > { %1434 = vst.msk [vmem:[#allocation2 + $0x79] sm:$0x7f] %vm1419_vm13, %v1358_v44  ;;  %3118 = vmatmul.msk.bf16.gmra.mxu3 %vm226_vm0, %v2062_v7 }
 0x2c6   : > { %v1967_v55 = vmax.f32 %v1952_v54, 0.0 }
 0x2c8   : > { %1976 = vst.msk [vmem:[#allocation3 + $0x58] sm:$0xff] %vm1901_vm2, %v1967_v55 }
 0x2c9   : > { %v1540_v39 = vpop.permute.xlu1 %1539 }
 0x2ca   : > { %1615 = vst.msk [vmem:[#allocation2 + $0x78] sm:$0xff] %vm1599_vm14, %v1540_v39  ;;  %v1538_v36 = vpop.permute.xlu0 %1537 }
 0x2cb   : > { %1614 = vst.msk [vmem:[#allocation2 + $0x70] sm:$0xff] %vm1599_vm14, %v1538_v36  ;;  %v1368_v58 = vpop.permute.xlu2 %1367  ;;  %v2598_v36 = vld [vmem:[#allocation5 + $0x10] sm:$0xff] }
 0x2cc   : > { %1796 = vst.msk [vmem:[#allocation2 + $0x70] sm:$0xff] %vm1780_vm15, %v1719_v41 }
 0x2cf   : > { %v2133_v60 = vld [vmem:[#allocation3 + $0x50] ss:$2 sm:$0xff]  ;;  %v2165_v8 = vld [vmem:[#allocation3 + $0x51] ss:$2 sm:$0xff] }
 0x2d0   : > { %v2191_v62 = vmax.f32 %v2133_v60, %v2165_v8 }
 0x2d1   : > { %v986_v63 = vpop.permute.xlu1 %985 }
 0x2d2   : > { %v2204_v22 = vmax.f32 %v2190_v61, %v2191_v62  ;;  %1061 = vst.msk [vmem:[#allocation2 + $0xa8] sm:$0xff] %vm1039_vm8, %v986_v63  ;;  %v1721_v23 = vpop.permute.xlu0 %1720 }
 0x2d3   : > { %1797 = vst.msk [vmem:[#allocation2 + $0x78] sm:$0x7f] %vm1782_vm1, %v1721_v23  ;;  %v1386_v21 = vpop.permute.xlu2 %1385  ;;  %v1917_v40 = vld [vmem:[#allocation2 + $0x70] sm:$0xff] }
 0x2d4   : > { %2212 = vst.msk [vmem:[#allocation4 + $0x10] sm:$0xff] %vm1901_vm2, %v2204_v22 }
 0x2d5   : > { %1255 = vst.msk [vmem:[#allocation2 + $0xa8] sm:$0x7f] %vm1234_vm11, %v1179_v53 }
 0x2d9   : > { %v1177_v24 = vpop.permute.xlu1 %1176 }
 0x2da   : > { %1254 = vst.msk [vmem:[#allocation2 + $0xa0] sm:$0xff] %vm1232_vm9, %v1177_v24  ;;  %v1002_v30 = vpop.permute.xlu0 %1001  ;;  %v1918_v31 = vld [vmem:[#allocation2 + $0x78] sm:$0xff]  ;;  %v2155_v24 = vld [vmem:[#allocation3 + $0x1] ss:$2 sm:$0xff] }
 0x2db   : > { %1069 = vst.msk [vmem:[#allocation2 + $0xe8] sm:$0xff] %vm1039_vm8, %v1002_v30  ;;  %v1922_v25 = vpack.c.bf16 %v1918_v31, %v1917_v40  ;;  %v1566_v32 = vpop.permute.xlu2 %1565  ;;  %v2582_v28 = vld [vmem:[#allocation4 + $0x11] sm:$0x7f] }
 0x2dc   : > { %v4410_v33 = vld [vmem:[#allocation4 + $0x10] sm:$0xff]  ;;  %1439 = vst.msk [vmem:[#allocation2 + $0xa1] sm:$0xff] %vm1417_vm12, %v1368_v58 }
 0x2dd   : > { %3112 = vmatmul.msk.bf16.gmra.mxu1 %vm226_vm0, %v1922_v25  ;;  %2590 = vst.msk [vmem:[#allocation5 + $0x28] sm:$0x7f] %vm2588_vm3, %v2582_v28  ;;  %v2244_v35 = vld [vmem:[#allocation4 + $0x10] sm:$0x7f] }
 0x2de   : > { %v2258_v27 = vrot.slane %v2244_v35, 7  ;;  %2432 = vst.msk [vmem:[#allocation5 + $0x38] sm:$0xff] %vm1901_vm2, %v4410_v33 }
 0x2e0   : > { %2274 = vst.msk [vmem:[#allocation5 + $0x48] sm:$0xfe] %vm2271_vm4, %v2258_v27 }
 0x2e1   : > { %v1195_v37 = vpop.permute.xlu1 %1194 }
 0x2e2   : > { %1263 = vst.msk [vmem:[#allocation2 + $0xe8] sm:$0x7f] %vm1234_vm11, %v1195_v37  ;;  %v1193_v42 = vpop.permute.xlu0 %1192 }
 0x2e3   : > { %1262 = vst.msk [vmem:[#allocation2 + $0xe0] sm:$0xff] %vm1232_vm9, %v1193_v42  ;;  %v1733_v38 = vpop.permute.xlu2 %1732 }
 0x2e4   : > { %1448 = vst.msk [vmem:[#allocation2 + $0xe9] sm:$0x7f] %vm1419_vm13, %v1386_v21  ;;  %v2601_v55 = vld [vmem:[#allocation5 + $0x28] sm:$0xff] }
 0x2e5   : > { %v2622_v59 = vpack.c.bf16 %v2601_v55, %v2598_v36  ;;  %v2123_v21 = vld [vmem:[#allocation3] ss:$2 sm:$0xff] }
 0x2e8   : > { %v2015_v43 = vpop.f32.mrf.mxu2 }
 0x2e9   : > { %v2016_v1 = vadd.f32 %v4259_v56, %v2015_v43  ;;  %v1384_v0 = vpop.permute.xlu1 %1383 }
 0x2ea   : > { %1447 = vst.msk [vmem:[#allocation2 + $0xe1] sm:$0xff] %vm1417_vm12, %v1384_v0  ;;  %v1370_v29 = vpop.permute.xlu0 %1369  ;;  %v2366_v0 = vld [vmem:[#allocation4 + $0x8] sm:$0x7f] }
 0x2eb   : > { %v2035_v4 = vmax.f32 %v2016_v1, 0.0  ;;  %1440 = vst.msk [vmem:[#allocation2 + $0xa9] sm:$0x7f] %vm1419_vm13, %v1370_v29  ;;  %v1004_v3 = vpop.permute.xlu2 %1003  ;;  %v2382_v29 = vrot.slane %v2366_v0, 7 }
 0x2ec   : > { %1628 = vst.msk [vmem:[#allocation2 + $0xe0] sm:$0xff] %vm1599_vm14, %v1566_v32  ;;  %v2186_v32 = vmax.f32 %v2123_v21, %v2155_v24 }
 0x2ed   : > { %2044 = vst.msk [vmem:[#allocation3 + $0x80] sm:$0xff] %vm1901_vm2, %v2035_v4  ;;  %v2367_v4 = vld [vmem:[#allocation4 + $0x10] sm:$0x7f] }
 0x2ee   : > { %1070 = vst.msk [vmem:[#allocation2 + $0xf0] sm:$0xff] %vm1039_vm8, %v1004_v3  ;;  %v2324_v3 = vld [vmem:[#allocation4 + $0x11] sm:$0x7f] }
 0x2f0   : > { %v2017_v5 = vpop.f32.mrf.mxu2  ;;  %v2086_v44 = vpop.f32.mrf.mxu3 }
 0x2f1   : > { %v2018_v46 = vadd.f32 %v4259_v56, %v2017_v5  ;;  %v2087_v10 = vadd.f32 %v4259_v56, %v2086_v44  ;;  %v1552_v11 = vpop.permute.xlu1 %1551  ;;  %v2383_v5 = vrot.slane %v2367_v4, 7  ;;  %v3208_v4 = vld [vmem:[%s4704_s3 + $0x28] sm:$0xff] }
 0x2f2   : > { %1621 = vst.msk [vmem:[#allocation2 + $0xa8] sm:$0xff] %vm1599_vm14, %v1552_v11  ;;  %v1550_v41 = vpop.permute.xlu0 %1549 }
 0x2f3   : > { %v2036_v9 = vmax.f32 %v2018_v46, 0.0  ;;  %v2106_v13 = vmax.f32 %v2087_v10, 0.0  ;;  %1620 = vst.msk [vmem:[#allocation2 + $0xa0] sm:$0xff] %vm1599_vm14, %v1550_v41  ;;  %v1199_v34 = vpop.permute.xlu2 %1198 }
 0x2f4   : > { %1803 = vst.msk [vmem:[#allocation2 + $0xa8] sm:$0x7f] %vm1782_vm1, %v1733_v38 }
 0x2f5   : > { %2045 = vst.msk [vmem:[#allocation3 + $0x88] sm:$0xff] %vm1901_vm2, %v2036_v9 }
 0x2f6   : > { %2115 = vst.msk [vmem:[#allocation3 + $0xc0] sm:$0xff] %vm1901_vm2, %v2106_v13 }
 0x2f8   : > { %v2088_v14 = vpop.f32.mrf.mxu3 }
 0x2f9   : > { %v2089_v12 = vadd.f32 %v4259_v56, %v2088_v14  ;;  %v1731_v16 = vpop.permute.xlu1 %1730 }
 0x2fa   : > { %1802 = vst.msk [vmem:[#allocation2 + $0xa0] sm:$0xff] %vm1780_vm15, %v1731_v16  ;;  %v1568_v15 = vpop.permute.xlu0 %1567 }
 0x2fb   : > { %v2107_v17 = vmax.f32 %v2089_v12, 0.0  ;;  %1629 = vst.msk [vmem:[#allocation2 + $0xe8] sm:$0xff] %vm1599_vm14, %v1568_v15  ;;  %v1987_v48 = vld [vmem:[#allocation2 + $0xa8] sm:$0xff] }
 0x2fc   : > { %v2139_v16 = vld [vmem:[#allocation3 + $0x80] ss:$2 sm:$0xff]  ;;  %v2171_v15 = vld [vmem:[#allocation3 + $0x81] ss:$2 sm:$0xff] }
 0x2fd   : > { %2116 = vst.msk [vmem:[#allocation3 + $0xc8] sm:$0xff] %vm1901_vm2, %v2107_v17 }
 0x301   : > { %v1749_v19 = vpop.permute.xlu1 %1748  ;;  %v1986_v47 = vld [vmem:[#allocation2 + $0xa0] sm:$0xff] }
 0x302   : > { %1811 = vst.msk [vmem:[#allocation2 + $0xe8] sm:$0x7f] %vm1782_vm1, %v1749_v19  ;;  %v1747_v18 = vpop.permute.xlu0 %1746  ;;  %v1992_v20 = vpack.c.bf16 %v1987_v48, %v1986_v47 }
 0x303   : > { %1810 = vst.msk [vmem:[#allocation2 + $0xe0] sm:$0xff] %vm1780_vm15, %v1747_v18  ;;  %v2194_v18 = vmax.f32 %v2139_v16, %v2171_v15  ;;  %v3205_v16 = vld [vmem:[%s4704_s3 + $0x10] sm:$0xff] }
 0x304   : > { %3115 = vmatmul.msk.bf16.gmra.mxu2 %vm226_vm0, %v1992_v20 }
 0x309   : > { %v1878_v49 = vpop.f32.mrf.mxu0  ;;  %v2058_v50 = vld [vmem:[#allocation2 + $0xe8] sm:$0xff]  ;;  %v1197_v51 = vpop.permute.xlu1 %1196 }
 0x30a   : > { %v1879_v52 = vadd.f32 %v4259_v56, %v1878_v49  ;;  %v2057_v6 = vld [vmem:[#allocation2 + $0xe0] sm:$0xff]  ;;  %v1006_v7 = vpop.permute.xlu0 %1005  ;;  %1264 = vst.msk [vmem:[#allocation2 + $0xf0] sm:$0xff] %vm1232_vm9, %v1197_v51  ;;  %vm2573_vm9 = vcmask 1048320  }
 0x30b   : > { %v2063_v53 = vpack.c.bf16 %v2058_v50, %v2057_v6  ;;  %1071 = vst.msk [vmem:[#allocation2 + $0xf8] sm:$0xff] %vm1039_vm8, %v1006_v7  ;;  %v2147_v49 = vld [vmem:[#allocation3 + $0xc0] ss:$2 sm:$0xff]  ;;  %v2179_v50 = vld [vmem:[#allocation3 + $0xc1] ss:$2 sm:$0xff]  ;;  %vm2530_vm8 = vcmask 785921  }
 0x30c   : > { %v1895_v54 = vmax.f32 %v1879_v52, 0.0  ;;  %1265 = vst.msk [vmem:[#allocation2 + $0xf8] sm:$0x7f] %vm1234_vm11, %v1199_v34 }
 0x30d   : > { %3119 = vmatmul.msk.bf16.gmra.mxu3 %vm226_vm0, %v2063_v53  ;;  %v2198_v53 = vmax.f32 %v2147_v49, %v2179_v50 }
 0x30e   : > { %1904 = vst.msk [vmem:[#allocation3 + $0x10] sm:$0xff] %vm1901_vm2, %v1895_v54 }
 0x311   : > { %v1880_v39 = vpop.f32.mrf.mxu0  ;;  %v2059_v62 = vld [vmem:[#allocation2 + $0xf0] sm:$0xff] }
 0x312   : > { %v1881_v58 = vadd.f32 %v4259_v56, %v1880_v39  ;;  %v1954_v26 = vpop.f32.mrf.mxu1 }
 0x313   : > { %v1955_v60 = vadd.f32 %v4259_v56, %v1954_v26  ;;  %v2060_v63 = vld [vmem:[#allocation2 + $0xf8] sm:$0xff] }
 0x314   : > { %v1896_v8 = vmax.f32 %v1881_v58, 0.0  ;;  %3193 = vmatmul.msk.bf16.vlgmr.msrb.gmra.mxu2 %vm1901_vm2, %v2622_v59  ;;  %v2064_v22 = vpack.c.bf16 %v2060_v63, %v2059_v62 }
 0x315   : > { %v1968_v61 = vmax.f32 %v1955_v60, 0.0 }
 0x316   : > { %1905 = vst.msk [vmem:[#allocation3 + $0x18] sm:$0xff] %vm1901_vm2, %v1896_v8 }
 0x317   : > { %1977 = vst.msk [vmem:[#allocation3 + $0x60] sm:$0xff] %vm1901_vm2, %v1968_v61 }
 0x31a   : > { %v1956_v23 = vpop.f32.mrf.mxu1 }
 0x31b   : > { %v1957_v30 = vadd.f32 %v4259_v56, %v1956_v23 }
 0x31d   : > { %v2125_v40 = vld [vmem:[#allocation3 + $0x10] ss:$2 sm:$0xff]  ;;  %v2157_v31 = vld [vmem:[#allocation3 + $0x11] ss:$2 sm:$0xff]  ;;  %v1969_v25 = vmax.f32 %v1957_v30, 0.0  ;;  %3120 = vmatmul.msk.bf16.gmra.mxu3 %vm226_vm0, %v2064_v22  ;;  %vm2413_vm0 = vcmask 1048321  }
 0x31e   : > { %v2187_v28 = vmax.f32 %v2125_v40, %v2157_v31 }
 0x31f   : > { %1978 = vst.msk [vmem:[#allocation3 + $0x68] sm:$0xff] %vm1901_vm2, %v1969_v25 }
 0x320   : > { %v2202_v35 = vmax.f32 %v2186_v32, %v2187_v28  ;;  %v3210_v28 = vld [vmem:[%s4704_s3 + $0x38] sm:$0xff] }
 0x321   : > { %2792 = vmatpush.bf16.msrb.mxu0 %v3210_v28 }
 0x322   : > { %2210 = vst.msk [vmem:[#allocation4] sm:$0xff] %vm1901_vm2, %v2202_v35 }
 0x326   : > { %v2135_v23 = vld [vmem:[#allocation3 + $0x60] ss:$2 sm:$0xff]  ;;  %v2167_v21 = vld [vmem:[#allocation3 + $0x61] ss:$2 sm:$0xff] }
 0x327   : > { %v2192_v31 = vmax.f32 %v2135_v23, %v2167_v21 }
 0x329   : > { %v2322_v27 = vld [vmem:[#allocation4 + $0x1] sm:$0x7f] }
 0x32a   : > { %v2279_v37 = vld [vmem:[#allocation4] sm:$0xff]  ;;  %2336 = vrot.lane.b32.xlu1 %v2322_v27, %s3275_s21 }
 0x32b   : > { %v2365_v42 = vld [vmem:[#allocation4] sm:$0x7f]  ;;  %2293 = vrot.lane.b32.xlu0 %v2279_v37, %s3274_s6  ;;  %2430 = vst.msk [vmem:[#allocation5 + $0x8] sm:$0xff] %vm1901_vm2, %v2279_v37 }
 0x32c   : > { %v2381_v38 = vrot.slane %v2365_v42, 7  ;;  %v2242_v43 = vld [vmem:[#allocation4] sm:$0x7f] }
 0x32d   : > { %v2256_v1 = vrot.slane %v2242_v43, 7  ;;  %v3209_v43 = vld [vmem:[%s4704_s3 + $0x30] sm:$0xff] }
 0x32e   : > { %2389 = vrot.lane.b32.xlu2 %v2381_v38, %s3276_s22  ;;  %2793 = vmatpush.bf16.msrb.mxu0 %v3209_v43 }
 0x32f   : > { %2272 = vst.msk [vmem:[#allocation5 + $0x18] sm:$0xfe] %vm2271_vm4, %v2256_v1 }
 0x332   : > { %2295 = vrot.lane.b32.xlu1 %v4340_v57, %s3274_s6  ;;  %2794 = vmatpush.bf16.msrb.mxu0 %v3208_v4 }
 0x333   : > { %2391 = vrot.lane.b32.xlu0 %v2382_v29, %s3276_s22 }
 0x336   : > { %2297 = vrot.lane.b32.xlu2 %v4410_v33, %s3274_s6 }
 0x33a   : > { %2340 = vrot.lane.b32.xlu1 %v2324_v3, %s3275_s21 }
 0x33b   : > { %2338 = vrot.lane.b32.xlu0 %v2323_v2, %s3275_s21 }
 0x33e   : > { %2393 = vrot.lane.b32.xlu2 %v2383_v5, %s3276_s22 }
 0x33f   : > { %v2020_v44 = vpop.f32.mrf.mxu2 }
 0x340   : > { %v2021_v45 = vadd.f32 %v4259_v56, %v2020_v44 }
 0x342   : > { %v2037_v46 = vmax.f32 %v2021_v45, 0.0  ;;  %v3207_v45 = vld [vmem:[%s4704_s3 + $0x20] sm:$0xff] }
 0x343   : > { %2795 = vmatpush.bf16.msrb.mxu0 %v3207_v45 }
 0x344   : > { %2046 = vst.msk [vmem:[#allocation3 + $0x90] sm:$0xff] %vm1901_vm2, %v2037_v46 }
 0x347   : > { %v2022_v10 = vpop.f32.mrf.mxu2 }
 0x348   : > { %v2023_v11 = vadd.f32 %v4259_v56, %v2022_v10  ;;  %v2091_v41 = vpop.f32.mrf.mxu3  ;;  %v2440_v10 = vld [vmem:[#allocation4 + $0x11] sm:$0x7f] }
 0x349   : > { %v2092_v9 = vadd.f32 %v4259_v56, %v2091_v41 }
 0x34a   : > { %v2038_v13 = vmax.f32 %v2023_v11, 0.0  ;;  %v3206_v11 = vld [vmem:[%s4704_s3 + $0x18] sm:$0xff] }
 0x34b   : > { %v2108_v14 = vmax.f32 %v2092_v9, 0.0  ;;  %2796 = vmatpush.bf16.msrb.mxu0 %v3206_v11 }
 0x34c   : > { %2047 = vst.msk [vmem:[#allocation3 + $0x98] sm:$0xff] %vm1901_vm2, %v2038_v13 }
 0x34d   : > { %2117 = vst.msk [vmem:[#allocation3 + $0xd0] sm:$0xff] %vm1901_vm2, %v2108_v14 }
 0x34f   : > { %2797 = vmatpush.bf16.msrb.mxu0 %v3205_v16 }
 0x350   : > { %v2093_v12 = vpop.f32.mrf.mxu3 }
 0x351   : > { %v2094_v17 = vadd.f32 %v4259_v56, %v2093_v12 }
 0x353   : > { %v2141_v19 = vld [vmem:[#allocation3 + $0x90] ss:$2 sm:$0xff]  ;;  %v2173_v47 = vld [vmem:[#allocation3 + $0x91] ss:$2 sm:$0xff]  ;;  %v2109_v48 = vmax.f32 %v2094_v17, 0.0 }
 0x354   : > { %v2195_v20 = vmax.f32 %v2141_v19, %v2173_v47 }
 0x355   : > { %2118 = vst.msk [vmem:[#allocation3 + $0xd8] sm:$0xff] %vm1901_vm2, %v2109_v48  ;;  %v3204_v48 = vld [vmem:[%s4704_s3 + $0x8] sm:$0xff] }
 0x356   : > { %v2206_v34 = vmax.f32 %v2194_v18, %v2195_v20  ;;  %2798 = vmatpush.bf16.msrb.mxu0 %v3204_v48 }
 0x358   : > { %2214 = vst.msk [vmem:[#allocation4 + $0x20] sm:$0xff] %vm1901_vm2, %v2206_v34 }
 0x35a   : > { %v1959_v51 = vpop.f32.mrf.mxu1 }
 0x35b   : > { %v1960_v52 = vadd.f32 %v4259_v56, %v1959_v51 }
 0x35c   : > { %v2149_v6 = vld [vmem:[#allocation3 + $0xd0] ss:$2 sm:$0xff]  ;;  %v2181_v7 = vld [vmem:[#allocation3 + $0xd1] ss:$2 sm:$0xff] }
 0x35d   : > { %v2199_v54 = vmax.f32 %v2149_v6, %v2181_v7  ;;  %v1970_v55 = vmax.f32 %v1960_v52, 0.0  ;;  %v3203_v6 = vld [vmem:[%s4704_s3] sm:$0xff] }
 0x35e   : > { %2799 = vmatpush.bf16.msrb.mxu0 %v3203_v6 }
 0x35f   : > { %1979 = vst.msk [vmem:[#allocation3 + $0x70] sm:$0xff] %vm1901_vm2, %v1970_v55  ;;  %v4486_v39 = vld [vmem:[#allocation4 + $0x20] sm:$0xff]  ;;  %v2208_v58 = vmax.f32 %v2198_v53, %v2199_v54  ;;  %v2177_v53 = vld [vmem:[#allocation3 + $0xb1] ss:$2 sm:$0xff] }
 0x360   : > { %v2584_v36 = vld [vmem:[#allocation4 + $0x21] sm:$0x7f]  ;;  %2301 = vrot.lane.b32.xlu2 %v4486_v39, %s3274_s6  ;;  %2434 = vst.msk [vmem:[#allocation5 + $0x68] sm:$0xff] %vm1901_vm2, %v4486_v39  ;;  %v3257_v54 = vld [vmem:[%s4703_s2] ss:$0 sm:$0xff] }
 0x361   : > { %2592 = vst.msk [vmem:[#allocation5 + $0x58] sm:$0x7f] %vm2588_vm3, %v2584_v36  ;;  %v2246_v59 = vld [vmem:[#allocation4 + $0x20] sm:$0x7f] }
 0x362   : > { %2216 = vst.msk [vmem:[#allocation4 + $0x30] sm:$0xff] %vm1901_vm2, %v2208_v58  ;;  %v1961_v26 = vpop.f32.mrf.mxu1  ;;  %v2260_v8 = vrot.slane %v2246_v59, 7  ;;  %v2491_v29 = vld [vmem:[#allocation4 + $0x20] sm:$0x7f] }
 0x363   : > { %v1962_v60 = vadd.f32 %v4259_v56, %v1961_v26  ;;  %v2505_v3 = vrot.slane %v2491_v29, 7  ;;  %v2326_v17 = vld [vmem:[#allocation4 + $0x21] sm:$0x7f] }
 0x364   : > { %2276 = vst.msk [vmem:[#allocation5 + $0x78] sm:$0xfe] %vm2271_vm4, %v2260_v8  ;;  %v2369_v34 = vld [vmem:[#allocation4 + $0x20] sm:$0x7f] }
 0x365   : > { %v1971_v61 = vmax.f32 %v1962_v60, 0.0  ;;  %v2385_v52 = vrot.slane %v2369_v34, 7 }
 0x367   : > { %1980 = vst.msk [vmem:[#allocation3 + $0x78] sm:$0xff] %vm1901_vm2, %v1971_v61 }
 0x368   : > { %v2607_v44 = vld [vmem:[#allocation5 + $0x58] sm:$0xff] }
 0x369   : > { %v4497_v62 = vld [vmem:[#allocation4 + $0x30] sm:$0xff] }
 0x36a   : > { %v2586_v63 = vld [vmem:[#allocation4 + $0x31] sm:$0x7f]  ;;  %2436 = vst.msk [vmem:[#allocation5 + $0x98] sm:$0xff] %vm1901_vm2, %v4497_v62 }
 0x36b   : > { %2594 = vst.msk [vmem:[#allocation5 + $0x88] sm:$0x7f] %vm2588_vm3, %v2586_v63  ;;  %v2248_v22 = vld [vmem:[#allocation4 + $0x30] sm:$0x7f] }
 0x36c   : > { %v2262_v24 = vrot.slane %v2248_v22, 7 }
 0x36e   : > { %v2137_v30 = vld [vmem:[#allocation3 + $0x70] ss:$2 sm:$0xff]  ;;  %v2169_v40 = vld [vmem:[#allocation3 + $0x71] ss:$2 sm:$0xff]  ;;  %2278 = vst.msk [vmem:[#allocation5 + $0xa8] sm:$0xfe] %vm2271_vm4, %v2262_v24 }
 0x36f   : > { %v2193_v25 = vmax.f32 %v2137_v30, %v2169_v40  ;;  %v2442_v30 = vld [vmem:[#allocation4 + $0x21] sm:$0x7f] }
 0x371   : > { %v2205_v32 = vmax.f32 %v2192_v31, %v2193_v25 }
 0x373   : > { %2213 = vst.msk [vmem:[#allocation4 + $0x18] sm:$0xff] %vm1901_vm2, %v2205_v32 }
 0x37a   : > { %v2325_v35 = vld [vmem:[#allocation4 + $0x19] sm:$0x7f] }
 0x37b   : > { %v2282_v27 = vld [vmem:[#allocation4 + $0x18] sm:$0xff]  ;;  %2342 = vrot.lane.b32.xlu2 %v2325_v35, %s3275_s21 }
 0x37c   : > { %v2368_v37 = vld [vmem:[#allocation4 + $0x18] sm:$0x7f]  ;;  %2299 = vrot.lane.b32.xlu1 %v2282_v27, %s3274_s6  ;;  %2433 = vst.msk [vmem:[#allocation5 + $0x50] sm:$0xff] %vm1901_vm2, %v2282_v27 }
 0x37d   : > { %v2384_v42 = vrot.slane %v2368_v37, 7  ;;  %v2583_v38 = vld [vmem:[#allocation4 + $0x19] sm:$0x7f] }
 0x37e   : > { %2591 = vst.msk [vmem:[#allocation5 + $0x40] sm:$0x7f] %vm2588_vm3, %v2583_v38  ;;  %v2245_v1 = vld [vmem:[#allocation4 + $0x18] sm:$0x7f]  ;;  %v2493_v38 = vld [vmem:[#allocation4 + $0x30] sm:$0x7f] }
 0x37f   : > { %2395 = vrot.lane.b32.xlu0 %v2384_v42, %s3276_s22  ;;  %v2259_v0 = vrot.slane %v2245_v1, 7  ;;  %v2441_v2 = vld [vmem:[#allocation4 + $0x19] sm:$0x7f]  ;;  %v2328_v1 = vld [vmem:[#allocation4 + $0x31] sm:$0x7f] }
 0x380   : > { %v2490_v9 = vld [vmem:[#allocation4 + $0x18] sm:$0x7f] }
 0x381   : > { %2275 = vst.msk [vmem:[#allocation5 + $0x60] sm:$0xfe] %vm2271_vm4, %v2259_v0  ;;  %v2504_v12 = vrot.slane %v2490_v9, 7 }
 0x383   : > { %2515 = vrot.lane.b32.xlu2 %v2505_v3, %s3275_s21 }
 0x384   : > { %2460 = vrot.lane.b32.xlu1 %v2441_v2, %s3274_s6  ;;  %v2507_v2 = vrot.slane %v2493_v38, 7 }
 0x385   : > { %v2604_v5 = vld [vmem:[#allocation5 + $0x40] sm:$0xff] }
 0x386   : > { %v2625_v46 = vpack.c.bf16 %v2607_v44, %v2604_v5 }
 0x387   : > { %2458 = vrot.lane.b32.xlu0 %v2440_v10, %s3274_s6  ;;  %v2025_v13 = vpop.f32.mrf.mxu2  ;;  %v2371_v10 = vld [vmem:[#allocation4 + $0x30] sm:$0x7f] }
 0x388   : > { %3194 = vmatmul.msk.bf16.gmra.mxu2 %vm1901_vm2, %v2625_v46  ;;  %v2390_v41 = vpop.permute.xlu2 %2389  ;;  %v2026_v14 = vadd.f32 %v4259_v56, %v2025_v13  ;;  %v2613_v46 = vld [vmem:[#allocation5 + $0x88] sm:$0xff]  ;;  %v2387_v13 = vrot.slane %v2371_v10, 7 }
 0x389   : > { %2414 = vst.msk [vmem:[#allocation5] sm:$0xfe] %vm2413_vm0, %v2390_v41 }
 0x38a   : > { %v2039_v15 = vmax.f32 %v2026_v14, 0.0 }
 0x38b   : > { %2556 = vrot.lane.b32.xlu2 %v2282_v27, %s3276_s22 }
 0x38c   : > { %2513 = vrot.lane.b32.xlu1 %v2504_v12, %s3275_s21  ;;  %2048 = vst.msk [vmem:[#allocation3 + $0xa0] sm:$0xff] %vm1901_vm2, %v2039_v15 }
 0x38f   : > { %2344 = vrot.lane.b32.xlu0 %v2326_v17, %s3275_s21  ;;  %v2027_v47 = vpop.f32.mrf.mxu2 }
 0x390   : > { %v2298_v19 = vpop.permute.xlu2 %2297  ;;  %v2028_v18 = vadd.f32 %v4259_v56, %v2027_v47  ;;  %v2096_v20 = vpop.f32.mrf.mxu3  ;;  %v2596_v4 = vld [vmem:[#allocation5] sm:$0xff] }
 0x391   : > { %2317 = vst.msk [vmem:[#allocation5 + $0x48] sm:$0xff] %vm2314_vm5, %v2298_v19  ;;  %v2097_v49 = vadd.f32 %v4259_v56, %v2096_v20  ;;  %v2145_v56 = vld [vmem:[#allocation3 + $0xb0] ss:$2 sm:$0xff] }
 0x392   : > { %v2040_v50 = vmax.f32 %v2028_v18, 0.0  ;;  %v2197_v59 = vmax.f32 %v2145_v56, %v2177_v53  ;;  %v2439_v18 = vld [vmem:[#allocation4 + $0x9] sm:$0x7f] }
 0x393   : > { %v2110_v51 = vmax.f32 %v2097_v49, 0.0  ;;  %2305 = vrot.lane.b32.xlu2 %v4497_v62, %s3274_s6 }
 0x394   : > { %2049 = vst.msk [vmem:[#allocation3 + $0xa8] sm:$0xff] %vm1901_vm2, %v2040_v50  ;;  %v2489_v50 = vld [vmem:[#allocation4 + $0x10] sm:$0x7f] }
 0x395   : > { %2119 = vst.msk [vmem:[#allocation3 + $0xe0] sm:$0xff] %vm1901_vm2, %v2110_v51  ;;  %v2444_v51 = vld [vmem:[#allocation4 + $0x31] sm:$0x7f]  ;;  %v2503_v6 = vrot.slane %v2489_v50, 7 }
 0x397   : > { %2397 = vrot.lane.b32.xlu0 %v2385_v52, %s3276_s22 }
 0x398   : > { %v2098_v7 = vpop.f32.mrf.mxu3  ;;  %v2394_v5 = vpop.permute.xlu2 %2393 }
 0x399   : > { %v2099_v55 = vadd.f32 %v3257_v54, %v2098_v7 }
 0x39b   : > { %v2143_v36 = vld [vmem:[#allocation3 + $0xa0] ss:$2 sm:$0xff]  ;;  %v2175_v58 = vld [vmem:[#allocation3 + $0xa1] ss:$2 sm:$0xff]  ;;  %v2111_v26 = vmax.f32 %v2099_v55, 0.0 }
 0x39c   : > { %v2196_v60 = vmax.f32 %v2143_v36, %v2175_v58  ;;  %v2337_v8 = vpop.permute.xlu1 %2336  ;;  %v2438_v36 = vld [vmem:[#allocation4 + $0x1] sm:$0x7f] }
 0x39d   : > { %v2294_v61 = vpop.permute.xlu0 %2293  ;;  %2120 = vst.msk [vmem:[#allocation3 + $0xe8] sm:$0xff] %vm1901_vm2, %v2111_v26  ;;  %v2488_v26 = vld [vmem:[#allocation4 + $0x8] sm:$0x7f] }
 0x39e   : > { %2315 = vst.msk [vmem:[#allocation5 + $0x18] sm:$0xff] %vm2314_vm5, %v2294_v61  ;;  %v2207_v63 = vmax.f32 %v2196_v60, %v2197_v59  ;;  %v2502_v59 = vrot.slane %v2488_v26, 7  ;;  %v3218_v60 = vld [vmem:[%s4704_s3 + $0x78] sm:$0xff] }
 0x39f   : > { %2558 = vrot.lane.b32.xlu0 %v4486_v39, %s3276_s22  ;;  %2358 = vst.msk [vmem:[#allocation5 + $0x18] sm:$0x7f] %vm2357_vm6, %v2337_v8  ;;  %3227 = vmatpush.bf16.msrb.mxu1 %v3218_v60 }
 0x3a0   : > { %v2101_v22 = vpop.f32.mrf.mxu3  ;;  %2215 = vst.msk [vmem:[#allocation4 + $0x28] sm:$0xff] %vm1901_vm2, %v2207_v63  ;;  %2821 = vmatpush.bf16.msra.mxu0 %v3218_v60  ;;  %v2859_v60 = vpop.f32.mrf.mxu2 }
 0x3a1   : > { %v2102_v23 = vadd.f32 %v3257_v54, %v2101_v22  ;;  %v3215_v22 = vld [vmem:[%s4704_s3 + $0x60] sm:$0xff] }
 0x3a3   : > { %v2112_v21 = vmax.f32 %v2102_v23, 0.0  ;;  %v3214_v23 = vld [vmem:[%s4704_s3 + $0x58] sm:$0xff] }
 0x3a4   : > { %v2296_v24 = vpop.permute.xlu1 %2295  ;;  %v2151_v41 = vld [vmem:[#allocation3 + $0xe0] ss:$2 sm:$0xff]  ;;  %v2183_v9 = vld [vmem:[#allocation3 + $0xe1] ss:$2 sm:$0xff] }
 0x3a5   : > { %v2392_v40 = vpop.permute.xlu0 %2391  ;;  %2121 = vst.msk [vmem:[#allocation3 + $0xf0] sm:$0xff] %vm1901_vm2, %v2112_v21  ;;  %v2200_v16 = vmax.f32 %v2151_v41, %v2183_v9 }
 0x3a6   : > { %2316 = vst.msk [vmem:[#allocation5 + $0x30] sm:$0xff] %vm2314_vm5, %v2296_v24 }
 0x3a7   : > { %2462 = vrot.lane.b32.xlu0 %v2442_v30, %s3274_s6  ;;  %2415 = vst.msk [vmem:[#allocation5 + $0x18] sm:$0xfe] %vm2413_vm0, %v2392_v40  ;;  %v2327_v39 = vld [vmem:[#allocation4 + $0x29] sm:$0x7f]  ;;  %v3213_v30 = vld [vmem:[%s4704_s3 + $0x50] sm:$0xff] }
 0x3a8   : > { %v2370_v31 = vld [vmem:[#allocation4 + $0x28] sm:$0x7f]  ;;  %v2103_v25 = vpop.f32.mrf.mxu3  ;;  %2346 = vrot.lane.b32.xlu2 %v2327_v39, %s3275_s21 }
 0x3a9   : > { %v2386_v32 = vrot.slane %v2370_v31, 7  ;;  %v2585_v28 = vld [vmem:[#allocation4 + $0x29] sm:$0x7f]  ;;  %v2104_v27 = vadd.f32 %v3257_v54, %v2103_v25  ;;  %v3211_v25 = vld [vmem:[%s4704_s3 + $0x40] sm:$0xff] }
 0x3aa   : > { %v2284_v35 = vld [vmem:[#allocation4 + $0x28] sm:$0xff]  ;;  %2593 = vst.msk [vmem:[#allocation5 + $0x70] sm:$0x7f] %vm2588_vm3, %v2585_v28 }
 0x3ab   : > { %2399 = vrot.lane.b32.xlu1 %v2386_v32, %s3276_s22  ;;  %v2247_v37 = vld [vmem:[#allocation4 + $0x28] sm:$0x7f]  ;;  %2435 = vst.msk [vmem:[#allocation5 + $0x80] sm:$0xff] %vm1901_vm2, %v2284_v35  ;;  %v2113_v42 = vmax.f32 %v2104_v27, 0.0 }
 0x3ac   : > { %v2341_v43 = vpop.permute.xlu1 %2340  ;;  %v2261_v29 = vrot.slane %v2247_v37, 7  ;;  %v2443_v19 = vld [vmem:[#allocation4 + $0x29] sm:$0x7f] }
 0x3ad   : > { %v2339_v0 = vpop.permute.xlu0 %2338  ;;  %2122 = vst.msk [vmem:[#allocation3 + $0xf8] sm:$0xff] %vm1901_vm2, %v2113_v42  ;;  %v2492_v48 = vld [vmem:[#allocation4 + $0x28] sm:$0x7f] }
 0x3ae   : > { %2360 = vst.msk [vmem:[#allocation5 + $0x48] sm:$0x7f] %vm2357_vm6, %v2341_v43  ;;  %v2599_v3 = vld [vmem:[#allocation5 + $0x18] sm:$0xff]  ;;  %v2506_v20 = vrot.slane %v2492_v48, 7  ;;  %v3212_v39 = vld [vmem:[%s4704_s3 + $0x48] sm:$0xff] }
 0x3af   : > { %2348 = vrot.lane.b32.xlu0 %v2328_v1, %s3275_s21  ;;  %2359 = vst.msk [vmem:[#allocation5 + $0x30] sm:$0x7f] %vm2357_vm6, %v2339_v0  ;;  %v2620_v44 = vpack.c.bf16 %v2599_v3, %v2596_v4 }
 0x3b0   : > { %2416 = vst.msk [vmem:[#allocation5 + $0x30] sm:$0xfe] %vm2413_vm0, %v2394_v5  ;;  %2519 = vrot.lane.b32.xlu2 %v2507_v2, %s3275_s21 }
 0x3b1   : > { %v2610_v45 = vld [vmem:[#allocation5 + $0x70] sm:$0xff]  ;;  %2800 = vmatmul.bf16.vlgmr.msrb.gmra.mxu0 %v2620_v44  ;;  %2277 = vst.msk [vmem:[#allocation5 + $0x90] sm:$0xfe] %vm2271_vm4, %v2261_v29 }
 0x3b2   : > { %v2628_v11 = vpack.c.bf16 %v2613_v46, %v2610_v45 }
 0x3b3   : > { %2303 = vrot.lane.b32.xlu1 %v2284_v35, %s3274_s6 }
 0x3b4   : > { %3195 = vmatmul.msk.bf16.gmra.mxu2 %vm1901_vm2, %v2628_v11  ;;  %v2153_v14 = vld [vmem:[#allocation3 + $0xf0] ss:$2 sm:$0xff]  ;;  %v2185_v12 = vld [vmem:[#allocation3 + $0xf1] ss:$2 sm:$0xff] }
 0x3b5   : > { %v2201_v15 = vmax.f32 %v2153_v14, %v2185_v12 }
 0x3b7   : > { %2401 = vrot.lane.b32.xlu0 %v2387_v13, %s3276_s22  ;;  %v2209_v17 = vmax.f32 %v2200_v16, %v2201_v15  ;;  %v2602_v28 = vld [vmem:[#allocation5 + $0x30] sm:$0xff] }
 0x3b8   : > { %2560 = vrot.lane.b32.xlu2 %v2284_v35, %s3276_s22 }
 0x3b9   : > { %2217 = vst.msk [vmem:[#allocation4 + $0x38] sm:$0xff] %vm1901_vm2, %v2209_v17 }
 0x3ba   : > { %v2302_v47 = vpop.permute.xlu2 %2301 }
 0x3bb   : > { %2464 = vrot.lane.b32.xlu1 %v2443_v19, %s3274_s6  ;;  %2319 = vst.msk [vmem:[#allocation5 + $0x78] sm:$0xff] %vm2314_vm5, %v2302_v47 }
 0x3bf   : > { %2562 = vrot.lane.b32.xlu0 %v4497_v62, %s3276_s22  ;;  %v2619_v62 = vld [vmem:[#allocation5 + $0xb8] sm:$0xff] }
 0x3c0   : > { %2456 = vrot.lane.b32.xlu2 %v2439_v18, %s3274_s6  ;;  %v2587_v34 = vld [vmem:[#allocation4 + $0x39] sm:$0x7f] }
 0x3c1   : > { %2595 = vst.msk [vmem:[#allocation5 + $0xa0] sm:$0x7f] %vm2588_vm3, %v2587_v34  ;;  %v2544_v49 = vld [vmem:[#allocation4 + $0x38] sm:$0xff] }
 0x3c2   : > { %2437 = vst.msk [vmem:[#allocation5 + $0xb0] sm:$0xff] %vm1901_vm2, %v2544_v49  ;;  %v2372_v52 = vld [vmem:[#allocation4 + $0x38] sm:$0x7f] }
 0x3c3   : > { %2517 = vrot.lane.b32.xlu1 %v2506_v20, %s3275_s21  ;;  %v2388_v56 = vrot.slane %v2372_v52, 7  ;;  %v2494_v53 = vld [vmem:[#allocation4 + $0x38] sm:$0x7f] }
 0x3c4   : > { %v2508_v55 = vrot.slane %v2494_v53, 7  ;;  %v2445_v61 = vld [vmem:[#allocation4 + $0x39] sm:$0x7f] }
 0x3c7   : > { %2466 = vrot.lane.b32.xlu0 %v2444_v51, %s3274_s6 }
 0x3c8   : > { %2511 = vrot.lane.b32.xlu2 %v2503_v6, %s3275_s21  ;;  %v2616_v7 = vld [vmem:[#allocation5 + $0xa0] sm:$0xff] }
 0x3c9   : > { %v2631_v54 = vpack.c.bf16 %v2619_v62, %v2616_v7 }
 0x3cb   : > { %2403 = vrot.lane.b32.xlu1 %v2388_v56, %s3276_s22  ;;  %3196 = vmatmul.msk.bf16.gmra.mxu2 %vm1901_vm2, %v2631_v54 }
 0x3cf   : > { %2521 = vrot.lane.b32.xlu0 %v2508_v55, %s3275_s21 }
 0x3d0   : > { %2552 = vrot.lane.b32.xlu2 %v4340_v57, %s3276_s22  ;;  %v3217_v57 = vld [vmem:[%s4704_s3 + $0x70] sm:$0xff] }
 0x3d1   : > { %3228 = vmatpush.bf16.msrb.mxu1 %v3217_v57  ;;  %2822 = vmatpush.bf16.msra.mxu0 %v3217_v57  ;;  %v4660_v57 = vpop.f32.mrf.mxu2 }
 0x3d3   : > { %2454 = vrot.lane.b32.xlu1 %v2438_v36, %s3274_s6 }
 0x3d5   : > { %v2343_v58 = vpop.permute.xlu2 %2342 }
 0x3d7   : > { %2554 = vrot.lane.b32.xlu0 %v4410_v33, %s3276_s22  ;;  %v3216_v33 = vld [vmem:[%s4704_s3 + $0x68] sm:$0xff] }
 0x3d8   : > { %3229 = vmatpush.bf16.msrb.mxu1 %v3216_v33  ;;  %2823 = vmatpush.bf16.msra.mxu0 %v3216_v33  ;;  %v4665_v33 = vld [vmem:[%s4705_s4] ss:$0 sm:$0xff] }
 0x3db   : > { %2509 = vrot.lane.b32.xlu1 %v2502_v59, %s3275_s21 }
 0x3dc   : > { %3230 = vmatpush.bf16.msrb.mxu1 %v3215_v22  ;;  %2824 = vmatpush.bf16.msra.mxu0 %v3215_v22 }
 0x3dd   : > { %v2516_v8 = vpop.permute.xlu2 %2515 }
 0x3e0   : > { %3231 = vmatpush.bf16.msrb.mxu1 %v3214_v23  ;;  %2825 = vmatpush.bf16.msra.mxu0 %v3214_v23 }
 0x3e3   : > { %2468 = vrot.lane.b32.xlu1 %v2445_v61, %s3274_s6 }
 0x3e4   : > { %3232 = vmatpush.bf16.msrb.mxu1 %v3213_v30  ;;  %2826 = vmatpush.bf16.msra.mxu0 %v3213_v30 }
 0x3e5   : > { %v2557_v63 = vpop.permute.xlu2 %2556 }
 0x3e8   : > { %3233 = vmatpush.bf16.msrb.mxu1 %v3212_v39  ;;  %2827 = vmatpush.bf16.msra.mxu0 %v3212_v39 }
 0x3eb   : > { %2564 = vrot.lane.b32.xlu1 %v2544_v49, %s3276_s22 }
 0x3ec   : > { %3234 = vmatpush.bf16.msrb.mxu1 %v3211_v25  ;;  %2828 = vmatpush.bf16.msra.mxu0 %v3211_v25 }
 0x3ed   : > { %v2306_v21 = vpop.permute.xlu2 %2305 }
 0x3ee   : > { %v2300_v24 = vpop.permute.xlu1 %2299  ;;  %2321 = vst.msk [vmem:[#allocation5 + $0xa8] sm:$0xff] %vm2314_vm5, %v2306_v21 }
 0x3ef   : > { %2318 = vst.msk [vmem:[#allocation5 + $0x60] sm:$0xff] %vm2314_vm5, %v2300_v24 }
 0x3f0   : > { %2361 = vst.msk [vmem:[#allocation5 + $0x60] sm:$0x7f] %vm2357_vm6, %v2343_v58 }
 0x3f1   : > { %v2396_v40 = vpop.permute.xlu0 %2395 }
 0x3f2   : > { %2417 = vst.msk [vmem:[#allocation5 + $0x48] sm:$0xfe] %vm2413_vm0, %v2396_v40 }
 0x3f6   : > { %v2461_v31 = vpop.permute.xlu1 %2460 }
 0x3f7   : > { %2482 = vst.msk [vmem:[#allocation5 + $0x50] sm:$0x7f] %vm2478_vm7, %v2461_v31 }
 0x3f8   : > { %2534 = vst.msk [vmem:[#allocation5 + $0x50] sm:$0xfe] %vm2530_vm8, %v2516_v8 }
 0x3f9   : > { %v2459_v32 = vpop.permute.xlu0 %2458  ;;  %v2605_v35 = vld [vmem:[#allocation5 + $0x48] sm:$0xff] }
 0x3fa   : > { %2481 = vst.msk [vmem:[#allocation5 + $0x38] sm:$0x7f] %vm2478_vm7, %v2459_v32  ;;  %v2623_v27 = vpack.c.bf16 %v2605_v35, %v2602_v28 }
 0x3fc   : > { %2805 = vmatmul.bf16.gmra.mxu0 %v2623_v27 }
 0x3fe   : > { %v2514_v37 = vpop.permute.xlu1 %2513 }
 0x3ff   : > { %2533 = vst.msk [vmem:[#allocation5 + $0x38] sm:$0xfe] %vm2530_vm8, %v2514_v37 }
 0x400   : > { %2576 = vst.msk [vmem:[#allocation5 + $0x38] sm:$0xff] %vm2573_vm9, %v2557_v63 }
 0x401   : > { %v2345_v42 = vpop.permute.xlu0 %2344 }
 0x402   : > { %2362 = vst.msk [vmem:[#allocation5 + $0x78] sm:$0x7f] %vm2357_vm6, %v2345_v42  ;;  %v2347_v38 = vpop.permute.xlu2 %2346 }
 0x407   : > { %v2603_v3 = vld [vmem:[#allocation5 + $0x38] sm:$0xff] }
 0x409   : > { %v2398_v43 = vpop.permute.xlu0 %2397 }
 0x40a   : > { %2418 = vst.msk [vmem:[#allocation5 + $0x60] sm:$0xfe] %vm2413_vm0, %v2398_v43  ;;  %v2520_v1 = vpop.permute.xlu2 %2519 }
 0x40b   : > { %v2864_v22 = vpop.f32.mrf.mxu2 }
 0x411   : > { %v2559_v0 = vpop.permute.xlu0 %2558  ;;  %v2608_v41 = vld [vmem:[#allocation5 + $0x60] sm:$0xff] }
 0x412   : > { %2577 = vst.msk [vmem:[#allocation5 + $0x50] sm:$0xff] %vm2573_vm9, %v2559_v0  ;;  %v2561_v29 = vpop.permute.xlu2 %2560 }
 0x413   : > { %v2866_v32 = vpop.f32.mrf.mxu2 }
 0x419   : > { %v2463_v4 = vpop.permute.xlu0 %2462  ;;  %v2606_v2 = vld [vmem:[#allocation5 + $0x50] sm:$0xff] }
 0x41a   : > { %2483 = vst.msk [vmem:[#allocation5 + $0x68] sm:$0x7f] %vm2478_vm7, %v2463_v4  ;;  %v2624_v5 = vpack.c.bf16 %v2606_v2, %v2603_v3  ;;  %v2457_v44 = vpop.permute.xlu2 %2456 }
 0x41b   : > { %2480 = vst.msk [vmem:[#allocation5 + $0x20] sm:$0x7f] %vm2478_vm7, %v2457_v44 }
 0x41c   : > { %2834 = vmatmul.bf16.vlgmr.msrb.gmra.mxu1 %v2624_v5 }
 0x41d   : > { %v2400_v45 = vpop.permute.xlu1 %2399 }
 0x41e   : > { %2419 = vst.msk [vmem:[#allocation5 + $0x78] sm:$0xfe] %vm2413_vm0, %v2400_v45 }
 0x421   : > { %v2349_v46 = vpop.permute.xlu0 %2348 }
 0x422   : > { %2364 = vst.msk [vmem:[#allocation5 + $0xa8] sm:$0x7f] %vm2357_vm6, %v2349_v46  ;;  %v2512_v10 = vpop.permute.xlu2 %2511 }
 0x423   : > { %2532 = vst.msk [vmem:[#allocation5 + $0x20] sm:$0xfe] %vm2530_vm8, %v2512_v10 }
 0x425   : > { %v2304_v11 = vpop.permute.xlu1 %2303  ;;  %v2611_v9 = vld [vmem:[#allocation5 + $0x78] sm:$0xff] }
 0x426   : > { %2320 = vst.msk [vmem:[#allocation5 + $0x90] sm:$0xff] %vm2314_vm5, %v2304_v11  ;;  %v2626_v13 = vpack.c.bf16 %v2611_v9, %v2608_v41 }
 0x427   : > { %2363 = vst.msk [vmem:[#allocation5 + $0x90] sm:$0x7f] %vm2357_vm6, %v2347_v38 }
 0x428   : > { %2810 = vmatmul.bf16.gmra.mxu0 %v2626_v13 }
 0x429   : > { %v2402_v14 = vpop.permute.xlu0 %2401 }
 0x42a   : > { %2420 = vst.msk [vmem:[#allocation5 + $0x90] sm:$0xfe] %vm2413_vm0, %v2402_v14  ;;  %v2553_v62 = vpop.permute.xlu2 %2552 }
 0x42d   : > { %v2465_v12 = vpop.permute.xlu1 %2464 }
 0x42e   : > { %2484 = vst.msk [vmem:[#allocation5 + $0x80] sm:$0x7f] %vm2478_vm7, %v2465_v12  ;;  %v2801_v59 = vpop.f32.mrf.mxu0 }
 0x42f   : > { %2536 = vst.msk [vmem:[#allocation5 + $0x80] sm:$0xfe] %vm2530_vm8, %v2520_v1 }
 0x431   : > { %v2563_v16 = vpop.permute.xlu0 %2562  ;;  %v2614_v49 = vld [vmem:[#allocation5 + $0x90] sm:$0xff] }
 0x432   : > { %2579 = vst.msk [vmem:[#allocation5 + $0x80] sm:$0xff] %vm2573_vm9, %v2563_v16 }
 0x435   : > { %v2518_v15 = vpop.permute.xlu1 %2517 }
 0x436   : > { %2535 = vst.msk [vmem:[#allocation5 + $0x68] sm:$0xfe] %vm2530_vm8, %v2518_v15  ;;  %v2803_v8 = vpop.f32.mrf.mxu0 }
 0x437   : > { %2578 = vst.msk [vmem:[#allocation5 + $0x68] sm:$0xff] %vm2573_vm9, %v2561_v29  ;;  %v2869_v2 = vpop.f32.mrf.mxu2 }
 0x439   : > { %v2467_v17 = vpop.permute.xlu0 %2466  ;;  %v2612_v48 = vld [vmem:[#allocation5 + $0x80] sm:$0xff] }
 0x43a   : > { %2485 = vst.msk [vmem:[#allocation5 + $0x98] sm:$0x7f] %vm2478_vm7, %v2467_v17 }
 0x43d   : > { %v2404_v19 = vpop.permute.xlu1 %2403 }
 0x43e   : > { %2421 = vst.msk [vmem:[#allocation5 + $0xa8] sm:$0xfe] %vm2413_vm0, %v2404_v19  ;;  %v2609_v47 = vld [vmem:[#allocation5 + $0x68] sm:$0xff] }
 0x43f   : > { %v2627_v18 = vpack.c.bf16 %v2612_v48, %v2609_v47  ;;  %v2871_v13 = vpop.f32.mrf.mxu2  ;;  %v2802_v48 = vadd.f32 %v4665_v33, %v2801_v59 }
 0x441   : > { %v2522_v20 = vpop.permute.xlu0 %2521  ;;  %2839 = vmatmul.bf16.gmra.mxu1 %v2627_v18 }
 0x442   : > { %2537 = vst.msk [vmem:[#allocation5 + $0x98] sm:$0xfe] %vm2530_vm8, %v2522_v20 }
 0x445   : > { %v2455_v34 = vpop.permute.xlu1 %2454  ;;  %v2617_v50 = vld [vmem:[#allocation5 + $0xa8] sm:$0xff] }
 0x446   : > { %2479 = vst.msk [vmem:[#allocation5 + $0x8] sm:$0x7f] %vm2478_vm7, %v2455_v34  ;;  %v2629_v51 = vpack.c.bf16 %v2617_v50, %v2614_v49 }
 0x448   : > { %2815 = vmatmul.bf16.gmra.mxu0 %v2629_v51 }
 0x449   : > { %v2555_v52 = vpop.permute.xlu0 %2554 }
 0x44a   : > { %2575 = vst.msk [vmem:[#allocation5 + $0x20] sm:$0xff] %vm2573_vm9, %v2555_v52 }
 0x44d   : > { %v2510_v6 = vpop.permute.xlu1 %2509 }
 0x44e   : > { %2531 = vst.msk [vmem:[#allocation5 + $0x8] sm:$0xfe] %vm2530_vm8, %v2510_v6  ;;  %v2804_v6 = vadd.f32 %v4665_v33, %v2803_v8 }
 0x44f   : > { %2574 = vst.msk [vmem:[#allocation5 + $0x8] sm:$0xff] %vm2573_vm9, %v2553_v62 }
 0x451   : > { %v2600_v53 = vld [vmem:[#allocation5 + $0x20] sm:$0xff] }
 0x455   : > { %v2469_v7 = vpop.permute.xlu1 %2468 }
 0x456   : > { %2486 = vst.msk [vmem:[#allocation5 + $0xb0] sm:$0x7f] %vm2478_vm7, %v2469_v7  ;;  %v2597_v56 = vld [vmem:[#allocation5 + $0x8] sm:$0xff] }
 0x457   : > { %v2621_v54 = vpack.c.bf16 %v2600_v53, %v2597_v56 }
 0x459   : > { %2829 = vmatmul.bf16.vlgmr.msra.gmra.mxu0 %v2621_v54 }
 0x45d   : > { %v2565_v55 = vpop.permute.xlu1 %2564  ;;  %v2618_v58 = vld [vmem:[#allocation5 + $0xb0] sm:$0xff] }
 0x45e   : > { %2580 = vst.msk [vmem:[#allocation5 + $0x98] sm:$0xff] %vm2573_vm9, %v2565_v55  ;;  %v2874_v55 = vpop.f32.mrf.mxu2 }
 0x465   : > { %v2615_v36 = vld [vmem:[#allocation5 + $0x98] sm:$0xff] }
 0x466   : > { %v2630_v26 = vpack.c.bf16 %v2618_v58, %v2615_v36 }
 0x468   : > { %2844 = vmatmul.bf16.gmra.mxu1 %v2630_v26 }
 0x479   : > { %v2806_v61 = vpop.f32.mrf.mxu0 }
 0x47a   : > { %v2807_v63 = vadd.f32 %v4665_v33, %v2806_v61 }
 0x481   : > { %v2808_v30 = vpop.f32.mrf.mxu0 }
 0x482   : > { %v2809_v39 = vadd.f32 %v4665_v33, %v2808_v30  ;;  %v2876_v30 = vpop.f32.mrf.mxu2 }
 0x499   : > { %v2835_v23 = vpop.f32.mrf.mxu1 }
 0x49a   : > { %v2836_v21 = vadd.f32 %v2835_v23, %v2807_v63 }
 0x49c   : > { %v2865_v24 = vadd.f32 %v2864_v22, %v2836_v21 }
 0x49e   : > { %v2881_v40 = vmax.f32 %v2865_v24, 0.0 }
 0x4a0   : > { %2889 = vst.msk [vmem:[#allocation6 + $0x10] sm:$0xff] %vm1901_vm2, %v2881_v40 }
 0x4a1   : > { %v2837_v31 = vpop.f32.mrf.mxu1 }
 0x4a2   : > { %v2838_v25 = vadd.f32 %v2837_v31, %v2809_v39 }
 0x4a4   : > { %v2867_v28 = vadd.f32 %v2866_v32, %v2838_v25 }
 0x4a5   : > { %v2811_v29 = vpop.f32.mrf.mxu0 }
 0x4a6   : > { %v2882_v35 = vmax.f32 %v2867_v28, 0.0  ;;  %v2812_v4 = vadd.f32 %v4665_v33, %v2811_v29 }
 0x4a7   : > { %v2899_v27 = vld [vmem:[#allocation6 + $0x10] ss:$2 sm:$0xf]  ;;  %v2915_v37 = vld [vmem:[#allocation6 + $0x11] ss:$2 sm:$0xf] }
 0x4a8   : > { %2890 = vst.msk [vmem:[#allocation6 + $0x18] sm:$0xff] %vm1901_vm2, %v2882_v35  ;;  %v2928_v43 = vmax.f32 %v2899_v27, %v2915_v37 }
 0x4ad   : > { %v2813_v3 = vpop.f32.mrf.mxu0 }
 0x4ae   : > { %v2814_v10 = vadd.f32 %v4665_v33, %v2813_v3 }
 0x4af   : > { %v2901_v42 = vld [vmem:[#allocation6 + $0x18] ss:$2 sm:$0xf]  ;;  %v2917_v38 = vld [vmem:[#allocation6 + $0x19] ss:$2 sm:$0xf] }
 0x4b0   : > { %v2929_v1 = vmax.f32 %v2901_v42, %v2917_v38 }
 0x4b2   : > { %v2935_v0 = vmax.f32 %v2928_v43, %v2929_v1 }
 0x4b4   : > { %2940 = vst.msk [vmem:[%s4675_s15 + $0x4] sm:$0xf] %vm2938_vm10, %v2935_v0 }
 0x4be   : > { %v2840_v5 = vpop.f32.mrf.mxu1 }
 0x4bf   : > { %v2841_v44 = vadd.f32 %v2840_v5, %v2812_v4 }
 0x4c1   : > { %v2870_v45 = vadd.f32 %v2869_v2, %v2841_v44 }
 0x4c3   : > { %v2883_v46 = vmax.f32 %v2870_v45, 0.0 }
 0x4c5   : > { %2891 = vst.msk [vmem:[#allocation6 + $0x20] sm:$0xff] %vm1901_vm2, %v2883_v46  ;;  %v2816_v11 = vpop.f32.mrf.mxu0 }
 0x4c6   : > { %v2842_v41 = vpop.f32.mrf.mxu1  ;;  %v2817_v54 = vadd.f32 %v4665_v33, %v2816_v11 }
 0x4c7   : > { %v2843_v9 = vadd.f32 %v2842_v41, %v2814_v10 }
 0x4c9   : > { %v2872_v14 = vadd.f32 %v2871_v13, %v2843_v9 }
 0x4cb   : > { %v2884_v12 = vmax.f32 %v2872_v14, 0.0 }
 0x4cc   : > { %v2903_v15 = vld [vmem:[#allocation6 + $0x20] ss:$2 sm:$0xf]  ;;  %v2919_v17 = vld [vmem:[#allocation6 + $0x21] ss:$2 sm:$0xf] }
 0x4cd   : > { %2892 = vst.msk [vmem:[#allocation6 + $0x28] sm:$0xff] %vm1901_vm2, %v2884_v12  ;;  %v2818_v16 = vpop.f32.mrf.mxu0  ;;  %v2930_v18 = vmax.f32 %v2903_v15, %v2919_v17 }
 0x4ce   : > { %v2819_v8 = vadd.f32 %v4665_v33, %v2818_v16 }
 0x4d4   : > { %v2905_v19 = vld [vmem:[#allocation6 + $0x28] ss:$2 sm:$0xf]  ;;  %v2921_v47 = vld [vmem:[#allocation6 + $0x29] ss:$2 sm:$0xf] }
 0x4d5   : > { %v2931_v20 = vmax.f32 %v2905_v19, %v2921_v47 }
 0x4d6   : > { %v2830_v34 = vpop.f32.mrf.mxu0 }
 0x4d7   : > { %v2936_v49 = vmax.f32 %v2930_v18, %v2931_v20  ;;  %v2831_v50 = vadd.f32 %v2830_v34, %v2802_v48 }
 0x4d9   : > { %2941 = vst.msk [vmem:[%s4675_s15 + $0x8] sm:$0xf] %vm2938_vm10, %v2936_v49  ;;  %v2860_v51 = vadd.f32 %v2859_v60, %v2831_v50 }
 0x4db   : > { %v2879_v52 = vmax.f32 %v2860_v51, 0.0 }
 0x4dd   : > { %2887 = vst.msk [vmem:[#allocation6] sm:$0xff] %vm1901_vm2, %v2879_v52 }
 0x4de   : > { %v2832_v62 = vpop.f32.mrf.mxu0 }
 0x4df   : > { %v2833_v7 = vadd.f32 %v2832_v62, %v2804_v6 }
 0x4e1   : > { %v2862_v56 = vadd.f32 %v4660_v57, %v2833_v7 }
 0x4e3   : > { %v2880_v53 = vmax.f32 %v2862_v56, 0.0 }
 0x4e4   : > { %v2895_v59 = vld [vmem:[#allocation6] ss:$2 sm:$0xf]  ;;  %v2911_v60 = vld [vmem:[#allocation6 + $0x1] ss:$2 sm:$0xf] }
 0x4e5   : > { %2888 = vst.msk [vmem:[#allocation6 + $0x8] sm:$0xff] %vm1901_vm2, %v2880_v53  ;;  %v2845_v36 = vpop.f32.mrf.mxu1  ;;  %v2926_v23 = vmax.f32 %v2895_v59, %v2911_v60 }
 0x4e6   : > { %v2846_v58 = vadd.f32 %v2845_v36, %v2817_v54 }
 0x4e8   : > { %v2875_v26 = vadd.f32 %v2874_v55, %v2846_v58 }
 0x4ea   : > { %v2885_v61 = vmax.f32 %v2875_v26, 0.0 }
 0x4ec   : > { %v2897_v63 = vld [vmem:[#allocation6 + $0x8] ss:$2 sm:$0xf]  ;;  %v2913_v22 = vld [vmem:[#allocation6 + $0x9] ss:$2 sm:$0xf] }
 0x4ed   : > { %v2927_v21 = vmax.f32 %v2897_v63, %v2913_v22  ;;  %2893 = vst.msk [vmem:[#allocation6 + $0x30] sm:$0xff] %vm1901_vm2, %v2885_v61  ;;  %v2847_v57 = vpop.f32.mrf.mxu1 }
 0x4ee   : > { %v2848_v24 = vadd.f32 %v2847_v57, %v2819_v8 }
 0x4ef   : > { %v2934_v40 = vmax.f32 %v2926_v23, %v2927_v21 }
 0x4f0   : > { %v2877_v39 = vadd.f32 %v2876_v30, %v2848_v24 }
 0x4f1   : > { %2939 = vst.msk [vmem:[%s4675_s15] sm:$0xf] %vm2938_vm10, %v2934_v40 }
 0x4f2   : > { %v2886_v31 = vmax.f32 %v2877_v39, 0.0 }
 0x4f4   : > { %2894 = vst.msk [vmem:[#allocation6 + $0x38] sm:$0xff] %vm1901_vm2, %v2886_v31  ;;  %v2907_v25 = vld [vmem:[#allocation6 + $0x30] ss:$2 sm:$0xf] }
 0x4f5   : > { %v2923_v32 = vld [vmem:[#allocation6 + $0x31] ss:$2 sm:$0xf] }
 0x4f6   : > { %v2932_v35 = vmax.f32 %v2907_v25, %v2923_v32 }
 0x4fb   : > { %v2909_v33 = vld [vmem:[#allocation6 + $0x38] ss:$2 sm:$0xf]  ;;  %v2925_v28 = vld [vmem:[#allocation6 + $0x39] ss:$2 sm:$0xf] }
 0x4fc   : > { %v2933_v27 = vmax.f32 %v2909_v33, %v2925_v28 }
 0x4fe   : > { %v2937_v37 = vmax.f32 %v2932_v35, %v2933_v27 }
 0x500   : > { %2942 = vst.msk [vmem:[%s4675_s15 + $0xc] sm:$0xf] %vm2938_vm10, %v2937_v37 }
 0x501 PF: > { %s15_s18 = sadd.s32 1, %s3264_s18  }
 0x502   : > { %p12_p4 = scmp.ge.s32.totalorder %s15_s18, 4  }
 0x504   :  { %14 = sbr.rel (!%p12_p4) target bundleno = 1 (0x1), region = 126 }

</bundles_post_ra>
